<compile_context>
chip_gen: v7x
topology: tpu7x:2x2x1
jax: 0.10.0
libtpu: 0.0.40
codegen_flags: <defaults>
</compile_context>

<pallas_src>
import functools
import math

import jax
import jax.numpy as jnp
from jax import lax
from jax.experimental import pallas as pl
from jax.experimental.pallas import tpu as pltpu


_VMEM_LIMIT = 48 * 1024 * 1024    # explicit scoped-VMEM limit (safe under v7x's 64 MiB physical)
_VMEM_BUDGET = 40 * 1024 * 1024   # target resident set used for tile shrinking


# ------------------------------ tiling helpers ------------------------------

def _choose_tile(dim, target, align):
    """Pick (tile, padded_dim).

    - dim <= target           -> single full-dim block (no padding).
    - a multiple of `align`   -> largest such tile <= target that divides dim.
    - otherwise               -> pad dim up to a multiple of `align` and tile the padded dim
                                 (bounded blocks instead of one giant un-tiled block).
    """
    if dim <= target:
        return dim, dim
    t = (target // align) * align
    while t >= align:
        if dim % t == 0:
            return t, dim
        t -= align
    padded = ((dim + align - 1) // align) * align
    t = (target // align) * align
    while t >= align:
        if padded % t == 0:
            return t, padded
        t -= align
    return align, padded


def _pad2(a, rows, cols):
    r, c = a.shape
    if r == rows and c == cols:
        return a
    return jnp.pad(a, ((0, rows - r), (0, cols - c)))


def _single_buffered_spec(shape, index_map):
    """K/V blocks are constant across the q-tile axis; double-buffering them is pure VMEM waste,
    so request single buffering where the API supports it."""
    try:
        return pl.BlockSpec(shape, index_map, pipeline_mode=pl.Buffered(1))
    except Exception:   # pragma: no cover - API variant without pipeline_mode/Buffered
        return pl.BlockSpec(shape, index_map)


# ------------------------------ linear kernel -------------------------------

def _linear_kernel(x_ref, w_ref, b_ref, o_ref, acc_ref, *, activation):
    k = pl.program_id(2)

    @pl.when(k == 0)
    def _():
        acc_ref[...] = jnp.zeros_like(acc_ref)

    # bf16 operands on the MXU, f32 accumulation.
    acc_ref[...] += jnp.dot(x_ref[...].astype(jnp.bfloat16), w_ref[...],
                            preferred_element_type=jnp.float32)

    @pl.when(k == pl.num_programs(2) - 1)
    def _():
        y = acc_ref[...] + b_ref[...].astype(jnp.float32)
        if activation == "relu":
            y = jnp.maximum(y, 0.0)
        o_ref[...] = y.astype(o_ref.dtype)


def linear(x, w, b, activation=None, out_dtype=None):
    """x: (..., Din) @ w: (Din, Dout) + b: (Dout,) -- tiled, pipelined, bf16 MXU / f32 acc."""
    orig_shape = x.shape
    din = orig_shape[-1]
    dout = w.shape[1]
    out_dtype = out_dtype or x.dtype
    x2 = x.reshape(-1, din)
    m = x2.shape[0]

    tm, m_pad = _choose_tile(m, 512, 128)
    tn, n_pad = _choose_tile(dout, 512, 128)
    tk, k_pad = _choose_tile(din, 512, 128)

    x2 = _pad2(x2, m_pad, k_pad)
    wp = _pad2(w, k_pad, n_pad)
    bp = _pad2(b.reshape(1, dout), 1, n_pad)

    grid = (m_pad // tm, n_pad // tn, k_pad // tk)
    xb = x2.dtype.itemsize
    ob = jnp.dtype(out_dtype).itemsize

    out = pl.pallas_call(
        functools.partial(_linear_kernel, activation=activation),
        grid=grid,
        in_specs=[
            pl.BlockSpec((tm, tk), lambda i, j, k: (i, k)),
            pl.BlockSpec((tk, tn), lambda i, j, k: (k, j)),
            pl.BlockSpec((1, tn), lambda i, j, k: (0, j)),
        ],
        out_specs=pl.BlockSpec((tm, tn), lambda i, j, k: (i, j)),
        out_shape=jax.ShapeDtypeStruct((m_pad, n_pad), out_dtype),
        scratch_shapes=[pltpu.VMEM((tm, tn), jnp.float32)],
        compiler_params=pltpu.CompilerParams(
            dimension_semantics=("parallel", "parallel", "arbitrary"),
            vmem_limit_bytes=_VMEM_LIMIT),
        cost_estimate=pl.CostEstimate(
            flops=2 * m_pad * k_pad * n_pad,
            transcendentals=0,
            bytes_accessed=xb * m_pad * k_pad + 2 * k_pad * n_pad + ob * m_pad * n_pad),
    )(x2, wp, bp)

    if m_pad != m or n_pad != dout:
        out = out[:m, :dout]
    return out.reshape(orig_shape[:-1] + (dout,))


# ------------------ linear + residual-add + LayerNorm (fused) ---------------

def _linear_add_ln_kernel(x_ref, w_ref, b_ref, r_ref, g_ref, bb_ref,
                          o_ref, acc_ref, *, eps):
    k = pl.program_id(1)

    @pl.when(k == 0)
    def _():
        acc_ref[...] = jnp.zeros_like(acc_ref)

    acc_ref[...] += jnp.dot(x_ref[...].astype(jnp.bfloat16), w_ref[...],
                            preferred_element_type=jnp.float32)

    @pl.when(k == pl.num_programs(1) - 1)
    def _():
        z = acc_ref[...] + b_ref[...].astype(jnp.float32) \
            + r_ref[...].astype(jnp.float32)
        mu = jnp.mean(z, axis=-1, keepdims=True)
        var = jnp.mean(jnp.square(z - mu), axis=-1, keepdims=True)
        zn = (z - mu) * lax.rsqrt(var + eps)
        o_ref[...] = (zn * g_ref[...].astype(jnp.float32)
                      + bb_ref[...].astype(jnp.float32)).astype(o_ref.dtype)


def linear_add_layernorm(x, w, b, residual, gamma, beta, eps=1e-5):
    """LayerNorm(residual + (x @ w + b)) with add + LN fused into the matmul epilogue.
    N (= d_model) is kept un-tiled so LN sees the full row; tiles are shrunk under a VMEM budget."""
    orig_shape = residual.shape
    din = x.shape[-1]
    dout = w.shape[1]
    x2 = x.reshape(-1, din)
    r2 = residual.reshape(-1, dout)
    m = x2.shape[0]
    xb = x2.dtype.itemsize
    ob = r2.dtype.itemsize

    # Shrink the tile targets until the double-buffered resident set fits the budget
    # (matters at large d_model on v7x's 64 MiB VMEM; no-op at demo shapes).
    tm_t, tk_t = 512, 512

    def _est(tm, tk):
        return (2 * tm * tk * xb          # x blocks (double-buffered)
                + 2 * tk * dout * 2       # bf16 weight blocks
                + 2 * tm * dout * 4       # residual blocks
                + 2 * tm * dout * ob      # output blocks
                + tm * dout * 4           # f32 accumulator
                + 6 * dout * 4)           # bias / gamma / beta

    while _est(min(tm_t, m), min(tk_t, din)) > _VMEM_BUDGET and (tm_t > 128 or tk_t > 256):
        if tm_t > 128:
            tm_t //= 2
        else:
            tk_t //= 2

    tm, m_pad = _choose_tile(m, tm_t, 128)
    tk, k_pad = _choose_tile(din, tk_t, 128)

    x2 = _pad2(x2, m_pad, k_pad)
    r2 = _pad2(r2, m_pad, dout)
    wp = _pad2(w, k_pad, dout)
    grid = (m_pad // tm, k_pad // tk)

    out = pl.pallas_call(
        functools.partial(_linear_add_ln_kernel, eps=eps),
        grid=grid,
        in_specs=[
            pl.BlockSpec((tm, tk), lambda i, k: (i, k)),
            pl.BlockSpec((tk, dout), lambda i, k: (k, 0)),
            pl.BlockSpec((1, dout), lambda i, k: (0, 0)),
            pl.BlockSpec((tm, dout), lambda i, k: (i, 0)),
            pl.BlockSpec((1, dout), lambda i, k: (0, 0)),
            pl.BlockSpec((1, dout), lambda i, k: (0, 0)),
        ],
        out_specs=pl.BlockSpec((tm, dout), lambda i, k: (i, 0)),
        out_shape=jax.ShapeDtypeStruct((m_pad, dout), residual.dtype),
        scratch_shapes=[pltpu.VMEM((tm, dout), jnp.float32)],
        compiler_params=pltpu.CompilerParams(
            dimension_semantics=("parallel", "arbitrary"),
            vmem_limit_bytes=_VMEM_LIMIT),
        cost_estimate=pl.CostEstimate(
            flops=2 * m_pad * k_pad * dout + 10 * m_pad * dout,
            transcendentals=m_pad,
            bytes_accessed=xb * m_pad * k_pad + 2 * k_pad * dout + 2 * ob * m_pad * dout),
    )(x2, wp, b.reshape(1, dout), r2, gamma.reshape(1, dout), beta.reshape(1, dout))

    if m_pad != m:
        out = out[:m]
    return out.reshape(orig_shape)


# ------------------------------ attention kernel ----------------------------

def _attn_kernel(q_ref, k_ref, v_ref, o_ref, o_acc, *, h, causal, q_tile):
    qi = pl.program_id(1)
    tq = q_ref.shape[1]
    sk = k_ref.shape[1]
    dhk = q_ref.shape[2] // h
    dhv = v_ref.shape[2] // h

    q_all = q_ref[0]               # (tq, H*dhk) bf16 — lane-dense load; scale pre-folded into Q
    k_all = k_ref[0]               # (Sk, H*dhk) bf16
    v_all = v_ref[0]               # (Sk, H*dhv) bf16

    if causal:
        row = lax.broadcasted_iota(jnp.int32, (tq, sk), 0) + qi * q_tile
        col = lax.broadcasted_iota(jnp.int32, (tq, sk), 1)
        keep = row >= col
        mask_val = jnp.finfo(jnp.float32).min

    # Per-head loop; each head's normalized output goes straight into the f32 VMEM scratch
    # (bounds live ranges — no deferred parts list / concatenate).
    for head in range(h):
        q = q_all[:, head * dhk:(head + 1) * dhk]
        kk = k_all[:, head * dhk:(head + 1) * dhk]
        v = v_all[:, head * dhv:(head + 1) * dhv]
        s = lax.dot_general(q, kk, (((1,), (1,)), ((), ())),
                            preferred_element_type=jnp.float32)
        if causal:
            s = jnp.where(keep, s, mask_val)
        m = jnp.max(s, axis=-1, keepdims=True)
        p = jnp.exp(s - m)
        l = jnp.sum(p, axis=-1, keepdims=True)
        o = jnp.dot(p.astype(v.dtype), v, preferred_element_type=jnp.float32)
        o_acc[:, head * dhv:(head + 1) * dhv] = o * pl.reciprocal(l, approx=True)

    # Single lane-dense store of all heads.
    o_ref[0] = o_acc[...].astype(o_ref.dtype)


def attention(q, k, v, *, h, causal):
    """q: (B,Sq,H*dhk), k: (B,Sk,H*dhk), v: (B,Sk,H*dhv) -> (B,Sq,H*dhv) (heads folded, bf16).
    Softmax scale is pre-folded into the Q projection."""
    b, sq, d_k = q.shape
    sk = k.shape[1]
    d_v = v.shape[2]

    tq, sq_pad = _choose_tile(sq, 256, 128)
    if sq_pad != sq:
        q = jnp.pad(q, ((0, 0), (0, sq_pad - sq), (0, 0)))
    grid = (b, sq_pad // tq)
    ib = q.dtype.itemsize

    out = pl.pallas_call(
        functools.partial(_attn_kernel, h=h, causal=causal, q_tile=tq),
        grid=grid,
        in_specs=[
            pl.BlockSpec((1, tq, d_k), lambda bi, qi: (bi, qi, 0)),
            _single_buffered_spec((1, sk, d_k), lambda bi, qi: (bi, 0, 0)),
            _single_buffered_spec((1, sk, d_v), lambda bi, qi: (bi, 0, 0)),
        ],
        out_specs=pl.BlockSpec((1, tq, d_v), lambda bi, qi: (bi, qi, 0)),
        out_shape=jax.ShapeDtypeStruct((b, sq_pad, d_v), q.dtype),
        scratch_shapes=[pltpu.VMEM((tq, d_v), jnp.float32)],
        compiler_params=pltpu.CompilerParams(
            dimension_semantics=("parallel", "parallel"),   # both axes shardable over v7x's 2 TCs
            vmem_limit_bytes=_VMEM_LIMIT),
        cost_estimate=pl.CostEstimate(
            flops=2 * b * sq_pad * sk * (d_k + d_v),
            transcendentals=b * h * sq_pad * sk,
            bytes_accessed=ib * (b * sq_pad * d_k + b * sk * (d_k + d_v) + b * sq_pad * d_v)),
    )(q, k, v)

    if sq_pad != sq:
        out = out[:, :sq]
    return out


# --------------------------- parameter construction -------------------------

def _uniform_linear(key, din, dout):
    kw, kb = jax.random.split(key)
    bound = 1.0 / math.sqrt(din)
    w = jax.random.uniform(kw, (din, dout), jnp.float32, -bound, bound)
    b = jax.random.uniform(kb, (dout,), jnp.float32, -bound, bound)
    return w, b


def _init_mha(key, h, d_model, d_K, d_V, *, fuse_qkv):
    """MHA params: weights stored bf16 (MXU-native), biases f32.
    Softmax scale 1/sqrt(d_K/h) folded into the Q projection; fused weights concatenated at init."""
    ks = jax.random.split(key, 4)
    wq, bq = _uniform_linear(ks[0], d_model, d_K)
    wk, bk = _uniform_linear(ks[1], d_model, d_K)
    wv, bv = _uniform_linear(ks[2], d_model, d_V)
    wo, bo = _uniform_linear(ks[3], d_V, d_model)
    scale = 1.0 / math.sqrt(d_K // h)
    wq = wq * scale
    bq = bq * scale

    p = {"o_w": wo.astype(jnp.bfloat16), "o_b": bo, "d_K": d_K, "d_V": d_V}
    if fuse_qkv:
        p["qkv_w"] = jnp.concatenate([wq, wk, wv], axis=1).astype(jnp.bfloat16)
        p["qkv_b"] = jnp.concatenate([bq, bk, bv], axis=0)
    else:
        p["q_w"] = wq.astype(jnp.bfloat16)
        p["q_b"] = bq
        p["kv_w"] = jnp.concatenate([wk, wv], axis=1).astype(jnp.bfloat16)
        p["kv_b"] = jnp.concatenate([bk, bv], axis=0)
    return p


def _init_ffn(key, d_model, d_ff):
    k1, k2 = jax.random.split(key)
    w1, b1 = _uniform_linear(k1, d_model, d_ff)
    w2, b2 = _uniform_linear(k2, d_ff, d_model)
    return {"w1": w1.astype(jnp.bfloat16), "b1": b1,
            "w2": w2.astype(jnp.bfloat16), "b2": b2}


def _init_ln(d_model):
    return {"g": jnp.ones((d_model,), jnp.float32),
            "b": jnp.zeros((d_model,), jnp.float32)}


def init_transformer_core(key, n_e, n_d, h, d_model, d_K, d_V, d_ff):
    enc, dec = [], []
    for _ in range(n_e):
        key, k1, k2 = jax.random.split(key, 3)
        enc.append({"attn": _init_mha(k1, h, d_model, d_K, d_V, fuse_qkv=True),
                    "norm1": _init_ln(d_model),
                    "ffn": _init_ffn(k2, d_model, d_ff),
                    "norm2": _init_ln(d_model)})
    for _ in range(n_d):
        key, k1, k2, k3 = jax.random.split(key, 4)
        dec.append({"attn1": _init_mha(k1, h, d_model, d_K, d_V, fuse_qkv=True),
                    "norm1": _init_ln(d_model),
                    "attn2": _init_mha(k2, h, d_model, d_K, d_V, fuse_qkv=False),
                    "norm2": _init_ln(d_model),
                    "ffn": _init_ffn(k3, d_model, d_ff),
                    "norm3": _init_ln(d_model)})
    return {"encoder": enc, "decoder": dec, "h": h}


# ------------------------------- model forward -------------------------------

def self_attention_sublayer(p, ln, h, x, *, causal):
    """LayerNorm(x + O_proj(MHA(x, x, x))) with fused QKV projection and fused O-proj + add + LN."""
    d_K = p["d_K"]
    qkv = linear(x, p["qkv_w"], p["qkv_b"], out_dtype=jnp.bfloat16)
    Q = qkv[..., :d_K]
    K = qkv[..., d_K:2 * d_K]
    V = qkv[..., 2 * d_K:]
    O = attention(Q, K, V, h=h, causal=causal)
    return linear_add_layernorm(O, p["o_w"], p["o_b"], x, ln["g"], ln["b"])


def cross_attention_sublayer(p, ln, h, x, memory):
    """LayerNorm(x + O_proj(MHA(x, memory, memory))), Q separate, K|V fused, O-proj + add + LN fused."""
    d_K = p["d_K"]
    Q = linear(x, p["q_w"], p["q_b"], out_dtype=jnp.bfloat16)
    kv = linear(memory, p["kv_w"], p["kv_b"], out_dtype=jnp.bfloat16)
    K = kv[..., :d_K]
    V = kv[..., d_K:]
    O = attention(Q, K, V, h=h, causal=False)
    return linear_add_layernorm(O, p["o_w"], p["o_b"], x, ln["g"], ln["b"])


def ffn_sublayer(p, ln, x):
    """LayerNorm(x + W2(relu(W1 x))) with the second matmul + add + LN fused."""
    y = linear(x, p["w1"], p["b1"], activation="relu", out_dtype=jnp.bfloat16)
    return linear_add_layernorm(y, p["w2"], p["b2"], x, ln["g"], ln["b"])


def encoder_unit(p, h, seq):
    x1 = self_attention_sublayer(p["attn"], p["norm1"], h, seq, causal=False)
    return ffn_sublayer(p["ffn"], p["norm2"], x1)


def decoder_unit(p, h, memory, seq):
    x1 = self_attention_sublayer(p["attn1"], p["norm1"], h, seq, causal=True)
    x2 = cross_attention_sublayer(p["attn2"], p["norm2"], h, x1, memory)
    return ffn_sublayer(p["ffn"], p["norm3"], x2)


def transformer_core(params, in_seq, out_seq):
    h = params["h"]
    memory = in_seq
    for layer in params["encoder"]:
        memory = encoder_unit(layer, h, memory)
    decoded = out_seq
    for layer in params["decoder"]:
        decoded = decoder_unit(layer, h, memory, decoded)
    return decoded


# ------------------------------------ main -----------------------------------

if __name__ == "__main__":
    # Small shapes consistent with the module's forward contract.
    B, S_in, S_out = 2, 8, 8
    d_model, h, d_K, d_V, d_ff = 32, 4, 32, 32, 64
    n_e, n_d = 2, 2

    key = jax.random.PRNGKey(0)
    k_params, k_in, k_out = jax.random.split(key, 3)

    params = init_transformer_core(k_params, n_e, n_d, h, d_model, d_K, d_V, d_ff)
    in_seq = jax.random.normal(k_in, (B, S_in, d_model), jnp.float32)
    out_seq = jax.random.normal(k_out, (B, S_out, d_model), jnp.float32)

    # jit the whole forward so the small per-sublayer launches are dispatched once.
    fwd = jax.jit(lambda a, b: transformer_core(params, a, b))
    result = fwd(in_seq, out_seq)
    jax.block_until_ready(result)

    assert result.shape == (B, S_out, d_model)
    assert bool(jnp.all(jnp.isfinite(result)))
    print("KERNEL_OK")
</pallas_src>

<mosaic_0001>
module attributes {stable_mosaic.version = 11 : i64} {
  func.func @_attn_kernel(%arg0: i32, %arg1: i32, %arg2: memref<1x8x32xbf16, #tpu.memory_space<vmem>>, %arg3: memref<1x8x32xbf16, #tpu.memory_space<vmem>>, %arg4: memref<1x8x32xbf16, #tpu.memory_space<vmem>>, %arg5: memref<1x8x32xbf16, #tpu.memory_space<vmem>>, %arg6: memref<8x32xf32, #tpu.memory_space<vmem>>) attributes {dimension_semantics = [#tpu.dimension_semantics<parallel>, #tpu.dimension_semantics<parallel>], iteration_bounds = array<i64: 2, 1>, scalar_prefetch = 0 : i64, scratch_operands = 1 : i64, tpu.core_type = #tpu.core_type<tc>, window_params = [{transform_indices = @transform_0, window_bounds = array<i64: 1, 8, 32>}, {pipeline_mode = #tpu.pipeline_mode<synchronous>, transform_indices = @transform_1, window_bounds = array<i64: 1, 8, 32>}, {pipeline_mode = #tpu.pipeline_mode<synchronous>, transform_indices = @transform_2, window_bounds = array<i64: 1, 8, 32>}, {transform_indices = @transform_3, window_bounds = array<i64: 1, 8, 32>}]} {
    %c0 = arith.constant 0 : index
    %c0_0 = arith.constant 0 : index
    %c0_1 = arith.constant 0 : index
    %0 = vector.load %arg2[%c0, %c0_0, %c0_1] : memref<1x8x32xbf16, #tpu.memory_space<vmem>>, vector<1x8x32xbf16>
    %1 = vector.shape_cast %0 : vector<1x8x32xbf16> to vector<8x32xbf16>
    %c0_2 = arith.constant 0 : index
    %c0_3 = arith.constant 0 : index
    %c0_4 = arith.constant 0 : index
    %2 = vector.load %arg3[%c0_2, %c0_3, %c0_4] : memref<1x8x32xbf16, #tpu.memory_space<vmem>>, vector<1x8x32xbf16>
    %3 = vector.shape_cast %2 : vector<1x8x32xbf16> to vector<8x32xbf16>
    %c0_5 = arith.constant 0 : index
    %c0_6 = arith.constant 0 : index
    %c0_7 = arith.constant 0 : index
    %4 = vector.load %arg4[%c0_5, %c0_6, %c0_7] : memref<1x8x32xbf16, #tpu.memory_space<vmem>>, vector<1x8x32xbf16>
    %5 = vector.shape_cast %4 : vector<1x8x32xbf16> to vector<8x32xbf16>
    %6 = vector.extract_strided_slice %1 {offsets = [0, 0], sizes = [8, 8], strides = [1, 1]} : vector<8x32xbf16> to vector<8x8xbf16>
    %7 = vector.extract_strided_slice %3 {offsets = [0, 0], sizes = [8, 8], strides = [1, 1]} : vector<8x32xbf16> to vector<8x8xbf16>
    %8 = vector.extract_strided_slice %5 {offsets = [0, 0], sizes = [8, 8], strides = [1, 1]} : vector<8x32xbf16> to vector<8x8xbf16>
    %cst = arith.constant dense<0.000000e+00> : vector<8x8xf32>
    %9 = tpu.matmul %6, %7, %cst {dimension_numbers = #tpu.dot_dimension_numbers<[1], [1], [0], [0], [0, 0, 1, 0], [], []>} : vector<8x8xbf16>, vector<8x8xbf16>, vector<8x8xf32> -> vector<8x8xf32>
    %cst_8 = arith.constant dense<0xFF800000> : vector<8xf32>
    %10 = vector.multi_reduction <maximumf>, %9, %cst_8 [1] : vector<8x8xf32> to vector<8xf32>
    %11 = vector.shape_cast %10 : vector<8xf32> to vector<8x1xf32>
    %12 = vector.broadcast %11 : vector<8x1xf32> to vector<8x8xf32>
    %13 = arith.subf %9, %12 : vector<8x8xf32>
    %14 = math.exp %13 : vector<8x8xf32>
    %cst_9 = arith.constant dense<0.000000e+00> : vector<8xf32>
    %15 = vector.multi_reduction <add>, %14, %cst_9 [1] : vector<8x8xf32> to vector<8xf32>
    %16 = vector.shape_cast %15 : vector<8xf32> to vector<8x1xf32>
    %17 = arith.truncf %14 : vector<8x8xf32> to vector<8x8xbf16>
    %cst_10 = arith.constant dense<0.000000e+00> : vector<8x8xf32>
    %18 = tpu.matmul %17, %8, %cst_10 {dimension_numbers = #tpu.dot_dimension_numbers<[1], [0], [0], [1], [0, 0, 1, 1], [], []>} : vector<8x8xbf16>, vector<8x8xbf16>, vector<8x8xf32> -> vector<8x8xf32>
    %19 = tpu.reciprocal %16 {approx = true} : vector<8x1xf32> -> vector<8x1xf32>
    %20 = vector.broadcast %19 : vector<8x1xf32> to vector<8x8xf32>
    %21 = arith.mulf %18, %20 : vector<8x8xf32>
    %c0_11 = arith.constant 0 : index
    %c0_12 = arith.constant 0 : index
    %22 = vector.load %arg6[%c0_11, %c0_12] : memref<8x32xf32, #tpu.memory_space<vmem>>, vector<8x8xf32>
    tpu.vector_store %arg6[%c0_11, %c0_12], %21 {strides = array<i32>} : memref<8x32xf32, #tpu.memory_space<vmem>>, vector<8x8xf32>,
    %23 = vector.extract_strided_slice %1 {offsets = [0, 8], sizes = [8, 8], strides = [1, 1]} : vector<8x32xbf16> to vector<8x8xbf16>
    %24 = vector.extract_strided_slice %3 {offsets = [0, 8], sizes = [8, 8], strides = [1, 1]} : vector<8x32xbf16> to vector<8x8xbf16>
    %25 = vector.extract_strided_slice %5 {offsets = [0, 8], sizes = [8, 8], strides = [1, 1]} : vector<8x32xbf16> to vector<8x8xbf16>
    %cst_13 = arith.constant dense<0.000000e+00> : vector<8x8xf32>
    %26 = tpu.matmul %23, %24, %cst_13 {dimension_numbers = #tpu.dot_dimension_numbers<[1], [1], [0], [0], [0, 0, 1, 0], [], []>} : vector<8x8xbf16>, vector<8x8xbf16>, vector<8x8xf32> -> vector<8x8xf32>
    %cst_14 = arith.constant dense<0xFF800000> : vector<8xf32>
    %27 = vector.multi_reduction <maximumf>, %26, %cst_14 [1] : vector<8x8xf32> to vector<8xf32>
    %28 = vector.shape_cast %27 : vector<8xf32> to vector<8x1xf32>
    %29 = vector.broadcast %28 : vector<8x1xf32> to vector<8x8xf32>
    %30 = arith.subf %26, %29 : vector<8x8xf32>
    %31 = math.exp %30 : vector<8x8xf32>
    %cst_15 = arith.constant dense<0.000000e+00> : vector<8xf32>
    %32 = vector.multi_reduction <add>, %31, %cst_15 [1] : vector<8x8xf32> to vector<8xf32>
    %33 = vector.shape_cast %32 : vector<8xf32> to vector<8x1xf32>
    %34 = arith.truncf %31 : vector<8x8xf32> to vector<8x8xbf16>
    %cst_16 = arith.constant dense<0.000000e+00> : vector<8x8xf32>
    %35 = tpu.matmul %34, %25, %cst_16 {dimension_numbers = #tpu.dot_dimension_numbers<[1], [0], [0], [1], [0, 0, 1, 1], [], []>} : vector<8x8xbf16>, vector<8x8xbf16>, vector<8x8xf32> -> vector<8x8xf32>
    %36 = tpu.reciprocal %33 {approx = true} : vector<8x1xf32> -> vector<8x1xf32>
    %37 = vector.broadcast %36 : vector<8x1xf32> to vector<8x8xf32>
    %38 = arith.mulf %35, %37 : vector<8x8xf32>
    %c0_17 = arith.constant 0 : index
    %c8 = arith.constant 8 : index
    %39 = vector.load %arg6[%c0_17, %c8] : memref<8x32xf32, #tpu.memory_space<vmem>>, vector<8x8xf32>
    tpu.vector_store %arg6[%c0_17, %c8], %38 {strides = array<i32>} : memref<8x32xf32, #tpu.memory_space<vmem>>, vector<8x8xf32>,
    %40 = vector.extract_strided_slice %1 {offsets = [0, 16], sizes = [8, 8], strides = [1, 1]} : vector<8x32xbf16> to vector<8x8xbf16>
    %41 = vector.extract_strided_slice %3 {offsets = [0, 16], sizes = [8, 8], strides = [1, 1]} : vector<8x32xbf16> to vector<8x8xbf16>
    %42 = vector.extract_strided_slice %5 {offsets = [0, 16], sizes = [8, 8], strides = [1, 1]} : vector<8x32xbf16> to vector<8x8xbf16>
    %cst_18 = arith.constant dense<0.000000e+00> : vector<8x8xf32>
    %43 = tpu.matmul %40, %41, %cst_18 {dimension_numbers = #tpu.dot_dimension_numbers<[1], [1], [0], [0], [0, 0, 1, 0], [], []>} : vector<8x8xbf16>, vector<8x8xbf16>, vector<8x8xf32> -> vector<8x8xf32>
    %cst_19 = arith.constant dense<0xFF800000> : vector<8xf32>
    %44 = vector.multi_reduction <maximumf>, %43, %cst_19 [1] : vector<8x8xf32> to vector<8xf32>
    %45 = vector.shape_cast %44 : vector<8xf32> to vector<8x1xf32>
    %46 = vector.broadcast %45 : vector<8x1xf32> to vector<8x8xf32>
    %47 = arith.subf %43, %46 : vector<8x8xf32>
    %48 = math.exp %47 : vector<8x8xf32>
    %cst_20 = arith.constant dense<0.000000e+00> : vector<8xf32>
    %49 = vector.multi_reduction <add>, %48, %cst_20 [1] : vector<8x8xf32> to vector<8xf32>
    %50 = vector.shape_cast %49 : vector<8xf32> to vector<8x1xf32>
    %51 = arith.truncf %48 : vector<8x8xf32> to vector<8x8xbf16>
    %cst_21 = arith.constant dense<0.000000e+00> : vector<8x8xf32>
    %52 = tpu.matmul %51, %42, %cst_21 {dimension_numbers = #tpu.dot_dimension_numbers<[1], [0], [0], [1], [0, 0, 1, 1], [], []>} : vector<8x8xbf16>, vector<8x8xbf16>, vector<8x8xf32> -> vector<8x8xf32>
    %53 = tpu.reciprocal %50 {approx = true} : vector<8x1xf32> -> vector<8x1xf32>
    %54 = vector.broadcast %53 : vector<8x1xf32> to vector<8x8xf32>
    %55 = arith.mulf %52, %54 : vector<8x8xf32>
    %c0_22 = arith.constant 0 : index
    %c16 = arith.constant 16 : index
    %56 = vector.load %arg6[%c0_22, %c16] : memref<8x32xf32, #tpu.memory_space<vmem>>, vector<8x8xf32>
    tpu.vector_store %arg6[%c0_22, %c16], %55 {strides = array<i32>} : memref<8x32xf32, #tpu.memory_space<vmem>>, vector<8x8xf32>,
    %57 = vector.extract_strided_slice %1 {offsets = [0, 24], sizes = [8, 8], strides = [1, 1]} : vector<8x32xbf16> to vector<8x8xbf16>
    %58 = vector.extract_strided_slice %3 {offsets = [0, 24], sizes = [8, 8], strides = [1, 1]} : vector<8x32xbf16> to vector<8x8xbf16>
    %59 = vector.extract_strided_slice %5 {offsets = [0, 24], sizes = [8, 8], strides = [1, 1]} : vector<8x32xbf16> to vector<8x8xbf16>
    %cst_23 = arith.constant dense<0.000000e+00> : vector<8x8xf32>
    %60 = tpu.matmul %57, %58, %cst_23 {dimension_numbers = #tpu.dot_dimension_numbers<[1], [1], [0], [0], [0, 0, 1, 0], [], []>} : vector<8x8xbf16>, vector<8x8xbf16>, vector<8x8xf32> -> vector<8x8xf32>
    %cst_24 = arith.constant dense<0xFF800000> : vector<8xf32>
    %61 = vector.multi_reduction <maximumf>, %60, %cst_24 [1] : vector<8x8xf32> to vector<8xf32>
    %62 = vector.shape_cast %61 : vector<8xf32> to vector<8x1xf32>
    %63 = vector.broadcast %62 : vector<8x1xf32> to vector<8x8xf32>
    %64 = arith.subf %60, %63 : vector<8x8xf32>
    %65 = math.exp %64 : vector<8x8xf32>
    %cst_25 = arith.constant dense<0.000000e+00> : vector<8xf32>
    %66 = vector.multi_reduction <add>, %65, %cst_25 [1] : vector<8x8xf32> to vector<8xf32>
    %67 = vector.shape_cast %66 : vector<8xf32> to vector<8x1xf32>
    %68 = arith.truncf %65 : vector<8x8xf32> to vector<8x8xbf16>
    %cst_26 = arith.constant dense<0.000000e+00> : vector<8x8xf32>
    %69 = tpu.matmul %68, %59, %cst_26 {dimension_numbers = #tpu.dot_dimension_numbers<[1], [0], [0], [1], [0, 0, 1, 1], [], []>} : vector<8x8xbf16>, vector<8x8xbf16>, vector<8x8xf32> -> vector<8x8xf32>
    %70 = tpu.reciprocal %67 {approx = true} : vector<8x1xf32> -> vector<8x1xf32>
    %71 = vector.broadcast %70 : vector<8x1xf32> to vector<8x8xf32>
    %72 = arith.mulf %69, %71 : vector<8x8xf32>
    %c0_27 = arith.constant 0 : index
    %c24 = arith.constant 24 : index
    %73 = vector.load %arg6[%c0_27, %c24] : memref<8x32xf32, #tpu.memory_space<vmem>>, vector<8x8xf32>
    tpu.vector_store %arg6[%c0_27, %c24], %72 {strides = array<i32>} : memref<8x32xf32, #tpu.memory_space<vmem>>, vector<8x8xf32>,
    %c0_28 = arith.constant 0 : index
    %c0_29 = arith.constant 0 : index
    %74 = vector.load %arg6[%c0_28, %c0_29] : memref<8x32xf32, #tpu.memory_space<vmem>>, vector<8x32xf32>
    %75 = arith.truncf %74 : vector<8x32xf32> to vector<8x32xbf16>
    %c0_30 = arith.constant 0 : index
    %c0_31 = arith.constant 0 : index
    %c0_32 = arith.constant 0 : index
    %76 = vector.load %arg5[%c0_30, %c0_31, %c0_32] : memref<1x8x32xbf16, #tpu.memory_space<vmem>>, vector<1x8x32xbf16>
    %77 = vector.shape_cast %76 : vector<1x8x32xbf16> to vector<8x32xbf16>
    %78 = vector.shape_cast %75 : vector<8x32xbf16> to vector<1x8x32xbf16>
    tpu.vector_store %arg5[%c0_30, %c0_31, %c0_32], %78 {strides = array<i32>} : memref<1x8x32xbf16, #tpu.memory_space<vmem>>, vector<1x8x32xbf16>,
    return
  }
  func.func @transform_0(%arg0: i32, %arg1: i32) -> (i32, i32, i32) {
    %c0_i32 = arith.constant 0 : i32
    %c0_i32_0 = arith.constant 0 : i32
    return %arg0, %arg1, %c0_i32 : i32, i32, i32
  }
  func.func @transform_1(%arg0: i32, %arg1: i32) -> (i32, i32, i32) {
    %c0_i32 = arith.constant 0 : i32
    %c0_i32_0 = arith.constant 0 : i32
    %c0_i32_1 = arith.constant 0 : i32
    return %arg0, %c0_i32, %c0_i32_0 : i32, i32, i32
  }
  func.func @transform_2(%arg0: i32, %arg1: i32) -> (i32, i32, i32) {
    %c0_i32 = arith.constant 0 : i32
    %c0_i32_0 = arith.constant 0 : i32
    %c0_i32_1 = arith.constant 0 : i32
    return %arg0, %c0_i32, %c0_i32_0 : i32, i32, i32
  }
  func.func @transform_3(%arg0: i32, %arg1: i32) -> (i32, i32, i32) {
    %c0_i32 = arith.constant 0 : i32
    %c0_i32_0 = arith.constant 0 : i32
    return %arg0, %arg1, %c0_i32 : i32, i32, i32
  }
}

module attributes {stable_mosaic.version = 11 : i64} {
  func.func @_linear_kernel(%arg0: i32, %arg1: i32, %arg2: i32, %arg3: memref<16x32xf32, #tpu.memory_space<vmem>>, %arg4: memref<32x96xbf16, #tpu.memory_space<vmem>>, %arg5: memref<1x96xf32, #tpu.memory_space<vmem>>, %arg6: memref<16x96xbf16, #tpu.memory_space<vmem>>, %arg7: memref<16x96xf32, #tpu.memory_space<vmem>>) attributes {dimension_semantics = [#tpu.dimension_semantics<parallel>, #tpu.dimension_semantics<parallel>, #tpu.dimension_semantics<arbitrary>], iteration_bounds = array<i64: 1, 1, 1>, scalar_prefetch = 0 : i64, scratch_operands = 1 : i64, tpu.core_type = #tpu.core_type<tc>, window_params = [{transform_indices = @transform_0, window_bounds = array<i64: 16, 32>}, {transform_indices = @transform_1, window_bounds = array<i64: 32, 96>}, {transform_indices = @transform_2, window_bounds = array<i64: 1, 96>}, {transform_indices = @transform_3, window_bounds = array<i64: 16, 96>}]} {
    %c0_i32 = arith.constant 0 : i32
    %0 = arith.cmpi eq, %arg2, %c0_i32 : i32
    %1 = arith.extui %0 : i1 to i32
    %c0_i32_0 = arith.constant 0 : i32
    %2 = arith.cmpi ne, %1, %c0_i32_0 : i32
    scf.if %2 {
      %cst_10 = arith.constant 0.000000e+00 : f32
      %13 = vector.broadcast %cst_10 : f32 to vector<16x96xf32>
      %c0_11 = arith.constant 0 : index
      %c0_12 = arith.constant 0 : index
      %14 = vector.load %arg7[%c0_11, %c0_12] : memref<16x96xf32, #tpu.memory_space<vmem>>, vector<16x96xf32>
      tpu.vector_store %arg7[%c0_11, %c0_12], %13 {strides = array<i32>} : memref<16x96xf32, #tpu.memory_space<vmem>>, vector<16x96xf32>,
    } else {
    }
    %c0 = arith.constant 0 : index
    %c0_1 = arith.constant 0 : index
    %3 = vector.load %arg7[%c0, %c0_1] : memref<16x96xf32, #tpu.memory_space<vmem>>, vector<16x96xf32>
    %c0_2 = arith.constant 0 : index
    %c0_3 = arith.constant 0 : index
    %4 = vector.load %arg3[%c0_2, %c0_3] : memref<16x32xf32, #tpu.memory_space<vmem>>, vector<16x32xf32>
    %5 = arith.truncf %4 : vector<16x32xf32> to vector<16x32xbf16>
    %c0_4 = arith.constant 0 : index
    %c0_5 = arith.constant 0 : index
    %6 = vector.load %arg4[%c0_4, %c0_5] : memref<32x96xbf16, #tpu.memory_space<vmem>>, vector<32x96xbf16>
    %cst = arith.constant dense<0.000000e+00> : vector<16x96xf32>
    %7 = tpu.matmul %5, %6, %cst {dimension_numbers = #tpu.dot_dimension_numbers<[1], [0], [0], [1], [0, 0, 1, 1], [], []>} : vector<16x32xbf16>, vector<32x96xbf16>, vector<16x96xf32> -> vector<16x96xf32>
    %8 = arith.addf %3, %7 : vector<16x96xf32>
    %c0_6 = arith.constant 0 : index
    %c0_7 = arith.constant 0 : index
    %9 = vector.load %arg7[%c0_6, %c0_7] : memref<16x96xf32, #tpu.memory_space<vmem>>, vector<16x96xf32>
    tpu.vector_store %arg7[%c0_6, %c0_7], %8 {strides = array<i32>} : memref<16x96xf32, #tpu.memory_space<vmem>>, vector<16x96xf32>,
    %c0_i32_8 = arith.constant 0 : i32
    %10 = arith.cmpi eq, %arg2, %c0_i32_8 : i32
    %11 = arith.extui %10 : i1 to i32
    %c0_i32_9 = arith.constant 0 : i32
    %12 = arith.cmpi ne, %11, %c0_i32_9 : i32
    scf.if %12 {
      %c0_10 = arith.constant 0 : index
      %c0_11 = arith.constant 0 : index
      %13 = vector.load %arg7[%c0_10, %c0_11] : memref<16x96xf32, #tpu.memory_space<vmem>>, vector<16x96xf32>
      %c0_12 = arith.constant 0 : index
      %c0_13 = arith.constant 0 : index
      %14 = vector.load %arg5[%c0_12, %c0_13] : memref<1x96xf32, #tpu.memory_space<vmem>>, vector<1x96xf32>
      %15 = vector.broadcast %14 : vector<1x96xf32> to vector<16x96xf32>
      %16 = arith.addf %13, %15 : vector<16x96xf32>
      %17 = arith.truncf %16 : vector<16x96xf32> to vector<16x96xbf16>
      %c0_14 = arith.constant 0 : index
      %c0_15 = arith.constant 0 : index
      %18 = vector.load %arg6[%c0_14, %c0_15] : memref<16x96xbf16, #tpu.memory_space<vmem>>, vector<16x96xbf16>
      tpu.vector_store %arg6[%c0_14, %c0_15], %17 {strides = array<i32>} : memref<16x96xbf16, #tpu.memory_space<vmem>>, vector<16x96xbf16>,
    } else {
    }
    return
  }
  func.func @transform_0(%arg0: i32, %arg1: i32, %arg2: i32) -> (i32, i32) {
    %c0_i32 = arith.constant 0 : i32
    return %arg0, %arg2 : i32, i32
  }
  func.func @transform_1(%arg0: i32, %arg1: i32, %arg2: i32) -> (i32, i32) {
    %c0_i32 = arith.constant 0 : i32
    return %arg2, %arg1 : i32, i32
  }
  func.func @transform_2(%arg0: i32, %arg1: i32, %arg2: i32) -> (i32, i32) {
    %c0_i32 = arith.constant 0 : i32
    %c0_i32_0 = arith.constant 0 : i32
    return %c0_i32, %arg1 : i32, i32
  }
  func.func @transform_3(%arg0: i32, %arg1: i32, %arg2: i32) -> (i32, i32) {
    %c0_i32 = arith.constant 0 : i32
    return %arg0, %arg1 : i32, i32
  }
}

module attributes {stable_mosaic.version = 11 : i64} {
  func.func @_linear_kernel(%arg0: i32, %arg1: i32, %arg2: i32, %arg3: memref<16x32xf32, #tpu.memory_space<vmem>>, %arg4: memref<32x64xbf16, #tpu.memory_space<vmem>>, %arg5: memref<1x64xf32, #tpu.memory_space<vmem>>, %arg6: memref<16x64xbf16, #tpu.memory_space<vmem>>, %arg7: memref<16x64xf32, #tpu.memory_space<vmem>>) attributes {dimension_semantics = [#tpu.dimension_semantics<parallel>, #tpu.dimension_semantics<parallel>, #tpu.dimension_semantics<arbitrary>], iteration_bounds = array<i64: 1, 1, 1>, scalar_prefetch = 0 : i64, scratch_operands = 1 : i64, tpu.core_type = #tpu.core_type<tc>, window_params = [{transform_indices = @transform_0, window_bounds = array<i64: 16, 32>}, {transform_indices = @transform_1, window_bounds = array<i64: 32, 64>}, {transform_indices = @transform_2, window_bounds = array<i64: 1, 64>}, {transform_indices = @transform_3, window_bounds = array<i64: 16, 64>}]} {
    %c0_i32 = arith.constant 0 : i32
    %0 = arith.cmpi eq, %arg2, %c0_i32 : i32
    %1 = arith.extui %0 : i1 to i32
    %c0_i32_0 = arith.constant 0 : i32
    %2 = arith.cmpi ne, %1, %c0_i32_0 : i32
    scf.if %2 {
      %cst_10 = arith.constant 0.000000e+00 : f32
      %13 = vector.broadcast %cst_10 : f32 to vector<16x64xf32>
      %c0_11 = arith.constant 0 : index
      %c0_12 = arith.constant 0 : index
      %14 = vector.load %arg7[%c0_11, %c0_12] : memref<16x64xf32, #tpu.memory_space<vmem>>, vector<16x64xf32>
      tpu.vector_store %arg7[%c0_11, %c0_12], %13 {strides = array<i32>} : memref<16x64xf32, #tpu.memory_space<vmem>>, vector<16x64xf32>,
    } else {
    }
    %c0 = arith.constant 0 : index
    %c0_1 = arith.constant 0 : index
    %3 = vector.load %arg7[%c0, %c0_1] : memref<16x64xf32, #tpu.memory_space<vmem>>, vector<16x64xf32>
    %c0_2 = arith.constant 0 : index
    %c0_3 = arith.constant 0 : index
    %4 = vector.load %arg3[%c0_2, %c0_3] : memref<16x32xf32, #tpu.memory_space<vmem>>, vector<16x32xf32>
    %5 = arith.truncf %4 : vector<16x32xf32> to vector<16x32xbf16>
    %c0_4 = arith.constant 0 : index
    %c0_5 = arith.constant 0 : index
    %6 = vector.load %arg4[%c0_4, %c0_5] : memref<32x64xbf16, #tpu.memory_space<vmem>>, vector<32x64xbf16>
    %cst = arith.constant dense<0.000000e+00> : vector<16x64xf32>
    %7 = tpu.matmul %5, %6, %cst {dimension_numbers = #tpu.dot_dimension_numbers<[1], [0], [0], [1], [0, 0, 1, 1], [], []>} : vector<16x32xbf16>, vector<32x64xbf16>, vector<16x64xf32> -> vector<16x64xf32>
    %8 = arith.addf %3, %7 : vector<16x64xf32>
    %c0_6 = arith.constant 0 : index
    %c0_7 = arith.constant 0 : index
    %9 = vector.load %arg7[%c0_6, %c0_7] : memref<16x64xf32, #tpu.memory_space<vmem>>, vector<16x64xf32>
    tpu.vector_store %arg7[%c0_6, %c0_7], %8 {strides = array<i32>} : memref<16x64xf32, #tpu.memory_space<vmem>>, vector<16x64xf32>,
    %c0_i32_8 = arith.constant 0 : i32
    %10 = arith.cmpi eq, %arg2, %c0_i32_8 : i32
    %11 = arith.extui %10 : i1 to i32
    %c0_i32_9 = arith.constant 0 : i32
    %12 = arith.cmpi ne, %11, %c0_i32_9 : i32
    scf.if %12 {
      %c0_10 = arith.constant 0 : index
      %c0_11 = arith.constant 0 : index
      %13 = vector.load %arg7[%c0_10, %c0_11] : memref<16x64xf32, #tpu.memory_space<vmem>>, vector<16x64xf32>
      %c0_12 = arith.constant 0 : index
      %c0_13 = arith.constant 0 : index
      %14 = vector.load %arg5[%c0_12, %c0_13] : memref<1x64xf32, #tpu.memory_space<vmem>>, vector<1x64xf32>
      %15 = vector.broadcast %14 : vector<1x64xf32> to vector<16x64xf32>
      %16 = arith.addf %13, %15 : vector<16x64xf32>
      %cst_14 = arith.constant 0.000000e+00 : f32
      %17 = vector.broadcast %cst_14 : f32 to vector<16x64xf32>
      %18 = arith.maximumf %16, %17 : vector<16x64xf32>
      %19 = arith.truncf %18 : vector<16x64xf32> to vector<16x64xbf16>
      %c0_15 = arith.constant 0 : index
      %c0_16 = arith.constant 0 : index
      %20 = vector.load %arg6[%c0_15, %c0_16] : memref<16x64xbf16, #tpu.memory_space<vmem>>, vector<16x64xbf16>
      tpu.vector_store %arg6[%c0_15, %c0_16], %19 {strides = array<i32>} : memref<16x64xbf16, #tpu.memory_space<vmem>>, vector<16x64xbf16>,
    } else {
    }
    return
  }
  func.func @transform_0(%arg0: i32, %arg1: i32, %arg2: i32) -> (i32, i32) {
    %c0_i32 = arith.constant 0 : i32
    return %arg0, %arg2 : i32, i32
  }
  func.func @transform_1(%arg0: i32, %arg1: i32, %arg2: i32) -> (i32, i32) {
    %c0_i32 = arith.constant 0 : i32
    return %arg2, %arg1 : i32, i32
  }
  func.func @transform_2(%arg0: i32, %arg1: i32, %arg2: i32) -> (i32, i32) {
    %c0_i32 = arith.constant 0 : i32
    %c0_i32_0 = arith.constant 0 : i32
    return %c0_i32, %arg1 : i32, i32
  }
  func.func @transform_3(%arg0: i32, %arg1: i32, %arg2: i32) -> (i32, i32) {
    %c0_i32 = arith.constant 0 : i32
    return %arg0, %arg1 : i32, i32
  }
}

module attributes {stable_mosaic.version = 11 : i64} {
  func.func @_linear_add_ln_kernel(%arg0: i32, %arg1: i32, %arg2: memref<16x32xbf16, #tpu.memory_space<vmem>>, %arg3: memref<32x32xbf16, #tpu.memory_space<vmem>>, %arg4: memref<1x32xf32, #tpu.memory_space<vmem>>, %arg5: memref<16x32xf32, #tpu.memory_space<vmem>>, %arg6: memref<1x32xf32, #tpu.memory_space<vmem>>, %arg7: memref<1x32xf32, #tpu.memory_space<vmem>>, %arg8: memref<16x32xf32, #tpu.memory_space<vmem>>, %arg9: memref<16x32xf32, #tpu.memory_space<vmem>>) attributes {dimension_semantics = [#tpu.dimension_semantics<parallel>, #tpu.dimension_semantics<arbitrary>], iteration_bounds = array<i64: 1, 1>, scalar_prefetch = 0 : i64, scratch_operands = 1 : i64, tpu.core_type = #tpu.core_type<tc>, window_params = [{transform_indices = @transform_0, window_bounds = array<i64: 16, 32>}, {transform_indices = @transform_1, window_bounds = array<i64: 32, 32>}, {pipeline_mode = #tpu.pipeline_mode<synchronous>, transform_indices = @transform_2, window_bounds = array<i64: 1, 32>}, {transform_indices = @transform_3, window_bounds = array<i64: 16, 32>}, {pipeline_mode = #tpu.pipeline_mode<synchronous>, transform_indices = @transform_4, window_bounds = array<i64: 1, 32>}, {pipeline_mode = #tpu.pipeline_mode<synchronous>, transform_indices = @transform_5, window_bounds = array<i64: 1, 32>}, {transform_indices = @transform_6, window_bounds = array<i64: 16, 32>}]} {
    %c0_i32 = arith.constant 0 : i32
    %0 = arith.cmpi eq, %arg1, %c0_i32 : i32
    %1 = arith.extui %0 : i1 to i32
    %c0_i32_0 = arith.constant 0 : i32
    %2 = arith.cmpi ne, %1, %c0_i32_0 : i32
    scf.if %2 {
      %cst_10 = arith.constant 0.000000e+00 : f32
      %12 = vector.broadcast %cst_10 : f32 to vector<16x32xf32>
      %c0_11 = arith.constant 0 : index
      %c0_12 = arith.constant 0 : index
      %13 = vector.load %arg9[%c0_11, %c0_12] : memref<16x32xf32, #tpu.memory_space<vmem>>, vector<16x32xf32>
      tpu.vector_store %arg9[%c0_11, %c0_12], %12 {strides = array<i32>} : memref<16x32xf32, #tpu.memory_space<vmem>>, vector<16x32xf32>,
    } else {
    }
    %c0 = arith.constant 0 : index
    %c0_1 = arith.constant 0 : index
    %3 = vector.load %arg9[%c0, %c0_1] : memref<16x32xf32, #tpu.memory_space<vmem>>, vector<16x32xf32>
    %c0_2 = arith.constant 0 : index
    %c0_3 = arith.constant 0 : index
    %4 = vector.load %arg2[%c0_2, %c0_3] : memref<16x32xbf16, #tpu.memory_space<vmem>>, vector<16x32xbf16>
    %c0_4 = arith.constant 0 : index
    %c0_5 = arith.constant 0 : index
    %5 = vector.load %arg3[%c0_4, %c0_5] : memref<32x32xbf16, #tpu.memory_space<vmem>>, vector<32x32xbf16>
    %cst = arith.constant dense<0.000000e+00> : vector<16x32xf32>
    %6 = tpu.matmul %4, %5, %cst {dimension_numbers = #tpu.dot_dimension_numbers<[1], [0], [0], [1], [0, 0, 1, 1], [], []>} : vector<16x32xbf16>, vector<32x32xbf16>, vector<16x32xf32> -> vector<16x32xf32>
    %7 = arith.addf %3, %6 : vector<16x32xf32>
    %c0_6 = arith.constant 0 : index
    %c0_7 = arith.constant 0 : index
    %8 = vector.load %arg9[%c0_6, %c0_7] : memref<16x32xf32, #tpu.memory_space<vmem>>, vector<16x32xf32>
    tpu.vector_store %arg9[%c0_6, %c0_7], %7 {strides = array<i32>} : memref<16x32xf32, #tpu.memory_space<vmem>>, vector<16x32xf32>,
    %c0_i32_8 = arith.constant 0 : i32
    %9 = arith.cmpi eq, %arg1, %c0_i32_8 : i32
    %10 = arith.extui %9 : i1 to i32
    %c0_i32_9 = arith.constant 0 : i32
    %11 = arith.cmpi ne, %10, %c0_i32_9 : i32
    scf.if %11 {
      %c0_10 = arith.constant 0 : index
      %c0_11 = arith.constant 0 : index
      %12 = vector.load %arg9[%c0_10, %c0_11] : memref<16x32xf32, #tpu.memory_space<vmem>>, vector<16x32xf32>
      %c0_12 = arith.constant 0 : index
      %c0_13 = arith.constant 0 : index
      %13 = vector.load %arg4[%c0_12, %c0_13] : memref<1x32xf32, #tpu.memory_space<vmem>>, vector<1x32xf32>
      %14 = vector.broadcast %13 : vector<1x32xf32> to vector<16x32xf32>
      %15 = arith.addf %12, %14 : vector<16x32xf32>
      %c0_14 = arith.constant 0 : index
      %c0_15 = arith.constant 0 : index
      %16 = vector.load %arg5[%c0_14, %c0_15] : memref<16x32xf32, #tpu.memory_space<vmem>>, vector<16x32xf32>
      %17 = arith.addf %15, %16 : vector<16x32xf32>
      %cst_16 = arith.constant dense<0.000000e+00> : vector<16xf32>
      %18 = vector.multi_reduction <add>, %17, %cst_16 [1] : vector<16x32xf32> to vector<16xf32>
      %19 = vector.shape_cast %18 : vector<16xf32> to vector<16x1xf32>
      %cst_17 = arith.constant 3.200000e+01 : f32
      %20 = vector.broadcast %cst_17 : f32 to vector<16x1xf32>
      %21 = arith.divf %19, %20 : vector<16x1xf32>
      %22 = vector.broadcast %21 : vector<16x1xf32> to vector<16x32xf32>
      %23 = arith.subf %17, %22 : vector<16x32xf32>
      %24 = arith.mulf %23, %23 : vector<16x32xf32>
      %cst_18 = arith.constant dense<0.000000e+00> : vector<16xf32>
      %25 = vector.multi_reduction <add>, %24, %cst_18 [1] : vector<16x32xf32> to vector<16xf32>
      %26 = vector.shape_cast %25 : vector<16xf32> to vector<16x1xf32>
      %cst_19 = arith.constant 3.200000e+01 : f32
      %27 = vector.broadcast %cst_19 : f32 to vector<16x1xf32>
      %28 = arith.divf %26, %27 : vector<16x1xf32>
      %29 = vector.broadcast %21 : vector<16x1xf32> to vector<16x32xf32>
      %30 = arith.subf %17, %29 : vector<16x32xf32>
      %cst_20 = arith.constant 9.99999974E-6 : f32
      %31 = vector.broadcast %cst_20 : f32 to vector<16x1xf32>
      %32 = arith.addf %28, %31 : vector<16x1xf32>
      %33 = math.rsqrt %32 : vector<16x1xf32>
      %34 = vector.broadcast %33 : vector<16x1xf32> to vector<16x32xf32>
      %35 = arith.mulf %30, %34 : vector<16x32xf32>
      %c0_21 = arith.constant 0 : index
      %c0_22 = arith.constant 0 : index
      %36 = vector.load %arg6[%c0_21, %c0_22] : memref<1x32xf32, #tpu.memory_space<vmem>>, vector<1x32xf32>
      %37 = vector.broadcast %36 : vector<1x32xf32> to vector<16x32xf32>
      %38 = arith.mulf %35, %37 : vector<16x32xf32>
      %c0_23 = arith.constant 0 : index
      %c0_24 = arith.constant 0 : index
      %39 = vector.load %arg7[%c0_23, %c0_24] : memref<1x32xf32, #tpu.memory_space<vmem>>, vector<1x32xf32>
      %40 = vector.broadcast %39 : vector<1x32xf32> to vector<16x32xf32>
      %41 = arith.addf %38, %40 : vector<16x32xf32>
      %c0_25 = arith.constant 0 : index
      %c0_26 = arith.constant 0 : index
      %42 = vector.load %arg8[%c0_25, %c0_26] : memref<16x32xf32, #tpu.memory_space<vmem>>, vector<16x32xf32>
      tpu.vector_store %arg8[%c0_25, %c0_26], %41 {strides = array<i32>} : memref<16x32xf32, #tpu.memory_space<vmem>>, vector<16x32xf32>,
    } else {
    }
    return
  }
  func.func @transform_0(%arg0: i32, %arg1: i32) -> (i32, i32) {
    %c0_i32 = arith.constant 0 : i32
    return %arg0, %arg1 : i32, i32
  }
  func.func @transform_1(%arg0: i32, %arg1: i32) -> (i32, i32) {
    %c0_i32 = arith.constant 0 : i32
    %c0_i32_0 = arith.constant 0 : i32
    return %arg1, %c0_i32 : i32, i32
  }
  func.func @transform_2(%arg0: i32, %arg1: i32) -> (i32, i32) {
    %c0_i32 = arith.constant 0 : i32
    %c0_i32_0 = arith.constant 0 : i32
    %c0_i32_1 = arith.constant 0 : i32
    return %c0_i32, %c0_i32_0 : i32, i32
  }
  func.func @transform_3(%arg0: i32, %arg1: i32) -> (i32, i32) {
    %c0_i32 = arith.constant 0 : i32
    %c0_i32_0 = arith.constant 0 : i32
    return %arg0, %c0_i32 : i32, i32
  }
  func.func @transform_4(%arg0: i32, %arg1: i32) -> (i32, i32) {
    %c0_i32 = arith.constant 0 : i32
    %c0_i32_0 = arith.constant 0 : i32
    %c0_i32_1 = arith.constant 0 : i32
    return %c0_i32, %c0_i32_0 : i32, i32
  }
  func.func @transform_5(%arg0: i32, %arg1: i32) -> (i32, i32) {
    %c0_i32 = arith.constant 0 : i32
    %c0_i32_0 = arith.constant 0 : i32
    %c0_i32_1 = arith.constant 0 : i32
    return %c0_i32, %c0_i32_0 : i32, i32
  }
  func.func @transform_6(%arg0: i32, %arg1: i32) -> (i32, i32) {
    %c0_i32 = arith.constant 0 : i32
    %c0_i32_0 = arith.constant 0 : i32
    return %arg0, %c0_i32 : i32, i32
  }
}

module attributes {stable_mosaic.version = 11 : i64} {
  func.func @_linear_kernel(%arg0: i32, %arg1: i32, %arg2: i32, %arg3: memref<16x32xf32, #tpu.memory_space<vmem>>, %arg4: memref<32x64xbf16, #tpu.memory_space<vmem>>, %arg5: memref<1x64xf32, #tpu.memory_space<vmem>>, %arg6: memref<16x64xbf16, #tpu.memory_space<vmem>>, %arg7: memref<16x64xf32, #tpu.memory_space<vmem>>) attributes {dimension_semantics = [#tpu.dimension_semantics<parallel>, #tpu.dimension_semantics<parallel>, #tpu.dimension_semantics<arbitrary>], iteration_bounds = array<i64: 1, 1, 1>, scalar_prefetch = 0 : i64, scratch_operands = 1 : i64, tpu.core_type = #tpu.core_type<tc>, window_params = [{transform_indices = @transform_0, window_bounds = array<i64: 16, 32>}, {transform_indices = @transform_1, window_bounds = array<i64: 32, 64>}, {transform_indices = @transform_2, window_bounds = array<i64: 1, 64>}, {transform_indices = @transform_3, window_bounds = array<i64: 16, 64>}]} {
    %c0_i32 = arith.constant 0 : i32
    %0 = arith.cmpi eq, %arg2, %c0_i32 : i32
    %1 = arith.extui %0 : i1 to i32
    %c0_i32_0 = arith.constant 0 : i32
    %2 = arith.cmpi ne, %1, %c0_i32_0 : i32
    scf.if %2 {
      %cst_10 = arith.constant 0.000000e+00 : f32
      %13 = vector.broadcast %cst_10 : f32 to vector<16x64xf32>
      %c0_11 = arith.constant 0 : index
      %c0_12 = arith.constant 0 : index
      %14 = vector.load %arg7[%c0_11, %c0_12] : memref<16x64xf32, #tpu.memory_space<vmem>>, vector<16x64xf32>
      tpu.vector_store %arg7[%c0_11, %c0_12], %13 {strides = array<i32>} : memref<16x64xf32, #tpu.memory_space<vmem>>, vector<16x64xf32>,
    } else {
    }
    %c0 = arith.constant 0 : index
    %c0_1 = arith.constant 0 : index
    %3 = vector.load %arg7[%c0, %c0_1] : memref<16x64xf32, #tpu.memory_space<vmem>>, vector<16x64xf32>
    %c0_2 = arith.constant 0 : index
    %c0_3 = arith.constant 0 : index
    %4 = vector.load %arg3[%c0_2, %c0_3] : memref<16x32xf32, #tpu.memory_space<vmem>>, vector<16x32xf32>
    %5 = arith.truncf %4 : vector<16x32xf32> to vector<16x32xbf16>
    %c0_4 = arith.constant 0 : index
    %c0_5 = arith.constant 0 : index
    %6 = vector.load %arg4[%c0_4, %c0_5] : memref<32x64xbf16, #tpu.memory_space<vmem>>, vector<32x64xbf16>
    %cst = arith.constant dense<0.000000e+00> : vector<16x64xf32>
    %7 = tpu.matmul %5, %6, %cst {dimension_numbers = #tpu.dot_dimension_numbers<[1], [0], [0], [1], [0, 0, 1, 1], [], []>} : vector<16x32xbf16>, vector<32x64xbf16>, vector<16x64xf32> -> vector<16x64xf32>
    %8 = arith.addf %3, %7 : vector<16x64xf32>
    %c0_6 = arith.constant 0 : index
    %c0_7 = arith.constant 0 : index
    %9 = vector.load %arg7[%c0_6, %c0_7] : memref<16x64xf32, #tpu.memory_space<vmem>>, vector<16x64xf32>
    tpu.vector_store %arg7[%c0_6, %c0_7], %8 {strides = array<i32>} : memref<16x64xf32, #tpu.memory_space<vmem>>, vector<16x64xf32>,
    %c0_i32_8 = arith.constant 0 : i32
    %10 = arith.cmpi eq, %arg2, %c0_i32_8 : i32
    %11 = arith.extui %10 : i1 to i32
    %c0_i32_9 = arith.constant 0 : i32
    %12 = arith.cmpi ne, %11, %c0_i32_9 : i32
    scf.if %12 {
      %c0_10 = arith.constant 0 : index
      %c0_11 = arith.constant 0 : index
      %13 = vector.load %arg7[%c0_10, %c0_11] : memref<16x64xf32, #tpu.memory_space<vmem>>, vector<16x64xf32>
      %c0_12 = arith.constant 0 : index
      %c0_13 = arith.constant 0 : index
      %14 = vector.load %arg5[%c0_12, %c0_13] : memref<1x64xf32, #tpu.memory_space<vmem>>, vector<1x64xf32>
      %15 = vector.broadcast %14 : vector<1x64xf32> to vector<16x64xf32>
      %16 = arith.addf %13, %15 : vector<16x64xf32>
      %17 = arith.truncf %16 : vector<16x64xf32> to vector<16x64xbf16>
      %c0_14 = arith.constant 0 : index
      %c0_15 = arith.constant 0 : index
      %18 = vector.load %arg6[%c0_14, %c0_15] : memref<16x64xbf16, #tpu.memory_space<vmem>>, vector<16x64xbf16>
      tpu.vector_store %arg6[%c0_14, %c0_15], %17 {strides = array<i32>} : memref<16x64xbf16, #tpu.memory_space<vmem>>, vector<16x64xbf16>,
    } else {
    }
    return
  }
  func.func @transform_0(%arg0: i32, %arg1: i32, %arg2: i32) -> (i32, i32) {
    %c0_i32 = arith.constant 0 : i32
    return %arg0, %arg2 : i32, i32
  }
  func.func @transform_1(%arg0: i32, %arg1: i32, %arg2: i32) -> (i32, i32) {
    %c0_i32 = arith.constant 0 : i32
    return %arg2, %arg1 : i32, i32
  }
  func.func @transform_2(%arg0: i32, %arg1: i32, %arg2: i32) -> (i32, i32) {
    %c0_i32 = arith.constant 0 : i32
    %c0_i32_0 = arith.constant 0 : i32
    return %c0_i32, %arg1 : i32, i32
  }
  func.func @transform_3(%arg0: i32, %arg1: i32, %arg2: i32) -> (i32, i32) {
    %c0_i32 = arith.constant 0 : i32
    return %arg0, %arg1 : i32, i32
  }
}

module attributes {stable_mosaic.version = 11 : i64} {
  func.func @_linear_add_ln_kernel(%arg0: i32, %arg1: i32, %arg2: memref<16x64xbf16, #tpu.memory_space<vmem>>, %arg3: memref<64x32xbf16, #tpu.memory_space<vmem>>, %arg4: memref<1x32xf32, #tpu.memory_space<vmem>>, %arg5: memref<16x32xf32, #tpu.memory_space<vmem>>, %arg6: memref<1x32xf32, #tpu.memory_space<vmem>>, %arg7: memref<1x32xf32, #tpu.memory_space<vmem>>, %arg8: memref<16x32xf32, #tpu.memory_space<vmem>>, %arg9: memref<16x32xf32, #tpu.memory_space<vmem>>) attributes {dimension_semantics = [#tpu.dimension_semantics<parallel>, #tpu.dimension_semantics<arbitrary>], iteration_bounds = array<i64: 1, 1>, scalar_prefetch = 0 : i64, scratch_operands = 1 : i64, tpu.core_type = #tpu.core_type<tc>, window_params = [{transform_indices = @transform_0, window_bounds = array<i64: 16, 64>}, {transform_indices = @transform_1, window_bounds = array<i64: 64, 32>}, {pipeline_mode = #tpu.pipeline_mode<synchronous>, transform_indices = @transform_2, window_bounds = array<i64: 1, 32>}, {transform_indices = @transform_3, window_bounds = array<i64: 16, 32>}, {pipeline_mode = #tpu.pipeline_mode<synchronous>, transform_indices = @transform_4, window_bounds = array<i64: 1, 32>}, {pipeline_mode = #tpu.pipeline_mode<synchronous>, transform_indices = @transform_5, window_bounds = array<i64: 1, 32>}, {transform_indices = @transform_6, window_bounds = array<i64: 16, 32>}]} {
    %c0_i32 = arith.constant 0 : i32
    %0 = arith.cmpi eq, %arg1, %c0_i32 : i32
    %1 = arith.extui %0 : i1 to i32
    %c0_i32_0 = arith.constant 0 : i32
    %2 = arith.cmpi ne, %1, %c0_i32_0 : i32
    scf.if %2 {
      %cst_10 = arith.constant 0.000000e+00 : f32
      %12 = vector.broadcast %cst_10 : f32 to vector<16x32xf32>
      %c0_11 = arith.constant 0 : index
      %c0_12 = arith.constant 0 : index
      %13 = vector.load %arg9[%c0_11, %c0_12] : memref<16x32xf32, #tpu.memory_space<vmem>>, vector<16x32xf32>
      tpu.vector_store %arg9[%c0_11, %c0_12], %12 {strides = array<i32>} : memref<16x32xf32, #tpu.memory_space<vmem>>, vector<16x32xf32>,
    } else {
    }
    %c0 = arith.constant 0 : index
    %c0_1 = arith.constant 0 : index
    %3 = vector.load %arg9[%c0, %c0_1] : memref<16x32xf32, #tpu.memory_space<vmem>>, vector<16x32xf32>
    %c0_2 = arith.constant 0 : index
    %c0_3 = arith.constant 0 : index
    %4 = vector.load %arg2[%c0_2, %c0_3] : memref<16x64xbf16, #tpu.memory_space<vmem>>, vector<16x64xbf16>
    %c0_4 = arith.constant 0 : index
    %c0_5 = arith.constant 0 : index
    %5 = vector.load %arg3[%c0_4, %c0_5] : memref<64x32xbf16, #tpu.memory_space<vmem>>, vector<64x32xbf16>
    %cst = arith.constant dense<0.000000e+00> : vector<16x32xf32>
    %6 = tpu.matmul %4, %5, %cst {dimension_numbers = #tpu.dot_dimension_numbers<[1], [0], [0], [1], [0, 0, 1, 1], [], []>} : vector<16x64xbf16>, vector<64x32xbf16>, vector<16x32xf32> -> vector<16x32xf32>
    %7 = arith.addf %3, %6 : vector<16x32xf32>
    %c0_6 = arith.constant 0 : index
    %c0_7 = arith.constant 0 : index
    %8 = vector.load %arg9[%c0_6, %c0_7] : memref<16x32xf32, #tpu.memory_space<vmem>>, vector<16x32xf32>
    tpu.vector_store %arg9[%c0_6, %c0_7], %7 {strides = array<i32>} : memref<16x32xf32, #tpu.memory_space<vmem>>, vector<16x32xf32>,
    %c0_i32_8 = arith.constant 0 : i32
    %9 = arith.cmpi eq, %arg1, %c0_i32_8 : i32
    %10 = arith.extui %9 : i1 to i32
    %c0_i32_9 = arith.constant 0 : i32
    %11 = arith.cmpi ne, %10, %c0_i32_9 : i32
    scf.if %11 {
      %c0_10 = arith.constant 0 : index
      %c0_11 = arith.constant 0 : index
      %12 = vector.load %arg9[%c0_10, %c0_11] : memref<16x32xf32, #tpu.memory_space<vmem>>, vector<16x32xf32>
      %c0_12 = arith.constant 0 : index
      %c0_13 = arith.constant 0 : index
      %13 = vector.load %arg4[%c0_12, %c0_13] : memref<1x32xf32, #tpu.memory_space<vmem>>, vector<1x32xf32>
      %14 = vector.broadcast %13 : vector<1x32xf32> to vector<16x32xf32>
      %15 = arith.addf %12, %14 : vector<16x32xf32>
      %c0_14 = arith.constant 0 : index
      %c0_15 = arith.constant 0 : index
      %16 = vector.load %arg5[%c0_14, %c0_15] : memref<16x32xf32, #tpu.memory_space<vmem>>, vector<16x32xf32>
      %17 = arith.addf %15, %16 : vector<16x32xf32>
      %cst_16 = arith.constant dense<0.000000e+00> : vector<16xf32>
      %18 = vector.multi_reduction <add>, %17, %cst_16 [1] : vector<16x32xf32> to vector<16xf32>
      %19 = vector.shape_cast %18 : vector<16xf32> to vector<16x1xf32>
      %cst_17 = arith.constant 3.200000e+01 : f32
      %20 = vector.broadcast %cst_17 : f32 to vector<16x1xf32>
      %21 = arith.divf %19, %20 : vector<16x1xf32>
      %22 = vector.broadcast %21 : vector<16x1xf32> to vector<16x32xf32>
      %23 = arith.subf %17, %22 : vector<16x32xf32>
      %24 = arith.mulf %23, %23 : vector<16x32xf32>
      %cst_18 = arith.constant dense<0.000000e+00> : vector<16xf32>
      %25 = vector.multi_reduction <add>, %24, %cst_18 [1] : vector<16x32xf32> to vector<16xf32>
      %26 = vector.shape_cast %25 : vector<16xf32> to vector<16x1xf32>
      %cst_19 = arith.constant 3.200000e+01 : f32
      %27 = vector.broadcast %cst_19 : f32 to vector<16x1xf32>
      %28 = arith.divf %26, %27 : vector<16x1xf32>
      %29 = vector.broadcast %21 : vector<16x1xf32> to vector<16x32xf32>
      %30 = arith.subf %17, %29 : vector<16x32xf32>
      %cst_20 = arith.constant 9.99999974E-6 : f32
      %31 = vector.broadcast %cst_20 : f32 to vector<16x1xf32>
      %32 = arith.addf %28, %31 : vector<16x1xf32>
      %33 = math.rsqrt %32 : vector<16x1xf32>
      %34 = vector.broadcast %33 : vector<16x1xf32> to vector<16x32xf32>
      %35 = arith.mulf %30, %34 : vector<16x32xf32>
      %c0_21 = arith.constant 0 : index
      %c0_22 = arith.constant 0 : index
      %36 = vector.load %arg6[%c0_21, %c0_22] : memref<1x32xf32, #tpu.memory_space<vmem>>, vector<1x32xf32>
      %37 = vector.broadcast %36 : vector<1x32xf32> to vector<16x32xf32>
      %38 = arith.mulf %35, %37 : vector<16x32xf32>
      %c0_23 = arith.constant 0 : index
      %c0_24 = arith.constant 0 : index
      %39 = vector.load %arg7[%c0_23, %c0_24] : memref<1x32xf32, #tpu.memory_space<vmem>>, vector<1x32xf32>
      %40 = vector.broadcast %39 : vector<1x32xf32> to vector<16x32xf32>
      %41 = arith.addf %38, %40 : vector<16x32xf32>
      %c0_25 = arith.constant 0 : index
      %c0_26 = arith.constant 0 : index
      %42 = vector.load %arg8[%c0_25, %c0_26] : memref<16x32xf32, #tpu.memory_space<vmem>>, vector<16x32xf32>
      tpu.vector_store %arg8[%c0_25, %c0_26], %41 {strides = array<i32>} : memref<16x32xf32, #tpu.memory_space<vmem>>, vector<16x32xf32>,
    } else {
    }
    return
  }
  func.func @transform_0(%arg0: i32, %arg1: i32) -> (i32, i32) {
    %c0_i32 = arith.constant 0 : i32
    return %arg0, %arg1 : i32, i32
  }
  func.func @transform_1(%arg0: i32, %arg1: i32) -> (i32, i32) {
    %c0_i32 = arith.constant 0 : i32
    %c0_i32_0 = arith.constant 0 : i32
    return %arg1, %c0_i32 : i32, i32
  }
  func.func @transform_2(%arg0: i32, %arg1: i32) -> (i32, i32) {
    %c0_i32 = arith.constant 0 : i32
    %c0_i32_0 = arith.constant 0 : i32
    %c0_i32_1 = arith.constant 0 : i32
    return %c0_i32, %c0_i32_0 : i32, i32
  }
  func.func @transform_3(%arg0: i32, %arg1: i32) -> (i32, i32) {
    %c0_i32 = arith.constant 0 : i32
    %c0_i32_0 = arith.constant 0 : i32
    return %arg0, %c0_i32 : i32, i32
  }
  func.func @transform_4(%arg0: i32, %arg1: i32) -> (i32, i32) {
    %c0_i32 = arith.constant 0 : i32
    %c0_i32_0 = arith.constant 0 : i32
    %c0_i32_1 = arith.constant 0 : i32
    return %c0_i32, %c0_i32_0 : i32, i32
  }
  func.func @transform_5(%arg0: i32, %arg1: i32) -> (i32, i32) {
    %c0_i32 = arith.constant 0 : i32
    %c0_i32_0 = arith.constant 0 : i32
    %c0_i32_1 = arith.constant 0 : i32
    return %c0_i32, %c0_i32_0 : i32, i32
  }
  func.func @transform_6(%arg0: i32, %arg1: i32) -> (i32, i32) {
    %c0_i32 = arith.constant 0 : i32
    %c0_i32_0 = arith.constant 0 : i32
    return %arg0, %c0_i32 : i32, i32
  }
}

module attributes {stable_mosaic.version = 11 : i64} {
  func.func @_linear_kernel(%arg0: i32, %arg1: i32, %arg2: i32, %arg3: memref<16x32xf32, #tpu.memory_space<vmem>>, %arg4: memref<32x96xbf16, #tpu.memory_space<vmem>>, %arg5: memref<1x96xf32, #tpu.memory_space<vmem>>, %arg6: memref<16x96xbf16, #tpu.memory_space<vmem>>, %arg7: memref<16x96xf32, #tpu.memory_space<vmem>>) attributes {dimension_semantics = [#tpu.dimension_semantics<parallel>, #tpu.dimension_semantics<parallel>, #tpu.dimension_semantics<arbitrary>], iteration_bounds = array<i64: 1, 1, 1>, scalar_prefetch = 0 : i64, scratch_operands = 1 : i64, tpu.core_type = #tpu.core_type<tc>, window_params = [{transform_indices = @transform_0, window_bounds = array<i64: 16, 32>}, {transform_indices = @transform_1, window_bounds = array<i64: 32, 96>}, {transform_indices = @transform_2, window_bounds = array<i64: 1, 96>}, {transform_indices = @transform_3, window_bounds = array<i64: 16, 96>}]} {
    %c0_i32 = arith.constant 0 : i32
    %0 = arith.cmpi eq, %arg2, %c0_i32 : i32
    %1 = arith.extui %0 : i1 to i32
    %c0_i32_0 = arith.constant 0 : i32
    %2 = arith.cmpi ne, %1, %c0_i32_0 : i32
    scf.if %2 {
      %cst_10 = arith.constant 0.000000e+00 : f32
      %13 = vector.broadcast %cst_10 : f32 to vector<16x96xf32>
      %c0_11 = arith.constant 0 : index
      %c0_12 = arith.constant 0 : index
      %14 = vector.load %arg7[%c0_11, %c0_12] : memref<16x96xf32, #tpu.memory_space<vmem>>, vector<16x96xf32>
      tpu.vector_store %arg7[%c0_11, %c0_12], %13 {strides = array<i32>} : memref<16x96xf32, #tpu.memory_space<vmem>>, vector<16x96xf32>,
    } else {
    }
    %c0 = arith.constant 0 : index
    %c0_1 = arith.constant 0 : index
    %3 = vector.load %arg7[%c0, %c0_1] : memref<16x96xf32, #tpu.memory_space<vmem>>, vector<16x96xf32>
    %c0_2 = arith.constant 0 : index
    %c0_3 = arith.constant 0 : index
    %4 = vector.load %arg3[%c0_2, %c0_3] : memref<16x32xf32, #tpu.memory_space<vmem>>, vector<16x32xf32>
    %5 = arith.truncf %4 : vector<16x32xf32> to vector<16x32xbf16>
    %c0_4 = arith.constant 0 : index
    %c0_5 = arith.constant 0 : index
    %6 = vector.load %arg4[%c0_4, %c0_5] : memref<32x96xbf16, #tpu.memory_space<vmem>>, vector<32x96xbf16>
    %cst = arith.constant dense<0.000000e+00> : vector<16x96xf32>
    %7 = tpu.matmul %5, %6, %cst {dimension_numbers = #tpu.dot_dimension_numbers<[1], [0], [0], [1], [0, 0, 1, 1], [], []>} : vector<16x32xbf16>, vector<32x96xbf16>, vector<16x96xf32> -> vector<16x96xf32>
    %8 = arith.addf %3, %7 : vector<16x96xf32>
    %c0_6 = arith.constant 0 : index
    %c0_7 = arith.constant 0 : index
    %9 = vector.load %arg7[%c0_6, %c0_7] : memref<16x96xf32, #tpu.memory_space<vmem>>, vector<16x96xf32>
    tpu.vector_store %arg7[%c0_6, %c0_7], %8 {strides = array<i32>} : memref<16x96xf32, #tpu.memory_space<vmem>>, vector<16x96xf32>,
    %c0_i32_8 = arith.constant 0 : i32
    %10 = arith.cmpi eq, %arg2, %c0_i32_8 : i32
    %11 = arith.extui %10 : i1 to i32
    %c0_i32_9 = arith.constant 0 : i32
    %12 = arith.cmpi ne, %11, %c0_i32_9 : i32
    scf.if %12 {
      %c0_10 = arith.constant 0 : index
      %c0_11 = arith.constant 0 : index
      %13 = vector.load %arg7[%c0_10, %c0_11] : memref<16x96xf32, #tpu.memory_space<vmem>>, vector<16x96xf32>
      %c0_12 = arith.constant 0 : index
      %c0_13 = arith.constant 0 : index
      %14 = vector.load %arg5[%c0_12, %c0_13] : memref<1x96xf32, #tpu.memory_space<vmem>>, vector<1x96xf32>
      %15 = vector.broadcast %14 : vector<1x96xf32> to vector<16x96xf32>
      %16 = arith.addf %13, %15 : vector<16x96xf32>
      %17 = arith.truncf %16 : vector<16x96xf32> to vector<16x96xbf16>
      %c0_14 = arith.constant 0 : index
      %c0_15 = arith.constant 0 : index
      %18 = vector.load %arg6[%c0_14, %c0_15] : memref<16x96xbf16, #tpu.memory_space<vmem>>, vector<16x96xbf16>
      tpu.vector_store %arg6[%c0_14, %c0_15], %17 {strides = array<i32>} : memref<16x96xbf16, #tpu.memory_space<vmem>>, vector<16x96xbf16>,
    } else {
    }
    return
  }
  func.func @transform_0(%arg0: i32, %arg1: i32, %arg2: i32) -> (i32, i32) {
    %c0_i32 = arith.constant 0 : i32
    return %arg0, %arg2 : i32, i32
  }
  func.func @transform_1(%arg0: i32, %arg1: i32, %arg2: i32) -> (i32, i32) {
    %c0_i32 = arith.constant 0 : i32
    return %arg2, %arg1 : i32, i32
  }
  func.func @transform_2(%arg0: i32, %arg1: i32, %arg2: i32) -> (i32, i32) {
    %c0_i32 = arith.constant 0 : i32
    %c0_i32_0 = arith.constant 0 : i32
    return %c0_i32, %arg1 : i32, i32
  }
  func.func @transform_3(%arg0: i32, %arg1: i32, %arg2: i32) -> (i32, i32) {
    %c0_i32 = arith.constant 0 : i32
    return %arg0, %arg1 : i32, i32
  }
}

module attributes {stable_mosaic.version = 11 : i64} {
  func.func @_attn_kernel(%arg0: i32, %arg1: i32, %arg2: memref<1x8x32xbf16, #tpu.memory_space<vmem>>, %arg3: memref<1x8x32xbf16, #tpu.memory_space<vmem>>, %arg4: memref<1x8x32xbf16, #tpu.memory_space<vmem>>, %arg5: memref<1x8x32xbf16, #tpu.memory_space<vmem>>, %arg6: memref<8x32xf32, #tpu.memory_space<vmem>>) attributes {dimension_semantics = [#tpu.dimension_semantics<parallel>, #tpu.dimension_semantics<parallel>], iteration_bounds = array<i64: 2, 1>, scalar_prefetch = 0 : i64, scratch_operands = 1 : i64, tpu.core_type = #tpu.core_type<tc>, window_params = [{transform_indices = @transform_0, window_bounds = array<i64: 1, 8, 32>}, {pipeline_mode = #tpu.pipeline_mode<synchronous>, transform_indices = @transform_1, window_bounds = array<i64: 1, 8, 32>}, {pipeline_mode = #tpu.pipeline_mode<synchronous>, transform_indices = @transform_2, window_bounds = array<i64: 1, 8, 32>}, {transform_indices = @transform_3, window_bounds = array<i64: 1, 8, 32>}]} {
    %c0 = arith.constant 0 : index
    %c0_0 = arith.constant 0 : index
    %c0_1 = arith.constant 0 : index
    %0 = vector.load %arg2[%c0, %c0_0, %c0_1] : memref<1x8x32xbf16, #tpu.memory_space<vmem>>, vector<1x8x32xbf16>
    %1 = vector.shape_cast %0 : vector<1x8x32xbf16> to vector<8x32xbf16>
    %c0_2 = arith.constant 0 : index
    %c0_3 = arith.constant 0 : index
    %c0_4 = arith.constant 0 : index
    %2 = vector.load %arg3[%c0_2, %c0_3, %c0_4] : memref<1x8x32xbf16, #tpu.memory_space<vmem>>, vector<1x8x32xbf16>
    %3 = vector.shape_cast %2 : vector<1x8x32xbf16> to vector<8x32xbf16>
    %c0_5 = arith.constant 0 : index
    %c0_6 = arith.constant 0 : index
    %c0_7 = arith.constant 0 : index
    %4 = vector.load %arg4[%c0_5, %c0_6, %c0_7] : memref<1x8x32xbf16, #tpu.memory_space<vmem>>, vector<1x8x32xbf16>
    %5 = vector.shape_cast %4 : vector<1x8x32xbf16> to vector<8x32xbf16>
    %6 = tpu.iota {dimensions = array<i32: 0>} : vector<8x8xi32>
    %c8_i32 = arith.constant 8 : i32
    %7 = arith.muli %arg1, %c8_i32 : i32
    %8 = vector.broadcast %7 : i32 to vector<8x8xi32>
    %9 = arith.addi %6, %8 : vector<8x8xi32>
    %10 = tpu.iota {dimensions = array<i32: 1>} : vector<8x8xi32>
    %11 = arith.cmpi sge, %9, %10 : vector<8x8xi32>
    %12 = vector.extract_strided_slice %1 {offsets = [0, 0], sizes = [8, 8], strides = [1, 1]} : vector<8x32xbf16> to vector<8x8xbf16>
    %13 = vector.extract_strided_slice %3 {offsets = [0, 0], sizes = [8, 8], strides = [1, 1]} : vector<8x32xbf16> to vector<8x8xbf16>
    %14 = vector.extract_strided_slice %5 {offsets = [0, 0], sizes = [8, 8], strides = [1, 1]} : vector<8x32xbf16> to vector<8x8xbf16>
    %cst = arith.constant dense<0.000000e+00> : vector<8x8xf32>
    %15 = tpu.matmul %12, %13, %cst {dimension_numbers = #tpu.dot_dimension_numbers<[1], [1], [0], [0], [0, 0, 1, 0], [], []>} : vector<8x8xbf16>, vector<8x8xbf16>, vector<8x8xf32> -> vector<8x8xf32>
    %cst_8 = arith.constant -3.40282347E+38 : f32
    %16 = vector.broadcast %cst_8 : f32 to vector<8x8xf32>
    %17 = arith.select %11, %15, %16 : vector<8x8xi1>, vector<8x8xf32>
    %cst_9 = arith.constant dense<0xFF800000> : vector<8xf32>
    %18 = vector.multi_reduction <maximumf>, %17, %cst_9 [1] : vector<8x8xf32> to vector<8xf32>
    %19 = vector.shape_cast %18 : vector<8xf32> to vector<8x1xf32>
    %20 = vector.broadcast %19 : vector<8x1xf32> to vector<8x8xf32>
    %21 = arith.subf %17, %20 : vector<8x8xf32>
    %22 = math.exp %21 : vector<8x8xf32>
    %cst_10 = arith.constant dense<0.000000e+00> : vector<8xf32>
    %23 = vector.multi_reduction <add>, %22, %cst_10 [1] : vector<8x8xf32> to vector<8xf32>
    %24 = vector.shape_cast %23 : vector<8xf32> to vector<8x1xf32>
    %25 = arith.truncf %22 : vector<8x8xf32> to vector<8x8xbf16>
    %cst_11 = arith.constant dense<0.000000e+00> : vector<8x8xf32>
    %26 = tpu.matmul %25, %14, %cst_11 {dimension_numbers = #tpu.dot_dimension_numbers<[1], [0], [0], [1], [0, 0, 1, 1], [], []>} : vector<8x8xbf16>, vector<8x8xbf16>, vector<8x8xf32> -> vector<8x8xf32>
    %27 = tpu.reciprocal %24 {approx = true} : vector<8x1xf32> -> vector<8x1xf32>
    %28 = vector.broadcast %27 : vector<8x1xf32> to vector<8x8xf32>
    %29 = arith.mulf %26, %28 : vector<8x8xf32>
    %c0_12 = arith.constant 0 : index
    %c0_13 = arith.constant 0 : index
    %30 = vector.load %arg6[%c0_12, %c0_13] : memref<8x32xf32, #tpu.memory_space<vmem>>, vector<8x8xf32>
    tpu.vector_store %arg6[%c0_12, %c0_13], %29 {strides = array<i32>} : memref<8x32xf32, #tpu.memory_space<vmem>>, vector<8x8xf32>,
    %31 = vector.extract_strided_slice %1 {offsets = [0, 8], sizes = [8, 8], strides = [1, 1]} : vector<8x32xbf16> to vector<8x8xbf16>
    %32 = vector.extract_strided_slice %3 {offsets = [0, 8], sizes = [8, 8], strides = [1, 1]} : vector<8x32xbf16> to vector<8x8xbf16>
    %33 = vector.extract_strided_slice %5 {offsets = [0, 8], sizes = [8, 8], strides = [1, 1]} : vector<8x32xbf16> to vector<8x8xbf16>
    %cst_14 = arith.constant dense<0.000000e+00> : vector<8x8xf32>
    %34 = tpu.matmul %31, %32, %cst_14 {dimension_numbers = #tpu.dot_dimension_numbers<[1], [1], [0], [0], [0, 0, 1, 0], [], []>} : vector<8x8xbf16>, vector<8x8xbf16>, vector<8x8xf32> -> vector<8x8xf32>
    %cst_15 = arith.constant -3.40282347E+38 : f32
    %35 = vector.broadcast %cst_15 : f32 to vector<8x8xf32>
    %36 = arith.select %11, %34, %35 : vector<8x8xi1>, vector<8x8xf32>
    %cst_16 = arith.constant dense<0xFF800000> : vector<8xf32>
    %37 = vector.multi_reduction <maximumf>, %36, %cst_16 [1] : vector<8x8xf32> to vector<8xf32>
    %38 = vector.shape_cast %37 : vector<8xf32> to vector<8x1xf32>
    %39 = vector.broadcast %38 : vector<8x1xf32> to vector<8x8xf32>
    %40 = arith.subf %36, %39 : vector<8x8xf32>
    %41 = math.exp %40 : vector<8x8xf32>
    %cst_17 = arith.constant dense<0.000000e+00> : vector<8xf32>
    %42 = vector.multi_reduction <add>, %41, %cst_17 [1] : vector<8x8xf32> to vector<8xf32>
    %43 = vector.shape_cast %42 : vector<8xf32> to vector<8x1xf32>
    %44 = arith.truncf %41 : vector<8x8xf32> to vector<8x8xbf16>
    %cst_18 = arith.constant dense<0.000000e+00> : vector<8x8xf32>
    %45 = tpu.matmul %44, %33, %cst_18 {dimension_numbers = #tpu.dot_dimension_numbers<[1], [0], [0], [1], [0, 0, 1, 1], [], []>} : vector<8x8xbf16>, vector<8x8xbf16>, vector<8x8xf32> -> vector<8x8xf32>
    %46 = tpu.reciprocal %43 {approx = true} : vector<8x1xf32> -> vector<8x1xf32>
    %47 = vector.broadcast %46 : vector<8x1xf32> to vector<8x8xf32>
    %48 = arith.mulf %45, %47 : vector<8x8xf32>
    %c0_19 = arith.constant 0 : index
    %c8 = arith.constant 8 : index
    %49 = vector.load %arg6[%c0_19, %c8] : memref<8x32xf32, #tpu.memory_space<vmem>>, vector<8x8xf32>
    tpu.vector_store %arg6[%c0_19, %c8], %48 {strides = array<i32>} : memref<8x32xf32, #tpu.memory_space<vmem>>, vector<8x8xf32>,
    %50 = vector.extract_strided_slice %1 {offsets = [0, 16], sizes = [8, 8], strides = [1, 1]} : vector<8x32xbf16> to vector<8x8xbf16>
    %51 = vector.extract_strided_slice %3 {offsets = [0, 16], sizes = [8, 8], strides = [1, 1]} : vector<8x32xbf16> to vector<8x8xbf16>
    %52 = vector.extract_strided_slice %5 {offsets = [0, 16], sizes = [8, 8], strides = [1, 1]} : vector<8x32xbf16> to vector<8x8xbf16>
    %cst_20 = arith.constant dense<0.000000e+00> : vector<8x8xf32>
    %53 = tpu.matmul %50, %51, %cst_20 {dimension_numbers = #tpu.dot_dimension_numbers<[1], [1], [0], [0], [0, 0, 1, 0], [], []>} : vector<8x8xbf16>, vector<8x8xbf16>, vector<8x8xf32> -> vector<8x8xf32>
    %cst_21 = arith.constant -3.40282347E+38 : f32
    %54 = vector.broadcast %cst_21 : f32 to vector<8x8xf32>
    %55 = arith.select %11, %53, %54 : vector<8x8xi1>, vector<8x8xf32>
    %cst_22 = arith.constant dense<0xFF800000> : vector<8xf32>
    %56 = vector.multi_reduction <maximumf>, %55, %cst_22 [1] : vector<8x8xf32> to vector<8xf32>
    %57 = vector.shape_cast %56 : vector<8xf32> to vector<8x1xf32>
    %58 = vector.broadcast %57 : vector<8x1xf32> to vector<8x8xf32>
    %59 = arith.subf %55, %58 : vector<8x8xf32>
    %60 = math.exp %59 : vector<8x8xf32>
    %cst_23 = arith.constant dense<0.000000e+00> : vector<8xf32>
    %61 = vector.multi_reduction <add>, %60, %cst_23 [1] : vector<8x8xf32> to vector<8xf32>
    %62 = vector.shape_cast %61 : vector<8xf32> to vector<8x1xf32>
    %63 = arith.truncf %60 : vector<8x8xf32> to vector<8x8xbf16>
    %cst_24 = arith.constant dense<0.000000e+00> : vector<8x8xf32>
    %64 = tpu.matmul %63, %52, %cst_24 {dimension_numbers = #tpu.dot_dimension_numbers<[1], [0], [0], [1], [0, 0, 1, 1], [], []>} : vector<8x8xbf16>, vector<8x8xbf16>, vector<8x8xf32> -> vector<8x8xf32>
    %65 = tpu.reciprocal %62 {approx = true} : vector<8x1xf32> -> vector<8x1xf32>
    %66 = vector.broadcast %65 : vector<8x1xf32> to vector<8x8xf32>
    %67 = arith.mulf %64, %66 : vector<8x8xf32>
    %c0_25 = arith.constant 0 : index
    %c16 = arith.constant 16 : index
    %68 = vector.load %arg6[%c0_25, %c16] : memref<8x32xf32, #tpu.memory_space<vmem>>, vector<8x8xf32>
    tpu.vector_store %arg6[%c0_25, %c16], %67 {strides = array<i32>} : memref<8x32xf32, #tpu.memory_space<vmem>>, vector<8x8xf32>,
    %69 = vector.extract_strided_slice %1 {offsets = [0, 24], sizes = [8, 8], strides = [1, 1]} : vector<8x32xbf16> to vector<8x8xbf16>
    %70 = vector.extract_strided_slice %3 {offsets = [0, 24], sizes = [8, 8], strides = [1, 1]} : vector<8x32xbf16> to vector<8x8xbf16>
    %71 = vector.extract_strided_slice %5 {offsets = [0, 24], sizes = [8, 8], strides = [1, 1]} : vector<8x32xbf16> to vector<8x8xbf16>
    %cst_26 = arith.constant dense<0.000000e+00> : vector<8x8xf32>
    %72 = tpu.matmul %69, %70, %cst_26 {dimension_numbers = #tpu.dot_dimension_numbers<[1], [1], [0], [0], [0, 0, 1, 0], [], []>} : vector<8x8xbf16>, vector<8x8xbf16>, vector<8x8xf32> -> vector<8x8xf32>
    %cst_27 = arith.constant -3.40282347E+38 : f32
    %73 = vector.broadcast %cst_27 : f32 to vector<8x8xf32>
    %74 = arith.select %11, %72, %73 : vector<8x8xi1>, vector<8x8xf32>
    %cst_28 = arith.constant dense<0xFF800000> : vector<8xf32>
    %75 = vector.multi_reduction <maximumf>, %74, %cst_28 [1] : vector<8x8xf32> to vector<8xf32>
    %76 = vector.shape_cast %75 : vector<8xf32> to vector<8x1xf32>
    %77 = vector.broadcast %76 : vector<8x1xf32> to vector<8x8xf32>
    %78 = arith.subf %74, %77 : vector<8x8xf32>
    %79 = math.exp %78 : vector<8x8xf32>
    %cst_29 = arith.constant dense<0.000000e+00> : vector<8xf32>
    %80 = vector.multi_reduction <add>, %79, %cst_29 [1] : vector<8x8xf32> to vector<8xf32>
    %81 = vector.shape_cast %80 : vector<8xf32> to vector<8x1xf32>
    %82 = arith.truncf %79 : vector<8x8xf32> to vector<8x8xbf16>
    %cst_30 = arith.constant dense<0.000000e+00> : vector<8x8xf32>
    %83 = tpu.matmul %82, %71, %cst_30 {dimension_numbers = #tpu.dot_dimension_numbers<[1], [0], [0], [1], [0, 0, 1, 1], [], []>} : vector<8x8xbf16>, vector<8x8xbf16>, vector<8x8xf32> -> vector<8x8xf32>
    %84 = tpu.reciprocal %81 {approx = true} : vector<8x1xf32> -> vector<8x1xf32>
    %85 = vector.broadcast %84 : vector<8x1xf32> to vector<8x8xf32>
    %86 = arith.mulf %83, %85 : vector<8x8xf32>
    %c0_31 = arith.constant 0 : index
    %c24 = arith.constant 24 : index
    %87 = vector.load %arg6[%c0_31, %c24] : memref<8x32xf32, #tpu.memory_space<vmem>>, vector<8x8xf32>
    tpu.vector_store %arg6[%c0_31, %c24], %86 {strides = array<i32>} : memref<8x32xf32, #tpu.memory_space<vmem>>, vector<8x8xf32>,
    %c0_32 = arith.constant 0 : index
    %c0_33 = arith.constant 0 : index
    %88 = vector.load %arg6[%c0_32, %c0_33] : memref<8x32xf32, #tpu.memory_space<vmem>>, vector<8x32xf32>
    %89 = arith.truncf %88 : vector<8x32xf32> to vector<8x32xbf16>
    %c0_34 = arith.constant 0 : index
    %c0_35 = arith.constant 0 : index
    %c0_36 = arith.constant 0 : index
    %90 = vector.load %arg5[%c0_34, %c0_35, %c0_36] : memref<1x8x32xbf16, #tpu.memory_space<vmem>>, vector<1x8x32xbf16>
    %91 = vector.shape_cast %90 : vector<1x8x32xbf16> to vector<8x32xbf16>
    %92 = vector.shape_cast %89 : vector<8x32xbf16> to vector<1x8x32xbf16>
    tpu.vector_store %arg5[%c0_34, %c0_35, %c0_36], %92 {strides = array<i32>} : memref<1x8x32xbf16, #tpu.memory_space<vmem>>, vector<1x8x32xbf16>,
    return
  }
  func.func @transform_0(%arg0: i32, %arg1: i32) -> (i32, i32, i32) {
    %c0_i32 = arith.constant 0 : i32
    %c0_i32_0 = arith.constant 0 : i32
    return %arg0, %arg1, %c0_i32 : i32, i32, i32
  }
  func.func @transform_1(%arg0: i32, %arg1: i32) -> (i32, i32, i32) {
    %c0_i32 = arith.constant 0 : i32
    %c0_i32_0 = arith.constant 0 : i32
    %c0_i32_1 = arith.constant 0 : i32
    return %arg0, %c0_i32, %c0_i32_0 : i32, i32, i32
  }
  func.func @transform_2(%arg0: i32, %arg1: i32) -> (i32, i32, i32) {
    %c0_i32 = arith.constant 0 : i32
    %c0_i32_0 = arith.constant 0 : i32
    %c0_i32_1 = arith.constant 0 : i32
    return %arg0, %c0_i32, %c0_i32_0 : i32, i32, i32
  }
  func.func @transform_3(%arg0: i32, %arg1: i32) -> (i32, i32, i32) {
    %c0_i32 = arith.constant 0 : i32
    %c0_i32_0 = arith.constant 0 : i32
    return %arg0, %arg1, %c0_i32 : i32, i32, i32
  }
}

module attributes {stable_mosaic.version = 11 : i64} {
  func.func @_linear_kernel(%arg0: i32, %arg1: i32, %arg2: i32, %arg3: memref<16x32xf32, #tpu.memory_space<vmem>>, %arg4: memref<32x32xbf16, #tpu.memory_space<vmem>>, %arg5: memref<1x32xf32, #tpu.memory_space<vmem>>, %arg6: memref<16x32xbf16, #tpu.memory_space<vmem>>, %arg7: memref<16x32xf32, #tpu.memory_space<vmem>>) attributes {dimension_semantics = [#tpu.dimension_semantics<parallel>, #tpu.dimension_semantics<parallel>, #tpu.dimension_semantics<arbitrary>], iteration_bounds = array<i64: 1, 1, 1>, scalar_prefetch = 0 : i64, scratch_operands = 1 : i64, tpu.core_type = #tpu.core_type<tc>, window_params = [{transform_indices = @transform_0, window_bounds = array<i64: 16, 32>}, {transform_indices = @transform_1, window_bounds = array<i64: 32, 32>}, {transform_indices = @transform_2, window_bounds = array<i64: 1, 32>}, {transform_indices = @transform_3, window_bounds = array<i64: 16, 32>}]} {
    %c0_i32 = arith.constant 0 : i32
    %0 = arith.cmpi eq, %arg2, %c0_i32 : i32
    %1 = arith.extui %0 : i1 to i32
    %c0_i32_0 = arith.constant 0 : i32
    %2 = arith.cmpi ne, %1, %c0_i32_0 : i32
    scf.if %2 {
      %cst_10 = arith.constant 0.000000e+00 : f32
      %13 = vector.broadcast %cst_10 : f32 to vector<16x32xf32>
      %c0_11 = arith.constant 0 : index
      %c0_12 = arith.constant 0 : index
      %14 = vector.load %arg7[%c0_11, %c0_12] : memref<16x32xf32, #tpu.memory_space<vmem>>, vector<16x32xf32>
      tpu.vector_store %arg7[%c0_11, %c0_12], %13 {strides = array<i32>} : memref<16x32xf32, #tpu.memory_space<vmem>>, vector<16x32xf32>,
    } else {
    }
    %c0 = arith.constant 0 : index
    %c0_1 = arith.constant 0 : index
    %3 = vector.load %arg7[%c0, %c0_1] : memref<16x32xf32, #tpu.memory_space<vmem>>, vector<16x32xf32>
    %c0_2 = arith.constant 0 : index
    %c0_3 = arith.constant 0 : index
    %4 = vector.load %arg3[%c0_2, %c0_3] : memref<16x32xf32, #tpu.memory_space<vmem>>, vector<16x32xf32>
    %5 = arith.truncf %4 : vector<16x32xf32> to vector<16x32xbf16>
    %c0_4 = arith.constant 0 : index
    %c0_5 = arith.constant 0 : index
    %6 = vector.load %arg4[%c0_4, %c0_5] : memref<32x32xbf16, #tpu.memory_space<vmem>>, vector<32x32xbf16>
    %cst = arith.constant dense<0.000000e+00> : vector<16x32xf32>
    %7 = tpu.matmul %5, %6, %cst {dimension_numbers = #tpu.dot_dimension_numbers<[1], [0], [0], [1], [0, 0, 1, 1], [], []>} : vector<16x32xbf16>, vector<32x32xbf16>, vector<16x32xf32> -> vector<16x32xf32>
    %8 = arith.addf %3, %7 : vector<16x32xf32>
    %c0_6 = arith.constant 0 : index
    %c0_7 = arith.constant 0 : index
    %9 = vector.load %arg7[%c0_6, %c0_7] : memref<16x32xf32, #tpu.memory_space<vmem>>, vector<16x32xf32>
    tpu.vector_store %arg7[%c0_6, %c0_7], %8 {strides = array<i32>} : memref<16x32xf32, #tpu.memory_space<vmem>>, vector<16x32xf32>,
    %c0_i32_8 = arith.constant 0 : i32
    %10 = arith.cmpi eq, %arg2, %c0_i32_8 : i32
    %11 = arith.extui %10 : i1 to i32
    %c0_i32_9 = arith.constant 0 : i32
    %12 = arith.cmpi ne, %11, %c0_i32_9 : i32
    scf.if %12 {
      %c0_10 = arith.constant 0 : index
      %c0_11 = arith.constant 0 : index
      %13 = vector.load %arg7[%c0_10, %c0_11] : memref<16x32xf32, #tpu.memory_space<vmem>>, vector<16x32xf32>
      %c0_12 = arith.constant 0 : index
      %c0_13 = arith.constant 0 : index
      %14 = vector.load %arg5[%c0_12, %c0_13] : memref<1x32xf32, #tpu.memory_space<vmem>>, vector<1x32xf32>
      %15 = vector.broadcast %14 : vector<1x32xf32> to vector<16x32xf32>
      %16 = arith.addf %13, %15 : vector<16x32xf32>
      %17 = arith.truncf %16 : vector<16x32xf32> to vector<16x32xbf16>
      %c0_14 = arith.constant 0 : index
      %c0_15 = arith.constant 0 : index
      %18 = vector.load %arg6[%c0_14, %c0_15] : memref<16x32xbf16, #tpu.memory_space<vmem>>, vector<16x32xbf16>
      tpu.vector_store %arg6[%c0_14, %c0_15], %17 {strides = array<i32>} : memref<16x32xbf16, #tpu.memory_space<vmem>>, vector<16x32xbf16>,
    } else {
    }
    return
  }
  func.func @transform_0(%arg0: i32, %arg1: i32, %arg2: i32) -> (i32, i32) {
    %c0_i32 = arith.constant 0 : i32
    return %arg0, %arg2 : i32, i32
  }
  func.func @transform_1(%arg0: i32, %arg1: i32, %arg2: i32) -> (i32, i32) {
    %c0_i32 = arith.constant 0 : i32
    return %arg2, %arg1 : i32, i32
  }
  func.func @transform_2(%arg0: i32, %arg1: i32, %arg2: i32) -> (i32, i32) {
    %c0_i32 = arith.constant 0 : i32
    %c0_i32_0 = arith.constant 0 : i32
    return %c0_i32, %arg1 : i32, i32
  }
  func.func @transform_3(%arg0: i32, %arg1: i32, %arg2: i32) -> (i32, i32) {
    %c0_i32 = arith.constant 0 : i32
    return %arg0, %arg1 : i32, i32
  }
}

module attributes {stable_mosaic.version = 11 : i64} {
  func.func @_linear_add_ln_kernel(%arg0: i32, %arg1: i32, %arg2: memref<16x64xbf16, #tpu.memory_space<vmem>>, %arg3: memref<64x32xbf16, #tpu.memory_space<vmem>>, %arg4: memref<1x32xf32, #tpu.memory_space<vmem>>, %arg5: memref<16x32xf32, #tpu.memory_space<vmem>>, %arg6: memref<1x32xf32, #tpu.memory_space<vmem>>, %arg7: memref<1x32xf32, #tpu.memory_space<vmem>>, %arg8: memref<16x32xf32, #tpu.memory_space<vmem>>, %arg9: memref<16x32xf32, #tpu.memory_space<vmem>>) attributes {dimension_semantics = [#tpu.dimension_semantics<parallel>, #tpu.dimension_semantics<arbitrary>], iteration_bounds = array<i64: 1, 1>, scalar_prefetch = 0 : i64, scratch_operands = 1 : i64, tpu.core_type = #tpu.core_type<tc>, window_params = [{transform_indices = @transform_0, window_bounds = array<i64: 16, 64>}, {transform_indices = @transform_1, window_bounds = array<i64: 64, 32>}, {pipeline_mode = #tpu.pipeline_mode<synchronous>, transform_indices = @transform_2, window_bounds = array<i64: 1, 32>}, {transform_indices = @transform_3, window_bounds = array<i64: 16, 32>}, {pipeline_mode = #tpu.pipeline_mode<synchronous>, transform_indices = @transform_4, window_bounds = array<i64: 1, 32>}, {pipeline_mode = #tpu.pipeline_mode<synchronous>, transform_indices = @transform_5, window_bounds = array<i64: 1, 32>}, {transform_indices = @transform_6, window_bounds = array<i64: 16, 32>}]} {
    %c0_i32 = arith.constant 0 : i32
    %0 = arith.cmpi eq, %arg1, %c0_i32 : i32
    %1 = arith.extui %0 : i1 to i32
    %c0_i32_0 = arith.constant 0 : i32
    %2 = arith.cmpi ne, %1, %c0_i32_0 : i32
    scf.if %2 {
      %cst_10 = arith.constant 0.000000e+00 : f32
      %12 = vector.broadcast %cst_10 : f32 to vector<16x32xf32>
      %c0_11 = arith.constant 0 : index
      %c0_12 = arith.constant 0 : index
      %13 = vector.load %arg9[%c0_11, %c0_12] : memref<16x32xf32, #tpu.memory_space<vmem>>, vector<16x32xf32>
      tpu.vector_store %arg9[%c0_11, %c0_12], %12 {strides = array<i32>} : memref<16x32xf32, #tpu.memory_space<vmem>>, vector<16x32xf32>,
    } else {
    }
    %c0 = arith.constant 0 : index
    %c0_1 = arith.constant 0 : index
    %3 = vector.load %arg9[%c0, %c0_1] : memref<16x32xf32, #tpu.memory_space<vmem>>, vector<16x32xf32>
    %c0_2 = arith.constant 0 : index
    %c0_3 = arith.constant 0 : index
    %4 = vector.load %arg2[%c0_2, %c0_3] : memref<16x64xbf16, #tpu.memory_space<vmem>>, vector<16x64xbf16>
    %c0_4 = arith.constant 0 : index
    %c0_5 = arith.constant 0 : index
    %5 = vector.load %arg3[%c0_4, %c0_5] : memref<64x32xbf16, #tpu.memory_space<vmem>>, vector<64x32xbf16>
    %cst = arith.constant dense<0.000000e+00> : vector<16x32xf32>
    %6 = tpu.matmul %4, %5, %cst {dimension_numbers = #tpu.dot_dimension_numbers<[1], [0], [0], [1], [0, 0, 1, 1], [], []>} : vector<16x64xbf16>, vector<64x32xbf16>, vector<16x32xf32> -> vector<16x32xf32>
    %7 = arith.addf %3, %6 : vector<16x32xf32>
    %c0_6 = arith.constant 0 : index
    %c0_7 = arith.constant 0 : index
    %8 = vector.load %arg9[%c0_6, %c0_7] : memref<16x32xf32, #tpu.memory_space<vmem>>, vector<16x32xf32>
    tpu.vector_store %arg9[%c0_6, %c0_7], %7 {strides = array<i32>} : memref<16x32xf32, #tpu.memory_space<vmem>>, vector<16x32xf32>,
    %c0_i32_8 = arith.constant 0 : i32
    %9 = arith.cmpi eq, %arg1, %c0_i32_8 : i32
    %10 = arith.extui %9 : i1 to i32
    %c0_i32_9 = arith.constant 0 : i32
    %11 = arith.cmpi ne, %10, %c0_i32_9 : i32
    scf.if %11 {
      %c0_10 = arith.constant 0 : index
      %c0_11 = arith.constant 0 : index
      %12 = vector.load %arg9[%c0_10, %c0_11] : memref<16x32xf32, #tpu.memory_space<vmem>>, vector<16x32xf32>
      %c0_12 = arith.constant 0 : index
      %c0_13 = arith.constant 0 : index
      %13 = vector.load %arg4[%c0_12, %c0_13] : memref<1x32xf32, #tpu.memory_space<vmem>>, vector<1x32xf32>
      %14 = vector.broadcast %13 : vector<1x32xf32> to vector<16x32xf32>
      %15 = arith.addf %12, %14 : vector<16x32xf32>
      %c0_14 = arith.constant 0 : index
      %c0_15 = arith.constant 0 : index
      %16 = vector.load %arg5[%c0_14, %c0_15] : memref<16x32xf32, #tpu.memory_space<vmem>>, vector<16x32xf32>
      %17 = arith.addf %15, %16 : vector<16x32xf32>
      %cst_16 = arith.constant dense<0.000000e+00> : vector<16xf32>
      %18 = vector.multi_reduction <add>, %17, %cst_16 [1] : vector<16x32xf32> to vector<16xf32>
      %19 = vector.shape_cast %18 : vector<16xf32> to vector<16x1xf32>
      %cst_17 = arith.constant 3.200000e+01 : f32
      %20 = vector.broadcast %cst_17 : f32 to vector<16x1xf32>
      %21 = arith.divf %19, %20 : vector<16x1xf32>
      %22 = vector.broadcast %21 : vector<16x1xf32> to vector<16x32xf32>
      %23 = arith.subf %17, %22 : vector<16x32xf32>
      %24 = arith.mulf %23, %23 : vector<16x32xf32>
      %cst_18 = arith.constant dense<0.000000e+00> : vector<16xf32>
      %25 = vector.multi_reduction <add>, %24, %cst_18 [1] : vector<16x32xf32> to vector<16xf32>
      %26 = vector.shape_cast %25 : vector<16xf32> to vector<16x1xf32>
      %cst_19 = arith.constant 3.200000e+01 : f32
      %27 = vector.broadcast %cst_19 : f32 to vector<16x1xf32>
      %28 = arith.divf %26, %27 : vector<16x1xf32>
      %29 = vector.broadcast %21 : vector<16x1xf32> to vector<16x32xf32>
      %30 = arith.subf %17, %29 : vector<16x32xf32>
      %cst_20 = arith.constant 9.99999974E-6 : f32
      %31 = vector.broadcast %cst_20 : f32 to vector<16x1xf32>
      %32 = arith.addf %28, %31 : vector<16x1xf32>
      %33 = math.rsqrt %32 : vector<16x1xf32>
      %34 = vector.broadcast %33 : vector<16x1xf32> to vector<16x32xf32>
      %35 = arith.mulf %30, %34 : vector<16x32xf32>
      %c0_21 = arith.constant 0 : index
      %c0_22 = arith.constant 0 : index
      %36 = vector.load %arg6[%c0_21, %c0_22] : memref<1x32xf32, #tpu.memory_space<vmem>>, vector<1x32xf32>
      %37 = vector.broadcast %36 : vector<1x32xf32> to vector<16x32xf32>
      %38 = arith.mulf %35, %37 : vector<16x32xf32>
      %c0_23 = arith.constant 0 : index
      %c0_24 = arith.constant 0 : index
      %39 = vector.load %arg7[%c0_23, %c0_24] : memref<1x32xf32, #tpu.memory_space<vmem>>, vector<1x32xf32>
      %40 = vector.broadcast %39 : vector<1x32xf32> to vector<16x32xf32>
      %41 = arith.addf %38, %40 : vector<16x32xf32>
      %c0_25 = arith.constant 0 : index
      %c0_26 = arith.constant 0 : index
      %42 = vector.load %arg8[%c0_25, %c0_26] : memref<16x32xf32, #tpu.memory_space<vmem>>, vector<16x32xf32>
      tpu.vector_store %arg8[%c0_25, %c0_26], %41 {strides = array<i32>} : memref<16x32xf32, #tpu.memory_space<vmem>>, vector<16x32xf32>,
    } else {
    }
    return
  }
  func.func @transform_0(%arg0: i32, %arg1: i32) -> (i32, i32) {
    %c0_i32 = arith.constant 0 : i32
    return %arg0, %arg1 : i32, i32
  }
  func.func @transform_1(%arg0: i32, %arg1: i32) -> (i32, i32) {
    %c0_i32 = arith.constant 0 : i32
    %c0_i32_0 = arith.constant 0 : i32
    return %arg1, %c0_i32 : i32, i32
  }
  func.func @transform_2(%arg0: i32, %arg1: i32) -> (i32, i32) {
    %c0_i32 = arith.constant 0 : i32
    %c0_i32_0 = arith.constant 0 : i32
    %c0_i32_1 = arith.constant 0 : i32
    return %c0_i32, %c0_i32_0 : i32, i32
  }
  func.func @transform_3(%arg0: i32, %arg1: i32) -> (i32, i32) {
    %c0_i32 = arith.constant 0 : i32
    %c0_i32_0 = arith.constant 0 : i32
    return %arg0, %c0_i32 : i32, i32
  }
  func.func @transform_4(%arg0: i32, %arg1: i32) -> (i32, i32) {
    %c0_i32 = arith.constant 0 : i32
    %c0_i32_0 = arith.constant 0 : i32
    %c0_i32_1 = arith.constant 0 : i32
    return %c0_i32, %c0_i32_0 : i32, i32
  }
  func.func @transform_5(%arg0: i32, %arg1: i32) -> (i32, i32) {
    %c0_i32 = arith.constant 0 : i32
    %c0_i32_0 = arith.constant 0 : i32
    %c0_i32_1 = arith.constant 0 : i32
    return %c0_i32, %c0_i32_0 : i32, i32
  }
  func.func @transform_6(%arg0: i32, %arg1: i32) -> (i32, i32) {
    %c0_i32 = arith.constant 0 : i32
    %c0_i32_0 = arith.constant 0 : i32
    return %arg0, %c0_i32 : i32, i32
  }
}

</mosaic_0001>

<bundles_post_ra>
// kernel: _lambda_.31
= control target key start
LH: loop header
LB: loop body
LE: loop exit
PB: predicated region body
PF: predicated region fallthrough
CT: control target
= control target key end

     0   :  { %vm19_vm0 = vcmask 523264   ;;  %v147_v0 = vmov 0.0   ;;  %vm148_vm1 = vmmov 0   ;;  %vm43_vm2 = vcmask 261120   ;;  %s194_s1 = inlined_call_operand.vmem [shape: bf16[32,64], index: 1, kind: input, shape index: {}]   ;;  %s195_s0 = inlined_call_operand.vmem [shape: f32[16,32], index: 0, kind: input, shape index: {}]   ;;  %s196_s2 = inlined_call_operand.vmem [shape: f32[1,64], index: 2, kind: input, shape index: {}]   ;;  %s197_s3 = inlined_call_operand.vmem [shape: bf16[16,64], index: 3, kind: output, shape index: {}]  }
   0x1   :  { %135 = vmatprep.subr.bf16.mxu0 %v147_v0  ;;  %v145_v1 = vld [vmem:[%s194_s1] sm:$0xff]   ;;  %139 = vmatprep.mubr.msk.bf16.mxu0 %vm148_vm1, %v147_v0  ;;  %20 = vst.msk [vmem:[#allocation2] sm:$0xff] %vm19_vm0, %v147_v0  ;;  %21 = vst.msk [vmem:[#allocation2 + $0x8] sm:$0xff] %vm19_vm0, %v147_v0  ;;  %v146_v2 = vld [vmem:[%s194_s1 + $0x8] sm:$0xff]   ;;  %vm117_vm3 = vcmask 519168  }
   0x2   :  { %136 = vmatpush3.bf16.msra.mxu0 %v145_v1  ;;  %v24_v3 = vld [vmem:[%s195_s0] sm:$0xff]  ;;  %v25_v4 = vld [vmem:[%s195_s0 + $0x8] sm:$0xff] }
   0x3   :  { %137 = vmatprep.subr.bf16.mxu0 %v147_v0  ;;  %v26_v5 = vpack.c.bf16 %v25_v4, %v24_v3  ;;  %v127_v14 = vld [vmem:[%s196_s2] ss:$0 sm:$0xff] }
   0x6   :  { %138 = vmatpush3.bf16.msra.mxu0 %v146_v2 }
   0x8   :  { %v22_v6 = vld [vmem:[#allocation2] sm:$0xff]  ;;  %v23_v8 = vld [vmem:[#allocation2 + $0x8] sm:$0xff] }
   0x9   :  { %140 = vmatmul.mubr.msk.bf16.vlgmr.msra.gmra.mrb[0].mxu0 %vm43_vm2, %v26_v5 }
  0xdc   :  { %v81_v7 = vpop.f32.mrb[0].mxu0 }
  0xdd   :  { %v88_v9 = vadd.f32 %v81_v7, %v22_v6  ;;  %v141_v10 = vpop.f32.mrb[1].mxu0 }
  0xde   :  { %v84_v11 = vpop.f32.mrb[2].mxu0 }
  0xdf   :  { %91 = vst.msk [vmem:[#allocation2] sm:$0xff] %vm19_vm0, %v88_v9  ;;  %v89_v12 = vadd.f32 %v84_v11, %v23_v8  ;;  %v142_v13 = vpop.f32.mrb[3].mxu0 }
  0xe1   :  { %92 = vst.msk [vmem:[#allocation2 + $0x8] sm:$0xff] %vm19_vm0, %v89_v12 }
  0xe6   :  { %v96_v15 = vld [vmem:[#allocation2] sm:$0xff] }
  0xe7   :  { %v105_v16 = vadd.f32 %v127_v14, %v96_v15 }
  0xe8   :  { %v97_v17 = vld [vmem:[#allocation2 + $0x8] sm:$0xff] }
  0xe9   :  { %v107_v18 = vmax.f32 %v105_v16, 0.0  ;;  %v106_v19 = vadd.f32 %v127_v14, %v97_v17 }
  0xeb   :  { %v130_v20 = vpack.c.bf16 %v107_v18, %v107_v18  ;;  %v108_v21 = vmax.f32 %v106_v19, 0.0 }
  0xed   :  { %118 = vst.msk [vmem:[%s197_s3] sm:$0xf] %vm117_vm3, %v130_v20  ;;  %v131_v22 = vpack.c.bf16 %v108_v21, %v108_v21 }
  0xef   :  { %119 = vst.msk [vmem:[%s197_s3 + $0x4] sm:$0xf] %vm117_vm3, %v131_v22 }

// kernel: _lambda_.28
= control target key start
LH: loop header
LB: loop body
LE: loop exit
PB: predicated region body
PF: predicated region fallthrough
CT: control target
= control target key end

     0   :  { %8 = vsyncpa [#allocation4], 0  ;;  %s187_s12 = smov [#allocation3]   ;;  %s243_s0 = inlined_call_operand.hbm [shape: f32[16,32], index: 0, kind: input, shape index: {}]   ;;  %s244_s1 = inlined_call_operand.vmem [shape: bf16[32,96], index: 1, kind: input, shape index: {}]   ;;  %s245_s2 = inlined_call_operand.vmem [shape: f32[1,96], index: 2, kind: input, shape index: {}]   ;;  %s246_s3 = inlined_call_operand.vmem [shape: bf16[16,96], index: 3, kind: output, shape index: {}]  }
   0x1   :  { %s14_s13 = sshll.u32 %s187_s12, 4  ;;  %s163_s16 = scalar_lea.hbm %s243_s0, 256  ;;  %s15_s13 = int_to_ptr.vmem [resolvable:$true] %s14_s13 }
   0x2   :  { %p164_p0 = scmp.ne.s32.totalorder %s243_s0, %s163_s16  ;;  %p167_p1 = scmp.lt.u32.totalorder %s163_s16, %s243_s0 }
   0x4   :  { %p169_p2 = pnand %p167_p1, %p164_p0 }
   0x6   :  { %172 = shalt.err (!%p169_p2)
}
   0x7   :  { %s173_s21 = scalar_lea.vmem %s15_s13, 256  ;;  %p178_p4 = scmp.lt.s32.totalorder %s15_s13, %s15_s13 }
   0x8   :  { %p174_p3 = scmp.ne.s32.totalorder %s15_s13, %s173_s21  ;;  %p179_p5 = scmp.lt.s32.totalorder %s173_s21, %s173_s21 }
   0xa   :  { %p180_p6 = por %p179_p5, %p178_p4 }
   0xc   :  { %p181_p7 = pnand %p180_p6, %p174_p3 }
   0xe   :  { %184 = shalt.err (!%p181_p7)
}
   0xf   :  { %s188_s22 = smov 128   ;;  %s189_s23 = smov 8  }
  0x10   :  { %20 = dma.hbm_to_vmem [thread:$0]  %s243_s0, 256, %s15_s13, [#allocation4], %s188_s22, %s188_s22, %s189_s23  }
  0x11   :  { %185 = dma.done.wait [#allocation4], 256  }
  0x12   :  { %186 = vsyncadd [#allocation4], 4294967040  ;;  %vm33_vm0 = vcmask 785408   ;;  %v190_v0 = vmov 0.0   ;;  %vm191_vm1 = vmmov 0   ;;  %v161_v1 = vld [vmem:[%s244_s1] sm:$0xff]  }
  0x13   :  { %34 = vst.msk [vmem:[#allocation2] sm:$0xff] %vm33_vm0, %v190_v0  ;;  %35 = vst.msk [vmem:[#allocation2 + $0x8] sm:$0xff] %vm33_vm0, %v190_v0  ;;  %148 = vmatprep.subr.bf16.mxu0 %v190_v0  ;;  %152 = vmatprep.mubr.msk.bf16.mxu0 %vm191_vm1, %v190_v0  ;;  %v162_v2 = vld [vmem:[%s244_s1 + $0x8] sm:$0xff]   ;;  %v38_v3 = vld [vmem:[#allocation3] sm:$0xff]  ;;  %vm57_vm2 = vcmask 261120   ;;  %vm129_vm3 = vcmask 781312  }
  0x14   :  { %149 = vmatpush3.bf16.msra.mxu0 %v161_v1  ;;  %v39_v4 = vld [vmem:[#allocation3 + $0x8] sm:$0xff]  ;;  %v140_v14 = vld [vmem:[%s245_s2] ss:$0 sm:$0xff] }
  0x15   :  { %150 = vmatprep.subr.bf16.mxu0 %v190_v0  ;;  %v40_v5 = vpack.c.bf16 %v39_v4, %v38_v3 }
  0x18   :  { %151 = vmatpush3.bf16.msra.mxu0 %v162_v2 }
  0x1a   :  { %v36_v6 = vld [vmem:[#allocation2] sm:$0xff]  ;;  %v37_v8 = vld [vmem:[#allocation2 + $0x8] sm:$0xff] }
  0x1b   :  { %153 = vmatmul.mubr.msk.bf16.vlgmr.msra.gmra.mrb[0].mxu0 %vm57_vm2, %v40_v5 }
  0xee   :  { %v95_v7 = vpop.f32.mrb[0].mxu0 }
  0xef   :  { %v102_v9 = vadd.f32 %v95_v7, %v36_v6  ;;  %v154_v10 = vpop.f32.mrb[1].mxu0 }
  0xf0   :  { %v98_v11 = vpop.f32.mrb[2].mxu0 }
  0xf1   :  { %105 = vst.msk [vmem:[#allocation2] sm:$0xff] %vm33_vm0, %v102_v9  ;;  %v103_v12 = vadd.f32 %v98_v11, %v37_v8  ;;  %v155_v13 = vpop.f32.mrb[3].mxu0 }
  0xf3   :  { %106 = vst.msk [vmem:[#allocation2 + $0x8] sm:$0xff] %vm33_vm0, %v103_v12 }
  0xf8   :  { %v110_v15 = vld [vmem:[#allocation2] sm:$0xff] }
  0xf9   :  { %v119_v16 = vadd.f32 %v140_v14, %v110_v15 }
  0xfa   :  { %v111_v17 = vld [vmem:[#allocation2 + $0x8] sm:$0xff] }
  0xfb   :  { %v143_v18 = vpack.c.bf16 %v119_v16, %v119_v16  ;;  %v120_v19 = vadd.f32 %v140_v14, %v111_v17 }
  0xfd   :  { %130 = vst.msk [vmem:[%s246_s3] sm:$0xf] %vm129_vm3, %v143_v18  ;;  %v144_v20 = vpack.c.bf16 %v120_v19, %v120_v19 }
  0xff   :  { %131 = vst.msk [vmem:[%s246_s3 + $0x4] sm:$0xf] %vm129_vm3, %v144_v20 }
 0x100   :  { %136 = vsyncpa [#allocation4], 1 }

// kernel: _lambda_.29
= control target key start
LH: loop header
LB: loop body
LE: loop exit
PB: predicated region body
PF: predicated region fallthrough
CT: control target
= control target key end

     0   :  { %s997_s12 = smov 0   ;;  %s999_s13 = smov 0   ;;  %s1108_s0 = inlined_call_operand.vmem [shape: bf16[2,8,32], index: 0, kind: input, shape index: {}]   ;;  %s1109_s1 = inlined_call_operand.vmem [shape: bf16[2,8,32], index: 1, kind: input, shape index: {}]   ;;  %s1110_s2 = inlined_call_operand.vmem [shape: bf16[2,8,32], index: 2, kind: input, shape index: {}]   ;;  %s1111_s3 = inlined_call_operand.vmem [shape: bf16[2,8,32], index: 3, kind: output, shape index: {}]  }
   0x1   :  { %s1001_s14 = smov 0  }
   0x2 LB: > { %s25_s15 = sadd.s32 1, %s963_s13  ;;  %p812_p0 = scmp.ge.s32.totalorder %s967_s14, 1  ;;  %s967_s14 = sphi %s1001_s14, %s13_s14   ;;  %s963_s13 = sphi %s999_s13, %s1113_s13   ;;  %s959_s12 = sphi %s997_s12, %s1112_s12  }
   0x3   : > { %p27_p1 = scmp.ge.s32.totalorder %s25_s15, 2  ;;  %p173_p2 = scmp.lt.s32.totalorder %s967_s14, 3 }
   0x5   : > { %s1115_s15 = smov (%p27_p1, %s25_s15), 0  ;;  %p174_p3 = pnand %p812_p0, %p173_p2 }
   0x6   : > { %p209_p4 = scmp.lt.s32.totalorder (!%p174_p3), %s959_s12, 1  ;;  %v969_v0 = vmov (!%p174_p3), 0.0   ;;  %vm970_vm0 = vmmov (!%p174_p3), 0   ;;  %vm235_vm1 = vcmask (!%p174_p3), 64512   ;;  %s971_s23 = smov (!%p174_p3), 120   ;;  %vm295_vm2 = vcmask (!%p174_p3), 1043456  }
   0x7   : > { %177 = sbr.rel (%p174_p3) target bundleno = 1171 (0x493), region = 32  ;;  %846 = vmatprep.subr.bf16.mxu0 (!%p174_p3), %v969_v0  ;;  %848 = vmatprep.mubr.msk.bf16.mxu0 (!%p174_p3), %vm970_vm0, %v969_v0  ;;  %s972_s24 = smov (!%p174_p3), 112   ;;  %vm465_vm3 = vcmask (!%p174_p3), 130112   ;;  %vm581_vm4 = vcmask (!%p174_p3), 195712   ;;  %vm697_vm5 = vcmask (!%p174_p3), 261312   ;;  %vm701_vm6 = vcmask (!%p174_p3), 257024  }
   0x8   : > { %852 = vmatprep.subr.bf16.mxu1 (!%p174_p3), %v969_v0  ;;  %854 = vmatprep.mubr.msk.bf16.mxu1 (!%p174_p3), %vm970_vm0, %v969_v0  ;;  %s973_s25 = smov (!%p174_p3), 104   ;;  %s974_s29 = smov (!%p174_p3), 8  }
   0x9   : > { %s975_s30 = smov (!%p174_p3), 16   ;;  %s976_s4 = smov (!%p174_p3), 24  }
   0xe   : > { %s1117_s12 = smov (!%p209_p4, %s959_s12), 1 }
   0xf   : > { %s1021_s16 = sshll.u32 %s1117_s12, 2 }
  0x10   : > { %s219_s19 = scalar_lea.vmem %s1109_s1, %s1021_s16  ;;  %s215_s22 = scalar_lea.vmem %s1108_s0, %s1021_s16 }
  0x11   : > { %v233_v1 = vld [vmem:[%s219_s19] sm:$0xf]  ;;  %s223_s28 = scalar_lea.vmem %s1110_s2, %s1021_s16  ;;  %s230_s7 = scalar_lea.vmem %s1111_s3, %s1021_s16 }
  0x12   : > { %v240_v2 = vsel %vm235_vm1, %v233_v1, 0  ;;  %v232_v3 = vld [vmem:[%s215_s22] sm:$0xf]  ;;  %v820_v5 = vcombine.low %v233_v1, %v233_v1 }
  0x13   : > { %847 = vmatpush3.bf16.xpose.msra.mxu0 %v240_v2  ;;  %v819_v4 = vcombine.low %v232_v3, %v232_v3  ;;  %v234_v11 = vld [vmem:[%s223_s28] sm:$0xf] }
  0x14   : > { %864 = vmatprep.subr.bf16.mxu0 %v969_v0  ;;  %v297_v12 = vsel %vm295_vm2, %v234_v11, 0  ;;  %v822_v41 = vcombine.low %v234_v11, %v234_v11 }
  0x15   : > { %345 = vrot.lane.b32.xlu1 %v819_v4, %s971_s23  ;;  %853 = vmatpush3.bf16.msra.mxu1 %v297_v12 }
  0x16   : > { %858 = vmatprep.subr.bf16.mxu1 %v969_v0 }
  0x19   : > { %469 = vrot.lane.b32.xlu1 %v820_v5, %s972_s24 }
  0x1a   : > { %849 = vmatmul.mubr.msk.bf16.vlgmr.msra.gmra.mrb[0].mxu0 %vm235_vm1, %v232_v3 }
  0x1b   : > { %866 = vmatprep.mubr.msk.bf16.mxu0 %vm970_vm0, %v969_v0 }
  0x1d   : > { %467 = vrot.lane.b32.xlu1 %v819_v4, %s972_s24 }
  0x21   : > { %585 = vrot.lane.b32.xlu1 %v820_v5, %s973_s25 }
  0x25   : > { %583 = vrot.lane.b32.xlu1 %v819_v4, %s973_s25 }
  0x87   : > { %v346_v18 = vpop.permute.xlu1 %345 }
  0x8b   : > { %v470_v21 = vpop.permute.xlu1 %469 }
  0x8c   : > { %v475_v22 = vsel %vm235_vm1, %v470_v21, 0 }
  0x8f   : > { %v468_v23 = vpop.permute.xlu1 %467 }
  0x93   : > { %v586_v24 = vpop.permute.xlu1 %585 }
  0x94   : > { %v591_v25 = vsel %vm235_vm1, %v586_v24, 0 }
  0x97   : > { %v584_v26 = vpop.permute.xlu1 %583 }
  0xed   : > { %v276_v6 = vpop.f32.mrb[0].mxu0 }
  0xee   : > { %v850_v7 = vpop.f32.mrb[1].mxu0  ;;  %v282_v8 = vsel %vm235_vm1, %v276_v6, -inf }
  0xef   : > { %283 = vmax.xlane.f32.xlu0 %v282_v8  ;;  %v279_v9 = vpop.f32.mrb[2].mxu0 }
  0xf0   : > { %v851_v10 = vpop.f32.mrb[3].mxu0 }
 0x105   : > { %350 = vrot.lane.b32.xlu0 %v820_v5, %s971_s23 }
 0x17c   : > { %v284_v13 = vpop.xlane.xlu0 %283 }
 0x17d   : > { %v285_v14 = vsub.f32 %v276_v6, %v284_v13 }
 0x17f   : > { %v286_v15 = vmul.f32 1.442695, %v285_v14 }
 0x180   : > { %v351_v16 = vpop.permute.xlu0 %350 }
 0x181   : > { %929 = vpow2.f32 %v286_v15  ;;  %v356_v19 = vsel %vm235_vm1, %v351_v16, 0 }
 0x18b   : > { %v1049_v17 = vpop.eup %929 }
 0x18c   : > { %v291_v20 = vpack.c.bf16 %v1049_v17, %v1049_v17  ;;  %v288_v8 = vsel %vm235_vm1, %v1049_v17, 0.0 }
 0x18e   : > { %855 = vmatmul.mubr.msk.bf16.vlgmr.msra.gmra.mrb[0].mxu1 %vm235_vm1, %v291_v20 }
 0x18f   : > { %859 = vmatpush3.bf16.xpose.msra.mxu1 %v356_v19  ;;  %860 = vmatprep.mubr.msk.bf16.mxu1 %vm970_vm0, %v969_v0 }
 0x190   : > { %870 = vmatprep.subr.bf16.mxu1 %v969_v0 }
 0x196   : > { %861 = vmatmul.mubr.msk.bf16.vlgmr.msra.gmra.mrb[4].mxu1 %vm235_vm1, %v346_v18 }
 0x197   : > { %871 = vmatpush3.bf16.xpose.msra.mxu1 %v475_v22  ;;  %872 = vmatprep.mubr.msk.bf16.mxu1 %vm970_vm0, %v969_v0 }
 0x198   : > { %882 = vmatprep.subr.bf16.mxu1 %v969_v0 }
 0x19e   : > { %873 = vmatmul.mubr.msk.bf16.vlgmr.msra.gmra.mrb[8].mxu1 %vm235_vm1, %v468_v23 }
 0x19f   : > { %883 = vmatpush3.bf16.xpose.msra.mxu1 %v591_v25  ;;  %884 = vmatprep.mubr.msk.bf16.mxu1 %vm970_vm0, %v969_v0 }
 0x1a6   : > { %885 = vmatmul.mubr.msk.bf16.vlgmr.msra.gmra.mrb[12].mxu1 %vm235_vm1, %v584_v26 }
 0x261   : > { %v1068_v27 = vpop.f32.mrb[0].mxu1 }
 0x262   : > { %v856_v28 = vpop.f32.mrb[1].mxu1 }
 0x263   : > { %v336_v29 = vpop.f32.mrb[2].mxu1 }
 0x264   : > { %v857_v30 = vpop.f32.mrb[3].mxu1 }
 0x269   : > { %v392_v31 = vpop.f32.mrb[4].mxu1 }
 0x26a   : > { %v862_v32 = vpop.f32.mrb[5].mxu1  ;;  %v398_v33 = vsel %vm235_vm1, %v392_v31, -inf }
 0x26b   : > { %399 = vmax.xlane.f32.xlu1 %v398_v33  ;;  %v395_v34 = vpop.f32.mrb[6].mxu1 }
 0x26c   : > { %v863_v35 = vpop.f32.mrb[7].mxu1 }
 0x271   : > { %v511_v36 = vpop.f32.mrb[8].mxu1 }
 0x272   : > { %v517_v37 = vsel %vm235_vm1, %v511_v36, -inf  ;;  %v874_v38 = vpop.f32.mrb[9].mxu1 }
 0x273   : > { %518 = vmax.xlane.f32.xlu0 %v517_v37  ;;  %v514_v39 = vpop.f32.mrb[10].mxu1 }
 0x274   : > { %v875_v40 = vpop.f32.mrb[11].mxu1 }
 0x279   : > { %v627_v42 = vpop.f32.mrb[12].mxu1 }
 0x27a   : > { %v886_v43 = vpop.f32.mrb[13].mxu1  ;;  %v633_v46 = vsel %vm235_vm1, %v627_v42, -inf }
 0x27b   : > { %v630_v44 = vpop.f32.mrb[14].mxu1 }
 0x27c   : > { %527 = vrot.lane.b32.xlu1 %v822_v41, %s972_s24  ;;  %v887_v45 = vpop.f32.mrb[15].mxu1 }
 0x289   : > { %411 = vrot.lane.b32.xlu0 %v822_v41, %s971_s23 }
 0x2a0   : > { %634 = vmax.xlane.f32.xlu1 %v633_v46 }
 0x2b1   : > { %643 = vrot.lane.b32.xlu1 %v822_v41, %s973_s25 }
 0x2f8   : > { %v400_v47 = vpop.xlane.xlu1 %399 }
 0x2f9   : > { %v401_v48 = vsub.f32 %v392_v31, %v400_v47 }
 0x2fb   : > { %v402_v49 = vmul.f32 1.442695, %v401_v48 }
 0x2fc   : > { %v528_v56 = vpop.permute.xlu1 %527 }
 0x2fd   : > { %931 = vpow2.f32 %v402_v49  ;;  %v533_v59 = vsel %vm295_vm2, %v528_v56, 0 }
 0x300   : > { %v519_v50 = vpop.xlane.xlu0 %518 }
 0x301   : > { %v520_v51 = vsub.f32 %v511_v36, %v519_v50 }
 0x303   : > { %v521_v52 = vmul.f32 1.442695, %v520_v51 }
 0x304   : > { %v412_v53 = vpop.permute.xlu0 %411 }
 0x305   : > { %933 = vpow2.f32 %v521_v52  ;;  %v417_v54 = vsel %vm295_vm2, %v412_v53, 0 }
 0x306   : > { %865 = vmatpush3.bf16.msra.mxu0 %v417_v54 }
 0x307   : > { %v932_v55 = vpop.eup %931  ;;  %876 = vmatprep.subr.bf16.mxu0 %v969_v0 }
 0x308   : > { %v404_v57 = vsel %vm235_vm1, %v932_v55, 0.0  ;;  %v407_v58 = vpack.c.bf16 %v932_v55, %v932_v55 }
 0x309   : > { %405 = vadd.xlane.f32.xlu0 %v404_v57 }
 0x30a   : > { %867 = vmatmul.mubr.msk.bf16.vlgmr.msra.gmra.mrb[4].mxu0 %vm235_vm1, %v407_v58 }
 0x30b   : > { %877 = vmatpush3.bf16.msra.mxu0 %v533_v59  ;;  %878 = vmatprep.mubr.msk.bf16.mxu0 %vm970_vm0, %v969_v0 }
 0x30c   : > { %888 = vmatprep.subr.bf16.mxu0 %v969_v0 }
 0x30f   : > { %v934_v60 = vpop.eup %933 }
 0x310   : > { %v523_v61 = vsel %vm235_vm1, %v934_v60, 0.0  ;;  %v526_v62 = vpack.c.bf16 %v934_v60, %v934_v60 }
 0x311   : > { %524 = vadd.xlane.f32.xlu1 %v523_v61 }
 0x312   : > { %879 = vmatmul.mubr.msk.bf16.vlgmr.msra.gmra.mrb[8].mxu0 %vm235_vm1, %v526_v62 }
 0x313   : > { %890 = vmatprep.mubr.msk.bf16.mxu0 %vm970_vm0, %v969_v0 }
 0x32d   : > { %v635_v63 = vpop.xlane.xlu1 %634 }
 0x32e   : > { %v636_v1 = vsub.f32 %v627_v42, %v635_v63 }
 0x330   : > { %v637_v2 = vmul.f32 1.442695, %v636_v1 }
 0x331   : > { %v644_v3 = vpop.permute.xlu1 %643 }
 0x332   : > { %935 = vpow2.f32 %v637_v2  ;;  %v649_v4 = vsel %vm295_vm2, %v644_v3, 0 }
 0x333   : > { %889 = vmatpush3.bf16.msra.mxu0 %v649_v4 }
 0x33c   : > { %v936_v5 = vpop.eup %935 }
 0x33d   : > { %v639_v6 = vsel %vm235_vm1, %v936_v5, 0.0  ;;  %v642_v7 = vpack.c.bf16 %v936_v5, %v936_v5 }
 0x33e   : > { %640 = vadd.xlane.f32.xlu0 %v639_v6 }
 0x33f   : > { %891 = vmatmul.mubr.msk.bf16.vlgmr.msra.gmra.mrb[12].mxu0 %vm235_vm1, %v642_v7 }
 0x342   : > { %289 = vadd.xlane.f32.xlu0 %v288_v8 }
 0x396   : > { %v406_v0 = vpop.xlane.xlu0 %405 }
 0x39e   : > { %v525_v11 = vpop.xlane.xlu1 %524 }
 0x3cb   : > { %v641_v9 = vpop.xlane.xlu0 %640 }
 0x3cf   : > { %v290_v10 = vpop.xlane.xlu0 %289 }
 0x3d0   : > { %937 = vrcp.f32 %v290_v10 }
 0x3d1   : > { %939 = vrcp.f32 %v406_v0 }
 0x3d2   : > { %941 = vrcp.f32 %v525_v11 }
 0x3d3   : > { %943 = vrcp.f32 %v641_v9 }
 0x3da   : > { %v938_v12 = vpop.eup %937 }
 0x3db   : > { %v340_v13 = vmul.f32 %v938_v12, %v1068_v27  ;;  %v940_v14 = vpop.eup %939 }
 0x3dc   : > { %v942_v20 = vpop.eup %941 }
 0x3dd   : > { %v453_v15 = vpop.f32.mrb[4].mxu0  ;;  %341 = vst.msk [vmem:[#allocation2] sm:$0xff] %vm235_vm1, %v340_v13  ;;  %v944_v26 = vpop.eup %943 }
 0x3de   : > { %v460_v16 = vmul.f32 %v940_v14, %v453_v15  ;;  %v868_v18 = vpop.f32.mrb[5].mxu0 }
 0x3df   : > { %v456_v19 = vpop.f32.mrb[6].mxu0 }
 0x3e0   : > { %462 = vrot.lane.b32.xlu1 %v460_v16, %s974_s29  ;;  %v869_v17 = vpop.f32.mrb[7].mxu0 }
 0x3e5   : > { %v569_v21 = vpop.f32.mrb[8].mxu0 }
 0x3e6   : > { %v576_v22 = vmul.f32 %v942_v20, %v569_v21  ;;  %v880_v23 = vpop.f32.mrb[9].mxu0 }
 0x3e7   : > { %v572_v24 = vpop.f32.mrb[10].mxu0 }
 0x3e8   : > { %578 = vrot.lane.b32.xlu0 %v576_v22, %s975_s30  ;;  %v881_v25 = vpop.f32.mrb[11].mxu0 }
 0x412   : > { %v685_v27 = vpop.f32.mrb[12].mxu0 }
 0x413   : > { %v692_v28 = vmul.f32 %v944_v26, %v685_v27  ;;  %v892_v29 = vpop.f32.mrb[13].mxu0 }
 0x414   : > { %v688_v30 = vpop.f32.mrb[14].mxu0 }
 0x415   : > { %694 = vrot.lane.b32.xlu1 %v692_v28, %s976_s4  ;;  %v893_v31 = vpop.f32.mrb[15].mxu0 }
 0x452   : > { %v463_v32 = vpop.permute.xlu1 %462 }
 0x453   : > { %466 = vst.msk [vmem:[#allocation2] sm:$0xff] %vm465_vm3, %v463_v32 }
 0x45a   : > { %v579_v33 = vpop.permute.xlu0 %578 }
 0x45b   : > { %582 = vst.msk [vmem:[#allocation2] sm:$0xff] %vm581_vm4, %v579_v33 }
 0x487   : > { %v695_v34 = vpop.permute.xlu1 %694 }
 0x488   : > { %698 = vst.msk [vmem:[#allocation2] sm:$0xff] %vm697_vm5, %v695_v34 }
 0x48f   : > { %v699_v35 = vld [vmem:[#allocation2] sm:$0xff] }
 0x490   : > { %v700_v36 = vpack.c.bf16 %v699_v35, %v699_v35 }
 0x492   : > { %702 = vst.msk [vmem:[%s230_s7] sm:$0xf] %vm701_vm6, %v700_v36 }
 0x493 PF: > { %s13_s14 = sadd.s32 1, %s967_s14   ;;  %s1112_s12 = smov %s963_s13 }
 0x494   : > { %p10_p5 = scmp.ge.s32.totalorder %s13_s14, 4   ;;  %s1113_s13 = smov %s1115_s15 }
 0x496   :  { %12 = sbr.rel (!%p10_p5) target bundleno = 2 (0x2), region = 68 }

// kernel: _lambda_.30
= control target key start
LH: loop header
LB: loop body
LE: loop exit
PB: predicated region body
PF: predicated region fallthrough
CT: control target
= control target key end

     0   :  { %vm28_vm0 = vcmask 261120   ;;  %v201_v0 = vmov 0.0   ;;  %vm202_vm1 = vmmov 0   ;;  %s279_s1 = inlined_call_operand.vmem [shape: bf16[32,32], index: 1, kind: input, shape index: {}]   ;;  %s280_s0 = inlined_call_operand.vmem [shape: bf16[16,32], index: 0, kind: input, shape index: {}]   ;;  %s281_s2 = inlined_call_operand.vmem [shape: f32[1,32], index: 2, kind: input, shape index: {}]   ;;  %s282_s3 = inlined_call_operand.vmem [shape: f32[16,32], index: 3, kind: input, shape index: {}]   ;;  %s283_s4 = inlined_call_operand.vmem [shape: f32[1,32], index: 4, kind: input, shape index: {}]   ;;  %s284_s5 = inlined_call_operand.vmem [shape: f32[1,32], index: 5, kind: input, shape index: {}]   ;;  %s285_s6 = inlined_call_operand.vmem [shape: f32[16,32], index: 6, kind: output, shape index: {}]  }
   0x1   :  { %184 = vmatprep.subr.bf16.mxu0 %v201_v0  ;;  %v194_v1 = vld [vmem:[%s279_s1] sm:$0xff]   ;;  %188 = vmatprep.mubr.msk.bf16.mxu0 %vm202_vm1, %v201_v0  ;;  %29 = vst.msk [vmem:[#allocation2] sm:$0xff] %vm28_vm0, %v201_v0  ;;  %30 = vst.msk [vmem:[#allocation2 + $0x8] sm:$0xff] %vm28_vm0, %v201_v0  ;;  %v195_v2 = vld [vmem:[%s279_s1 + $0x8] sm:$0xff]  }
   0x2   :  { %185 = vmatpush3.bf16.msra.mxu0 %v194_v1  ;;  %v196_v3 = vld [vmem:[%s280_s0] sm:$0xff]   ;;  %v120_v17 = vld [vmem:[%s282_s3 + $0x8] sm:$0xff] }
   0x3   :  { %186 = vmatprep.subr.bf16.mxu0 %v201_v0  ;;  %v178_v12 = vld [vmem:[%s281_s2] ss:$0 sm:$0xff] }
   0x4   :  { %v119_v14 = vld [vmem:[%s282_s3] sm:$0xff] }
   0x5   :  { %v179_v40 = vld [vmem:[%s283_s4] ss:$0 sm:$0xff] }
   0x6   :  { %187 = vmatpush3.bf16.msra.mxu0 %v195_v2  ;;  %v180_v42 = vld [vmem:[%s284_s5] ss:$0 sm:$0xff] }
   0x8   :  { %v31_v4 = vld [vmem:[#allocation2] sm:$0xff]  ;;  %v32_v6 = vld [vmem:[#allocation2 + $0x8] sm:$0xff] }
   0x9   :  { %189 = vmatmul.mubr.msk.bf16.vlgmr.msra.gmra.mrb[0].mxu0 %vm28_vm0, %v196_v3 }
  0xdc   :  { %v94_v5 = vpop.f32.mrb[0].mxu0 }
  0xdd   :  { %v101_v7 = vadd.f32 %v94_v5, %v31_v4  ;;  %v190_v8 = vpop.f32.mrb[1].mxu0 }
  0xde   :  { %v97_v9 = vpop.f32.mrb[2].mxu0 }
  0xdf   :  { %103 = vst.msk [vmem:[#allocation2] sm:$0xff] %vm28_vm0, %v101_v7  ;;  %v102_v10 = vadd.f32 %v97_v9, %v32_v6  ;;  %v191_v11 = vpop.f32.mrb[3].mxu0 }
  0xe1   :  { %104 = vst.msk [vmem:[#allocation2 + $0x8] sm:$0xff] %vm28_vm0, %v102_v10 }
  0xe6   :  { %v108_v13 = vld [vmem:[#allocation2] sm:$0xff] }
  0xe7   :  { %v117_v15 = vadd.f32 %v178_v12, %v108_v13 }
  0xe8   :  { %v109_v16 = vld [vmem:[#allocation2 + $0x8] sm:$0xff] }
  0xe9   :  { %v121_v18 = vadd.f32 %v119_v14, %v117_v15  ;;  %v118_v19 = vadd.f32 %v178_v12, %v109_v16 }
  0xeb   :  { %v123_v20 = vsel %vm28_vm0, %v121_v18, 0.0  ;;  %v122_v21 = vadd.f32 %v120_v17, %v118_v19 }
  0xec   :  { %124 = vadd.xlane.f32.xlu0 %v123_v20 }
  0xed   :  { %v126_v22 = vsel %vm28_vm0, %v122_v21, 0.0 }
  0xf0   :  { %127 = vadd.xlane.f32.xlu0 %v126_v22 }
 0x179   :  { %v125_v23 = vpop.xlane.xlu0 %124 }
 0x17a   :  { %v130_v24 = vmul.f32 0.03125, %v125_v23 }
 0x17c   :  { %v132_v25 = vsub.f32 %v121_v18, %v130_v24 }
 0x17d   :  { %v128_v26 = vpop.xlane.xlu0 %127 }
 0x17e   :  { %v131_v27 = vmul.f32 0.03125, %v128_v26  ;;  %v134_v28 = vmul.f32 %v132_v25, %v132_v25 }
 0x180   :  { %v133_v29 = vsub.f32 %v122_v21, %v131_v27  ;;  %v136_v30 = vsel %vm28_vm0, %v134_v28, 0.0 }
 0x181   :  { %137 = vadd.xlane.f32.xlu1 %v136_v30 }
 0x182   :  { %v135_v31 = vmul.f32 %v133_v29, %v133_v29 }
 0x184   :  { %v139_v32 = vsel %vm28_vm0, %v135_v31, 0.0 }
 0x185   :  { %140 = vadd.xlane.f32.xlu1 %v139_v32 }
 0x20e   :  { %v138_v33 = vpop.xlane.xlu1 %137 }
 0x20f   :  { %v142_v34 = vmul.f32 0.03125, %v138_v33 }
 0x211   :  { %v144_v35 = vadd.f32 1e-05, %v142_v34 }
 0x212   :  { %v141_v36 = vpop.xlane.xlu1 %140 }
 0x213   :  { %197 = vrsqrt.f32 %v144_v35  ;;  %v143_v37 = vmul.f32 0.03125, %v141_v36 }
 0x215   :  { %v145_v38 = vadd.f32 1e-05, %v143_v37 }
 0x217   :  { %199 = vrsqrt.f32 %v145_v38 }
 0x21d   :  { %v198_v39 = vpop.eup %197 }
 0x21e   :  { %v148_v41 = vmul.f32 %v198_v39, %v132_v25 }
 0x220   :  { %v157_v43 = vmul.f32 %v179_v40, %v148_v41 }
 0x221   :  { %v200_v44 = vpop.eup %199 }
 0x222   :  { %v166_v45 = vadd.f32 %v180_v42, %v157_v43  ;;  %v149_v46 = vmul.f32 %v200_v44, %v133_v29 }
 0x224   :  { %168 = vst.msk [vmem:[%s285_s6] sm:$0xff] %vm28_vm0, %v166_v45  ;;  %v158_v47 = vmul.f32 %v179_v40, %v149_v46 }
 0x226   :  { %v167_v48 = vadd.f32 %v180_v42, %v158_v47 }
 0x228   :  { %169 = vst.msk [vmem:[%s285_s6 + $0x8] sm:$0xff] %vm28_vm0, %v167_v48 }

// kernel: _lambda_.42
= control target key start
LH: loop header
LB: loop body
LE: loop exit
PB: predicated region body
PF: predicated region fallthrough
CT: control target
= control target key end

     0   :  { %vm19_vm0 = vcmask 523264   ;;  %v145_v0 = vmov 0.0   ;;  %vm146_vm1 = vmmov 0   ;;  %vm43_vm2 = vcmask 261120   ;;  %s192_s1 = inlined_call_operand.vmem [shape: bf16[32,64], index: 1, kind: input, shape index: {}]   ;;  %s193_s0 = inlined_call_operand.vmem [shape: f32[16,32], index: 0, kind: input, shape index: {}]   ;;  %s194_s2 = inlined_call_operand.vmem [shape: f32[1,64], index: 2, kind: input, shape index: {}]   ;;  %s195_s3 = inlined_call_operand.vmem [shape: bf16[16,64], index: 3, kind: output, shape index: {}]  }
   0x1   :  { %133 = vmatprep.subr.bf16.mxu0 %v145_v0  ;;  %v143_v1 = vld [vmem:[%s192_s1] sm:$0xff]   ;;  %137 = vmatprep.mubr.msk.bf16.mxu0 %vm146_vm1, %v145_v0  ;;  %20 = vst.msk [vmem:[#allocation2] sm:$0xff] %vm19_vm0, %v145_v0  ;;  %21 = vst.msk [vmem:[#allocation2 + $0x8] sm:$0xff] %vm19_vm0, %v145_v0  ;;  %v144_v2 = vld [vmem:[%s192_s1 + $0x8] sm:$0xff]   ;;  %vm115_vm3 = vcmask 519168  }
   0x2   :  { %134 = vmatpush3.bf16.msra.mxu0 %v143_v1  ;;  %v24_v3 = vld [vmem:[%s193_s0] sm:$0xff]  ;;  %v25_v4 = vld [vmem:[%s193_s0 + $0x8] sm:$0xff] }
   0x3   :  { %135 = vmatprep.subr.bf16.mxu0 %v145_v0  ;;  %v26_v5 = vpack.c.bf16 %v25_v4, %v24_v3  ;;  %v125_v14 = vld [vmem:[%s194_s2] ss:$0 sm:$0xff] }
   0x6   :  { %136 = vmatpush3.bf16.msra.mxu0 %v144_v2 }
   0x8   :  { %v22_v6 = vld [vmem:[#allocation2] sm:$0xff]  ;;  %v23_v8 = vld [vmem:[#allocation2 + $0x8] sm:$0xff] }
   0x9   :  { %138 = vmatmul.mubr.msk.bf16.vlgmr.msra.gmra.mrb[0].mxu0 %vm43_vm2, %v26_v5 }
  0xdc   :  { %v81_v7 = vpop.f32.mrb[0].mxu0 }
  0xdd   :  { %v88_v9 = vadd.f32 %v81_v7, %v22_v6  ;;  %v139_v10 = vpop.f32.mrb[1].mxu0 }
  0xde   :  { %v84_v11 = vpop.f32.mrb[2].mxu0 }
  0xdf   :  { %91 = vst.msk [vmem:[#allocation2] sm:$0xff] %vm19_vm0, %v88_v9  ;;  %v89_v12 = vadd.f32 %v84_v11, %v23_v8  ;;  %v140_v13 = vpop.f32.mrb[3].mxu0 }
  0xe1   :  { %92 = vst.msk [vmem:[#allocation2 + $0x8] sm:$0xff] %vm19_vm0, %v89_v12 }
  0xe6   :  { %v96_v15 = vld [vmem:[#allocation2] sm:$0xff] }
  0xe7   :  { %v105_v16 = vadd.f32 %v125_v14, %v96_v15 }
  0xe8   :  { %v97_v17 = vld [vmem:[#allocation2 + $0x8] sm:$0xff] }
  0xe9   :  { %v128_v18 = vpack.c.bf16 %v105_v16, %v105_v16  ;;  %v106_v19 = vadd.f32 %v125_v14, %v97_v17 }
  0xeb   :  { %116 = vst.msk [vmem:[%s195_s3] sm:$0xf] %vm115_vm3, %v128_v18  ;;  %v129_v20 = vpack.c.bf16 %v106_v19, %v106_v19 }
  0xed   :  { %117 = vst.msk [vmem:[%s195_s3 + $0x4] sm:$0xf] %vm115_vm3, %v129_v20 }

// kernel: _lambda_.33
= control target key start
LH: loop header
LB: loop body
LE: loop exit
PB: predicated region body
PF: predicated region fallthrough
CT: control target
= control target key end

     0   :  { %vm19_vm0 = vcmask 785408   ;;  %v145_v0 = vmov 0.0   ;;  %vm146_vm1 = vmmov 0   ;;  %vm43_vm2 = vcmask 261120   ;;  %s192_s1 = inlined_call_operand.vmem [shape: bf16[32,96], index: 1, kind: input, shape index: {}]   ;;  %s193_s0 = inlined_call_operand.vmem [shape: f32[16,32], index: 0, kind: input, shape index: {}]   ;;  %s194_s2 = inlined_call_operand.vmem [shape: f32[1,96], index: 2, kind: input, shape index: {}]   ;;  %s195_s3 = inlined_call_operand.vmem [shape: bf16[16,96], index: 3, kind: output, shape index: {}]  }
   0x1   :  { %133 = vmatprep.subr.bf16.mxu0 %v145_v0  ;;  %v143_v1 = vld [vmem:[%s192_s1] sm:$0xff]   ;;  %137 = vmatprep.mubr.msk.bf16.mxu0 %vm146_vm1, %v145_v0  ;;  %20 = vst.msk [vmem:[#allocation2] sm:$0xff] %vm19_vm0, %v145_v0  ;;  %21 = vst.msk [vmem:[#allocation2 + $0x8] sm:$0xff] %vm19_vm0, %v145_v0  ;;  %v144_v2 = vld [vmem:[%s192_s1 + $0x8] sm:$0xff]   ;;  %vm115_vm3 = vcmask 781312  }
   0x2   :  { %134 = vmatpush3.bf16.msra.mxu0 %v143_v1  ;;  %v24_v3 = vld [vmem:[%s193_s0] sm:$0xff]  ;;  %v25_v4 = vld [vmem:[%s193_s0 + $0x8] sm:$0xff] }
   0x3   :  { %135 = vmatprep.subr.bf16.mxu0 %v145_v0  ;;  %v26_v5 = vpack.c.bf16 %v25_v4, %v24_v3  ;;  %v125_v14 = vld [vmem:[%s194_s2] ss:$0 sm:$0xff] }
   0x6   :  { %136 = vmatpush3.bf16.msra.mxu0 %v144_v2 }
   0x8   :  { %v22_v6 = vld [vmem:[#allocation2] sm:$0xff]  ;;  %v23_v8 = vld [vmem:[#allocation2 + $0x8] sm:$0xff] }
   0x9   :  { %138 = vmatmul.mubr.msk.bf16.vlgmr.msra.gmra.mrb[0].mxu0 %vm43_vm2, %v26_v5 }
  0xdc   :  { %v81_v7 = vpop.f32.mrb[0].mxu0 }
  0xdd   :  { %v88_v9 = vadd.f32 %v81_v7, %v22_v6  ;;  %v139_v10 = vpop.f32.mrb[1].mxu0 }
  0xde   :  { %v84_v11 = vpop.f32.mrb[2].mxu0 }
  0xdf   :  { %91 = vst.msk [vmem:[#allocation2] sm:$0xff] %vm19_vm0, %v88_v9  ;;  %v89_v12 = vadd.f32 %v84_v11, %v23_v8  ;;  %v140_v13 = vpop.f32.mrb[3].mxu0 }
  0xe1   :  { %92 = vst.msk [vmem:[#allocation2 + $0x8] sm:$0xff] %vm19_vm0, %v89_v12 }
  0xe6   :  { %v96_v15 = vld [vmem:[#allocation2] sm:$0xff] }
  0xe7   :  { %v105_v16 = vadd.f32 %v125_v14, %v96_v15 }
  0xe8   :  { %v97_v17 = vld [vmem:[#allocation2 + $0x8] sm:$0xff] }
  0xe9   :  { %v128_v18 = vpack.c.bf16 %v105_v16, %v105_v16  ;;  %v106_v19 = vadd.f32 %v125_v14, %v97_v17 }
  0xeb   :  { %116 = vst.msk [vmem:[%s195_s3] sm:$0xf] %vm115_vm3, %v128_v18  ;;  %v129_v20 = vpack.c.bf16 %v106_v19, %v106_v19 }
  0xed   :  { %117 = vst.msk [vmem:[%s195_s3 + $0x4] sm:$0xf] %vm115_vm3, %v129_v20 }

// kernel: _lambda_.32
= control target key start
LH: loop header
LB: loop body
LE: loop exit
PB: predicated region body
PF: predicated region fallthrough
CT: control target
= control target key end

     0   :  { %vm28_vm0 = vcmask 261120   ;;  %v228_v0 = vmov 0.0   ;;  %vm229_vm1 = vmmov 0   ;;  %vm72_vm2 = vcmask 523264   ;;  %s311_s1 = inlined_call_operand.vmem [shape: bf16[64,32], index: 1, kind: input, shape index: {}]   ;;  %s312_s0 = inlined_call_operand.vmem [shape: bf16[16,64], index: 0, kind: input, shape index: {}]   ;;  %s313_s2 = inlined_call_operand.vmem [shape: f32[1,32], index: 2, kind: input, shape index: {}]   ;;  %s314_s3 = inlined_call_operand.vmem [shape: f32[16,32], index: 3, kind: input, shape index: {}]   ;;  %s315_s4 = inlined_call_operand.vmem [shape: f32[1,32], index: 4, kind: input, shape index: {}]   ;;  %s316_s5 = inlined_call_operand.vmem [shape: f32[1,32], index: 5, kind: input, shape index: {}]   ;;  %s317_s6 = inlined_call_operand.vmem [shape: f32[16,32], index: 6, kind: output, shape index: {}]  }
   0x1   :  { %205 = vmatprep.subr.bf16.mxu0 %v228_v0  ;;  %v219_v1 = vld [vmem:[%s311_s1] sm:$0xff]   ;;  %213 = vmatprep.mubr.msk.bf16.mxu0 %vm229_vm1, %v228_v0  ;;  %29 = vst.msk [vmem:[#allocation2] sm:$0xff] %vm28_vm0, %v228_v0  ;;  %30 = vst.msk [vmem:[#allocation2 + $0x8] sm:$0xff] %vm28_vm0, %v228_v0  ;;  %v220_v2 = vld [vmem:[%s311_s1 + $0x8] sm:$0xff]  }
   0x2   :  { %206 = vmatpush3.bf16.msra.mxu0 %v219_v1  ;;  %v221_v3 = vld [vmem:[%s311_s1 + $0x10] sm:$0xff]   ;;  %v222_v4 = vld [vmem:[%s311_s1 + $0x18] sm:$0xff]   ;;  %v223_v5 = vld [vmem:[%s312_s0] sm:$0xff]  }
   0x3   :  { %207 = vmatprep.subr.bf16.mxu0 %v228_v0  ;;  %v197_v14 = vld [vmem:[%s313_s2] ss:$0 sm:$0xff]  ;;  %v137_v19 = vld [vmem:[%s314_s3 + $0x8] sm:$0xff] }
   0x4   :  { %v136_v16 = vld [vmem:[%s314_s3] sm:$0xff] }
   0x5   :  { %v198_v42 = vld [vmem:[%s315_s4] ss:$0 sm:$0xff] }
   0x6   :  { %208 = vmatpush3.bf16.msra.mxu0 %v220_v2  ;;  %v199_v44 = vld [vmem:[%s316_s5] ss:$0 sm:$0xff] }
   0x7   :  { %209 = vmatprep.subr.bf16.mxu0 %v228_v0 }
   0x8   :  { %v31_v6 = vld [vmem:[#allocation2] sm:$0xff]  ;;  %v32_v8 = vld [vmem:[#allocation2 + $0x8] sm:$0xff] }
   0xa   :  { %210 = vmatpush3.bf16.msra.mxu0 %v221_v3 }
   0xb   :  { %211 = vmatprep.subr.bf16.mxu0 %v228_v0 }
   0xe   :  { %212 = vmatpush3.bf16.msra.mxu0 %v222_v4 }
  0x11   :  { %214 = vmatmul.mubr.msk.bf16.vlgmr.msra.gmra.mrb[0].mxu0 %vm72_vm2, %v223_v5 }
  0xe4   :  { %v110_v7 = vpop.f32.mrb[0].mxu0 }
  0xe5   :  { %v117_v9 = vadd.f32 %v110_v7, %v31_v6  ;;  %v215_v10 = vpop.f32.mrb[1].mxu0 }
  0xe6   :  { %v113_v11 = vpop.f32.mrb[2].mxu0 }
  0xe7   :  { %120 = vst.msk [vmem:[#allocation2] sm:$0xff] %vm28_vm0, %v117_v9  ;;  %v118_v12 = vadd.f32 %v113_v11, %v32_v8  ;;  %v216_v13 = vpop.f32.mrb[3].mxu0 }
  0xe9   :  { %121 = vst.msk [vmem:[#allocation2 + $0x8] sm:$0xff] %vm28_vm0, %v118_v12 }
  0xee   :  { %v125_v15 = vld [vmem:[#allocation2] sm:$0xff] }
  0xef   :  { %v134_v17 = vadd.f32 %v197_v14, %v125_v15 }
  0xf0   :  { %v126_v18 = vld [vmem:[#allocation2 + $0x8] sm:$0xff] }
  0xf1   :  { %v138_v20 = vadd.f32 %v136_v16, %v134_v17  ;;  %v135_v21 = vadd.f32 %v197_v14, %v126_v18 }
  0xf3   :  { %v140_v22 = vsel %vm28_vm0, %v138_v20, 0.0  ;;  %v139_v23 = vadd.f32 %v137_v19, %v135_v21 }
  0xf4   :  { %141 = vadd.xlane.f32.xlu0 %v140_v22 }
  0xf5   :  { %v143_v24 = vsel %vm28_vm0, %v139_v23, 0.0 }
  0xf8   :  { %144 = vadd.xlane.f32.xlu0 %v143_v24 }
 0x181   :  { %v142_v25 = vpop.xlane.xlu0 %141 }
 0x182   :  { %v147_v26 = vmul.f32 0.03125, %v142_v25 }
 0x184   :  { %v149_v27 = vsub.f32 %v138_v20, %v147_v26 }
 0x185   :  { %v145_v28 = vpop.xlane.xlu0 %144 }
 0x186   :  { %v148_v29 = vmul.f32 0.03125, %v145_v28  ;;  %v151_v30 = vmul.f32 %v149_v27, %v149_v27 }
 0x188   :  { %v150_v31 = vsub.f32 %v139_v23, %v148_v29  ;;  %v153_v32 = vsel %vm28_vm0, %v151_v30, 0.0 }
 0x189   :  { %154 = vadd.xlane.f32.xlu1 %v153_v32 }
 0x18a   :  { %v152_v33 = vmul.f32 %v150_v31, %v150_v31 }
 0x18c   :  { %v156_v34 = vsel %vm28_vm0, %v152_v33, 0.0 }
 0x18d   :  { %157 = vadd.xlane.f32.xlu1 %v156_v34 }
 0x216   :  { %v155_v35 = vpop.xlane.xlu1 %154 }
 0x217   :  { %v159_v36 = vmul.f32 0.03125, %v155_v35 }
 0x219   :  { %v161_v37 = vadd.f32 1e-05, %v159_v36 }
 0x21a   :  { %v158_v38 = vpop.xlane.xlu1 %157 }
 0x21b   :  { %224 = vrsqrt.f32 %v161_v37  ;;  %v160_v39 = vmul.f32 0.03125, %v158_v38 }
 0x21d   :  { %v162_v40 = vadd.f32 1e-05, %v160_v39 }
 0x21f   :  { %226 = vrsqrt.f32 %v162_v40 }
 0x225   :  { %v225_v41 = vpop.eup %224 }
 0x226   :  { %v165_v43 = vmul.f32 %v225_v41, %v149_v27 }
 0x228   :  { %v174_v45 = vmul.f32 %v198_v42, %v165_v43 }
 0x229   :  { %v227_v46 = vpop.eup %226 }
 0x22a   :  { %v183_v47 = vadd.f32 %v199_v44, %v174_v45  ;;  %v166_v48 = vmul.f32 %v227_v46, %v150_v31 }
 0x22c   :  { %185 = vst.msk [vmem:[%s317_s6] sm:$0xff] %vm28_vm0, %v183_v47  ;;  %v175_v49 = vmul.f32 %v198_v42, %v166_v48 }
 0x22e   :  { %v184_v50 = vadd.f32 %v199_v44, %v175_v49 }
 0x230   :  { %186 = vst.msk [vmem:[%s317_s6 + $0x8] sm:$0xff] %vm28_vm0, %v184_v50 }

// kernel: _lambda_.39
= control target key start
LH: loop header
LB: loop body
LE: loop exit
PB: predicated region body
PF: predicated region fallthrough
CT: control target
= control target key end

     0   :  { %s1009_s12 = smov 0   ;;  %s1011_s13 = smov 0   ;;  %s1138_s0 = inlined_call_operand.vmem [shape: bf16[2,8,32], index: 0, kind: input, shape index: {}]   ;;  %s1139_s1 = inlined_call_operand.vmem [shape: bf16[2,8,32], index: 1, kind: input, shape index: {}]   ;;  %s1140_s2 = inlined_call_operand.vmem [shape: bf16[2,8,32], index: 2, kind: input, shape index: {}]   ;;  %s1141_s3 = inlined_call_operand.vmem [shape: bf16[2,8,32], index: 3, kind: output, shape index: {}]  }
   0x1   :  { %s1013_s14 = smov 0  }
   0x2 LB: > { %s25_s15 = sadd.s32 1, %s975_s13  ;;  %p824_p0 = scmp.ge.s32.totalorder %s979_s14, 1  ;;  %s979_s14 = sphi %s1013_s14, %s13_s14   ;;  %s975_s13 = sphi %s1011_s13, %s1143_s13   ;;  %s971_s12 = sphi %s1009_s12, %s1142_s12  }
   0x3   : > { %p27_p1 = scmp.ge.s32.totalorder %s25_s15, 2  ;;  %p173_p2 = scmp.lt.s32.totalorder %s979_s14, 3 }
   0x5   : > { %s1145_s15 = smov (%p27_p1, %s25_s15), 0  ;;  %p174_p3 = pnand %p824_p0, %p173_p2 }
   0x6   : > { %p209_p4 = scmp.lt.s32.totalorder (!%p174_p3), %s971_s12, 1  ;;  %v981_v0 = vmov (!%p174_p3), 0.0   ;;  %vm982_vm0 = vmmov (!%p174_p3), 0   ;;  %vm243_vm1 = vcmask (!%p174_p3), 64512   ;;  %s983_s23 = smov (!%p174_p3), 120   ;;  %v235_v6 = vlaneseq (!%p174_p3) }
   0x7   : > { %177 = sbr.rel (%p174_p3) target bundleno = 1173 (0x495), region = 32  ;;  %858 = vmatprep.subr.bf16.mxu0 (!%p174_p3), %v981_v0  ;;  %860 = vmatprep.mubr.msk.bf16.mxu0 (!%p174_p3), %vm982_vm0, %v981_v0  ;;  %s984_s24 = smov (!%p174_p3), 112   ;;  %vm304_vm3 = vcmask (!%p174_p3), 1043456   ;;  %vm475_vm4 = vcmask (!%p174_p3), 130112   ;;  %vm592_vm5 = vcmask (!%p174_p3), 195712   ;;  %vm709_vm6 = vcmask (!%p174_p3), 261312  }
   0x8   : > { %864 = vmatprep.subr.bf16.mxu1 (!%p174_p3), %v981_v0  ;;  %866 = vmatprep.mubr.msk.bf16.mxu1 (!%p174_p3), %vm982_vm0, %v981_v0  ;;  %s985_s25 = smov (!%p174_p3), 104   ;;  %v1053_v7 = vshrl.u32 (!%p174_p3), %v235_v6, 7  ;;  %v1055_v8 = vand.u32 (!%p174_p3), 127, %v235_v6  ;;  %s986_s29 = smov (!%p174_p3), 8   ;;  %vm713_vm7 = vcmask (!%p174_p3), 257024  }
   0x9   : > { %s987_s30 = smov (!%p174_p3), 16   ;;  %s988_s4 = smov (!%p174_p3), 24  }
   0xa   : > { %vm242_vm2 = vcmp.ge.s32.totalorder (!%p174_p3), %v1053_v7, %v1055_v8 }
   0xe   : > { %s1147_s12 = smov (!%p209_p4, %s971_s12), 1 }
   0xf   : > { %s1033_s16 = sshll.u32 %s1147_s12, 2 }
  0x10   : > { %s219_s19 = scalar_lea.vmem %s1139_s1, %s1033_s16  ;;  %s215_s22 = scalar_lea.vmem %s1138_s0, %s1033_s16 }
  0x11   : > { %v233_v1 = vld [vmem:[%s219_s19] sm:$0xf]  ;;  %s223_s28 = scalar_lea.vmem %s1140_s2, %s1033_s16  ;;  %s230_s7 = scalar_lea.vmem %s1141_s3, %s1033_s16 }
  0x12   : > { %v248_v2 = vsel %vm243_vm1, %v233_v1, 0  ;;  %v232_v3 = vld [vmem:[%s215_s22] sm:$0xf]  ;;  %v832_v5 = vcombine.low %v233_v1, %v233_v1 }
  0x13   : > { %859 = vmatpush3.bf16.xpose.msra.mxu0 %v248_v2  ;;  %v831_v4 = vcombine.low %v232_v3, %v232_v3  ;;  %v234_v15 = vld [vmem:[%s223_s28] sm:$0xf] }
  0x14   : > { %876 = vmatprep.subr.bf16.mxu0 %v981_v0  ;;  %v306_v16 = vsel %vm304_vm3, %v234_v15, 0  ;;  %v834_v47 = vcombine.low %v234_v15, %v234_v15 }
  0x15   : > { %354 = vrot.lane.b32.xlu1 %v831_v4, %s983_s23  ;;  %865 = vmatpush3.bf16.msra.mxu1 %v306_v16 }
  0x16   : > { %870 = vmatprep.subr.bf16.mxu1 %v981_v0 }
  0x19   : > { %479 = vrot.lane.b32.xlu1 %v832_v5, %s984_s24 }
  0x1a   : > { %861 = vmatmul.mubr.msk.bf16.vlgmr.msra.gmra.mrb[0].mxu0 %vm243_vm1, %v232_v3 }
  0x1b   : > { %878 = vmatprep.mubr.msk.bf16.mxu0 %vm982_vm0, %v981_v0 }
  0x1d   : > { %477 = vrot.lane.b32.xlu1 %v831_v4, %s984_s24 }
  0x21   : > { %596 = vrot.lane.b32.xlu1 %v832_v5, %s985_s25 }
  0x25   : > { %594 = vrot.lane.b32.xlu1 %v831_v4, %s985_s25 }
  0x87   : > { %v355_v22 = vpop.permute.xlu1 %354 }
  0x8b   : > { %v480_v25 = vpop.permute.xlu1 %479 }
  0x8c   : > { %v485_v26 = vsel %vm243_vm1, %v480_v25, 0 }
  0x8f   : > { %v478_v27 = vpop.permute.xlu1 %477 }
  0x93   : > { %v597_v28 = vpop.permute.xlu1 %596 }
  0x94   : > { %v602_v29 = vsel %vm243_vm1, %v597_v28, 0 }
  0x97   : > { %v595_v30 = vpop.permute.xlu1 %594 }
  0xed   : > { %v284_v9 = vpop.f32.mrb[0].mxu0 }
  0xee   : > { %v290_v10 = vsel %vm242_vm2, %v284_v9, -3.4028235e+38  ;;  %v862_v11 = vpop.f32.mrb[1].mxu0 }
  0xef   : > { %v287_v12 = vpop.f32.mrb[2].mxu0  ;;  %v291_v13 = vsel %vm243_vm1, %v290_v10, -inf }
  0xf0   : > { %292 = vmax.xlane.f32.xlu0 %v291_v13  ;;  %v863_v14 = vpop.f32.mrb[3].mxu0 }
 0x106   : > { %359 = vrot.lane.b32.xlu0 %v832_v5, %s983_s23 }
 0x17d   : > { %v293_v17 = vpop.xlane.xlu0 %292 }
 0x17e   : > { %v294_v18 = vsub.f32 %v290_v10, %v293_v17 }
 0x180   : > { %v295_v19 = vmul.f32 1.442695, %v294_v18 }
 0x181   : > { %v360_v20 = vpop.permute.xlu0 %359 }
 0x182   : > { %941 = vpow2.f32 %v295_v19  ;;  %v365_v23 = vsel %vm243_vm1, %v360_v20, 0 }
 0x18c   : > { %v1070_v21 = vpop.eup %941 }
 0x18d   : > { %v300_v24 = vpack.c.bf16 %v1070_v21, %v1070_v21  ;;  %v297_v15 = vsel %vm243_vm1, %v1070_v21, 0.0 }
 0x18f   : > { %867 = vmatmul.mubr.msk.bf16.vlgmr.msra.gmra.mrb[0].mxu1 %vm243_vm1, %v300_v24 }
 0x190   : > { %871 = vmatpush3.bf16.xpose.msra.mxu1 %v365_v23  ;;  %872 = vmatprep.mubr.msk.bf16.mxu1 %vm982_vm0, %v981_v0 }
 0x191   : > { %882 = vmatprep.subr.bf16.mxu1 %v981_v0 }
 0x197   : > { %873 = vmatmul.mubr.msk.bf16.vlgmr.msra.gmra.mrb[4].mxu1 %vm243_vm1, %v355_v22 }
 0x198   : > { %883 = vmatpush3.bf16.xpose.msra.mxu1 %v485_v26  ;;  %884 = vmatprep.mubr.msk.bf16.mxu1 %vm982_vm0, %v981_v0 }
 0x199   : > { %894 = vmatprep.subr.bf16.mxu1 %v981_v0 }
 0x19f   : > { %885 = vmatmul.mubr.msk.bf16.vlgmr.msra.gmra.mrb[8].mxu1 %vm243_vm1, %v478_v27 }
 0x1a0   : > { %895 = vmatpush3.bf16.xpose.msra.mxu1 %v602_v29  ;;  %896 = vmatprep.mubr.msk.bf16.mxu1 %vm982_vm0, %v981_v0 }
 0x1a7   : > { %897 = vmatmul.mubr.msk.bf16.vlgmr.msra.gmra.mrb[12].mxu1 %vm243_vm1, %v595_v30 }
 0x262   : > { %v1089_v31 = vpop.f32.mrb[0].mxu1 }
 0x263   : > { %v868_v32 = vpop.f32.mrb[1].mxu1 }
 0x264   : > { %v345_v33 = vpop.f32.mrb[2].mxu1 }
 0x265   : > { %v869_v34 = vpop.f32.mrb[3].mxu1 }
 0x26a   : > { %v401_v35 = vpop.f32.mrb[4].mxu1 }
 0x26b   : > { %v407_v36 = vsel %vm242_vm2, %v401_v35, -3.4028235e+38  ;;  %v874_v37 = vpop.f32.mrb[5].mxu1 }
 0x26c   : > { %v404_v38 = vpop.f32.mrb[6].mxu1  ;;  %v408_v39 = vsel %vm243_vm1, %v407_v36, -inf }
 0x26d   : > { %409 = vmax.xlane.f32.xlu1 %v408_v39  ;;  %v875_v40 = vpop.f32.mrb[7].mxu1 }
 0x272   : > { %v521_v41 = vpop.f32.mrb[8].mxu1 }
 0x273   : > { %v527_v42 = vsel %vm242_vm2, %v521_v41, -3.4028235e+38  ;;  %v886_v43 = vpop.f32.mrb[9].mxu1 }
 0x274   : > { %v528_v44 = vsel %vm243_vm1, %v527_v42, -inf  ;;  %v524_v45 = vpop.f32.mrb[10].mxu1 }
 0x275   : > { %529 = vmax.xlane.f32.xlu0 %v528_v44  ;;  %v887_v46 = vpop.f32.mrb[11].mxu1 }
 0x27a   : > { %v638_v48 = vpop.f32.mrb[12].mxu1 }
 0x27b   : > { %v898_v49 = vpop.f32.mrb[13].mxu1  ;;  %v644_v52 = vsel %vm242_vm2, %v638_v48, -3.4028235e+38 }
 0x27c   : > { %v641_v50 = vpop.f32.mrb[14].mxu1  ;;  %v645_v53 = vsel %vm243_vm1, %v644_v52, -inf }
 0x27d   : > { %v899_v51 = vpop.f32.mrb[15].mxu1 }
 0x27e   : > { %538 = vrot.lane.b32.xlu1 %v834_v47, %s984_s24 }
 0x28b   : > { %421 = vrot.lane.b32.xlu0 %v834_v47, %s983_s23 }
 0x2a2   : > { %646 = vmax.xlane.f32.xlu1 %v645_v53 }
 0x2b3   : > { %655 = vrot.lane.b32.xlu1 %v834_v47, %s985_s25 }
 0x2fa   : > { %v410_v54 = vpop.xlane.xlu1 %409 }
 0x2fb   : > { %v411_v55 = vsub.f32 %v407_v36, %v410_v54 }
 0x2fd   : > { %v412_v56 = vmul.f32 1.442695, %v411_v55 }
 0x2fe   : > { %v539_v63 = vpop.permute.xlu1 %538 }
 0x2ff   : > { %943 = vpow2.f32 %v412_v56  ;;  %v544_v3 = vsel %vm304_vm3, %v539_v63, 0 }
 0x302   : > { %v530_v57 = vpop.xlane.xlu0 %529 }
 0x303   : > { %v531_v58 = vsub.f32 %v527_v42, %v530_v57 }
 0x305   : > { %v532_v59 = vmul.f32 1.442695, %v531_v58 }
 0x306   : > { %v422_v60 = vpop.permute.xlu0 %421 }
 0x307   : > { %945 = vpow2.f32 %v532_v59  ;;  %v427_v61 = vsel %vm304_vm3, %v422_v60, 0 }
 0x308   : > { %877 = vmatpush3.bf16.msra.mxu0 %v427_v61 }
 0x309   : > { %v944_v62 = vpop.eup %943  ;;  %888 = vmatprep.subr.bf16.mxu0 %v981_v0 }
 0x30a   : > { %v414_v1 = vsel %vm243_vm1, %v944_v62, 0.0  ;;  %v417_v2 = vpack.c.bf16 %v944_v62, %v944_v62 }
 0x30b   : > { %415 = vadd.xlane.f32.xlu0 %v414_v1 }
 0x30c   : > { %879 = vmatmul.mubr.msk.bf16.vlgmr.msra.gmra.mrb[4].mxu0 %vm243_vm1, %v417_v2 }
 0x30d   : > { %889 = vmatpush3.bf16.msra.mxu0 %v544_v3  ;;  %890 = vmatprep.mubr.msk.bf16.mxu0 %vm982_vm0, %v981_v0 }
 0x30e   : > { %900 = vmatprep.subr.bf16.mxu0 %v981_v0 }
 0x311   : > { %v946_v4 = vpop.eup %945 }
 0x312   : > { %v534_v5 = vsel %vm243_vm1, %v946_v4, 0.0  ;;  %v537_v6 = vpack.c.bf16 %v946_v4, %v946_v4 }
 0x313   : > { %535 = vadd.xlane.f32.xlu1 %v534_v5 }
 0x314   : > { %891 = vmatmul.mubr.msk.bf16.vlgmr.msra.gmra.mrb[8].mxu0 %vm243_vm1, %v537_v6 }
 0x315   : > { %902 = vmatprep.mubr.msk.bf16.mxu0 %vm982_vm0, %v981_v0 }
 0x32f   : > { %v647_v7 = vpop.xlane.xlu1 %646 }
 0x330   : > { %v648_v8 = vsub.f32 %v644_v52, %v647_v7 }
 0x332   : > { %v649_v9 = vmul.f32 1.442695, %v648_v8 }
 0x333   : > { %v656_v10 = vpop.permute.xlu1 %655 }
 0x334   : > { %947 = vpow2.f32 %v649_v9  ;;  %v661_v11 = vsel %vm304_vm3, %v656_v10, 0 }
 0x335   : > { %901 = vmatpush3.bf16.msra.mxu0 %v661_v11 }
 0x33e   : > { %v948_v12 = vpop.eup %947 }
 0x33f   : > { %v651_v13 = vsel %vm243_vm1, %v948_v12, 0.0  ;;  %v654_v14 = vpack.c.bf16 %v948_v12, %v948_v12 }
 0x340   : > { %652 = vadd.xlane.f32.xlu0 %v651_v13 }
 0x341   : > { %903 = vmatmul.mubr.msk.bf16.vlgmr.msra.gmra.mrb[12].mxu0 %vm243_vm1, %v654_v14 }
 0x344   : > { %298 = vadd.xlane.f32.xlu0 %v297_v15 }
 0x398   : > { %v416_v0 = vpop.xlane.xlu0 %415 }
 0x3a0   : > { %v536_v18 = vpop.xlane.xlu1 %535 }
 0x3cd   : > { %v653_v16 = vpop.xlane.xlu0 %652 }
 0x3d1   : > { %v299_v17 = vpop.xlane.xlu0 %298 }
 0x3d2   : > { %949 = vrcp.f32 %v299_v17 }
 0x3d3   : > { %951 = vrcp.f32 %v416_v0 }
 0x3d4   : > { %953 = vrcp.f32 %v536_v18 }
 0x3d5   : > { %955 = vrcp.f32 %v653_v16 }
 0x3dc   : > { %v950_v19 = vpop.eup %949 }
 0x3dd   : > { %v349_v20 = vmul.f32 %v950_v19, %v1089_v31  ;;  %v952_v22 = vpop.eup %951 }
 0x3de   : > { %v954_v27 = vpop.eup %953 }
 0x3df   : > { %v463_v23 = vpop.f32.mrb[4].mxu0  ;;  %350 = vst.msk [vmem:[#allocation2] sm:$0xff] %vm243_vm1, %v349_v20  ;;  %v956_v31 = vpop.eup %955 }
 0x3e0   : > { %v470_v24 = vmul.f32 %v952_v22, %v463_v23  ;;  %v880_v25 = vpop.f32.mrb[5].mxu0 }
 0x3e1   : > { %v466_v26 = vpop.f32.mrb[6].mxu0 }
 0x3e2   : > { %472 = vrot.lane.b32.xlu1 %v470_v24, %s986_s29  ;;  %v881_v21 = vpop.f32.mrb[7].mxu0 }
 0x3e7   : > { %v580_v28 = vpop.f32.mrb[8].mxu0 }
 0x3e8   : > { %v587_v29 = vmul.f32 %v954_v27, %v580_v28  ;;  %v892_v30 = vpop.f32.mrb[9].mxu0 }
 0x3e9   : > { %v583_v32 = vpop.f32.mrb[10].mxu0 }
 0x3ea   : > { %589 = vrot.lane.b32.xlu0 %v587_v29, %s987_s30  ;;  %v893_v33 = vpop.f32.mrb[11].mxu0 }
 0x414   : > { %v697_v34 = vpop.f32.mrb[12].mxu0 }
 0x415   : > { %v704_v35 = vmul.f32 %v956_v31, %v697_v34  ;;  %v904_v36 = vpop.f32.mrb[13].mxu0 }
 0x416   : > { %v700_v37 = vpop.f32.mrb[14].mxu0 }
 0x417   : > { %706 = vrot.lane.b32.xlu1 %v704_v35, %s988_s4  ;;  %v905_v38 = vpop.f32.mrb[15].mxu0 }
 0x454   : > { %v473_v39 = vpop.permute.xlu1 %472 }
 0x455   : > { %476 = vst.msk [vmem:[#allocation2] sm:$0xff] %vm475_vm4, %v473_v39 }
 0x45c   : > { %v590_v40 = vpop.permute.xlu0 %589 }
 0x45d   : > { %593 = vst.msk [vmem:[#allocation2] sm:$0xff] %vm592_vm5, %v590_v40 }
 0x489   : > { %v707_v41 = vpop.permute.xlu1 %706 }
 0x48a   : > { %710 = vst.msk [vmem:[#allocation2] sm:$0xff] %vm709_vm6, %v707_v41 }
 0x491   : > { %v711_v42 = vld [vmem:[#allocation2] sm:$0xff] }
 0x492   : > { %v712_v43 = vpack.c.bf16 %v711_v42, %v711_v42 }
 0x494   : > { %714 = vst.msk [vmem:[%s230_s7] sm:$0xf] %vm713_vm7, %v712_v43 }
 0x495 PF: > { %s13_s14 = sadd.s32 1, %s979_s14   ;;  %s1142_s12 = smov %s975_s13 }
 0x496   : > { %p10_p5 = scmp.ge.s32.totalorder %s13_s14, 4   ;;  %s1143_s13 = smov %s1145_s15 }
 0x498   :  { %12 = sbr.rel (!%p10_p5) target bundleno = 2 (0x2), region = 68 }

// kernel: _lambda_.41
= control target key start
LH: loop header
LB: loop body
LE: loop exit
PB: predicated region body
PF: predicated region fallthrough
CT: control target
= control target key end

     0   :  { %vm19_vm0 = vcmask 261120   ;;  %v144_v0 = vmov 0.0   ;;  %vm145_vm1 = vmmov 0   ;;  %vm114_vm2 = vcmask 257024   ;;  %s192_s1 = inlined_call_operand.vmem [shape: bf16[32,32], index: 1, kind: input, shape index: {}]   ;;  %s193_s0 = inlined_call_operand.vmem [shape: f32[16,32], index: 0, kind: input, shape index: {}]   ;;  %s194_s2 = inlined_call_operand.vmem [shape: f32[1,32], index: 2, kind: input, shape index: {}]   ;;  %s195_s3 = inlined_call_operand.vmem [shape: bf16[16,32], index: 3, kind: output, shape index: {}]  }
   0x1   :  { %132 = vmatprep.subr.bf16.mxu0 %v144_v0  ;;  %v142_v1 = vld [vmem:[%s192_s1] sm:$0xff]   ;;  %136 = vmatprep.mubr.msk.bf16.mxu0 %vm145_vm1, %v144_v0  ;;  %20 = vst.msk [vmem:[#allocation2] sm:$0xff] %vm19_vm0, %v144_v0  ;;  %21 = vst.msk [vmem:[#allocation2 + $0x8] sm:$0xff] %vm19_vm0, %v144_v0  ;;  %v143_v2 = vld [vmem:[%s192_s1 + $0x8] sm:$0xff]  }
   0x2   :  { %133 = vmatpush3.bf16.msra.mxu0 %v142_v1  ;;  %v24_v3 = vld [vmem:[%s193_s0] sm:$0xff]  ;;  %v25_v4 = vld [vmem:[%s193_s0 + $0x8] sm:$0xff] }
   0x3   :  { %134 = vmatprep.subr.bf16.mxu0 %v144_v0  ;;  %v26_v5 = vpack.c.bf16 %v25_v4, %v24_v3  ;;  %v124_v14 = vld [vmem:[%s194_s2] ss:$0 sm:$0xff] }
   0x6   :  { %135 = vmatpush3.bf16.msra.mxu0 %v143_v2 }
   0x8   :  { %v22_v6 = vld [vmem:[#allocation2] sm:$0xff]  ;;  %v23_v8 = vld [vmem:[#allocation2 + $0x8] sm:$0xff] }
   0x9   :  { %137 = vmatmul.mubr.msk.bf16.vlgmr.msra.gmra.mrb[0].mxu0 %vm19_vm0, %v26_v5 }
  0xdc   :  { %v81_v7 = vpop.f32.mrb[0].mxu0 }
  0xdd   :  { %v88_v9 = vadd.f32 %v81_v7, %v22_v6  ;;  %v138_v10 = vpop.f32.mrb[1].mxu0 }
  0xde   :  { %v84_v11 = vpop.f32.mrb[2].mxu0 }
  0xdf   :  { %90 = vst.msk [vmem:[#allocation2] sm:$0xff] %vm19_vm0, %v88_v9  ;;  %v89_v12 = vadd.f32 %v84_v11, %v23_v8  ;;  %v139_v13 = vpop.f32.mrb[3].mxu0 }
  0xe1   :  { %91 = vst.msk [vmem:[#allocation2 + $0x8] sm:$0xff] %vm19_vm0, %v89_v12 }
  0xe6   :  { %v95_v15 = vld [vmem:[#allocation2] sm:$0xff] }
  0xe7   :  { %v104_v16 = vadd.f32 %v124_v14, %v95_v15 }
  0xe8   :  { %v96_v17 = vld [vmem:[#allocation2 + $0x8] sm:$0xff] }
  0xe9   :  { %v127_v18 = vpack.c.bf16 %v104_v16, %v104_v16  ;;  %v105_v19 = vadd.f32 %v124_v14, %v96_v17 }
  0xeb   :  { %115 = vst.msk [vmem:[%s195_s3] sm:$0xf] %vm114_vm2, %v127_v18  ;;  %v128_v20 = vpack.c.bf16 %v105_v19, %v105_v19 }
  0xed   :  { %116 = vst.msk [vmem:[%s195_s3 + $0x4] sm:$0xf] %vm114_vm2, %v128_v20 }

// kernel: _lambda_.55
= control target key start
LH: loop header
LB: loop body
LE: loop exit
PB: predicated region body
PF: predicated region fallthrough
CT: control target
= control target key end

     0   :  { %v268_v1 = vmov 0.0   ;;  %vm269_vm0 = vmmov 0   ;;  %vm29_vm1 = vcmask 261120   ;;  %s360_s0 = inlined_call_operand.vmem [shape: bf16[16,64], index: 0, kind: input, shape index: {}]   ;;  %s361_s1 = inlined_call_operand.vmem [shape: bf16[64,32], index: 1, kind: input, shape index: {}]   ;;  %s362_s2 = inlined_call_operand.vmem [shape: f32[1,32], index: 2, kind: input, shape index: {}]   ;;  %s363_s3 = inlined_call_operand.vmem [shape: f32[16,32], index: 3, kind: input, shape index: {}]   ;;  %s364_s4 = inlined_call_operand.vmem [shape: f32[1,32], index: 4, kind: input, shape index: {}]   ;;  %s365_s5 = inlined_call_operand.vmem [shape: f32[1,32], index: 5, kind: input, shape index: {}]   ;;  %s366_s6 = inlined_call_operand.hbm [shape: f32[16,32], index: 6, kind: output, shape index: {}]  }
   0x1   :  { %v235_v0 = vld [vmem:[%s361_s1] sm:$0xff]   ;;  %218 = vmatprep.subr.bf16.mxu0 %v268_v1  ;;  %v236_v2 = vld [vmem:[%s361_s1 + $0x8] sm:$0xff]   ;;  %226 = vmatprep.mubr.msk.bf16.mxu0 %vm269_vm0, %v268_v1  ;;  %30 = vst.msk [vmem:[#allocation2] sm:$0xff] %vm29_vm1, %v268_v1  ;;  %31 = vst.msk [vmem:[#allocation2 + $0x8] sm:$0xff] %vm29_vm1, %v268_v1 }
   0x2   :  { %219 = vmatpush3.bf16.msra.mxu0 %v235_v0 }
   0x3   :  { %220 = vmatprep.subr.bf16.mxu0 %v268_v1 }
   0x4   :  { %11 = vsyncpa [#allocation4], 0  ;;  %v237_v3 = vld [vmem:[%s361_s1 + $0x10] sm:$0xff]   ;;  %v238_v4 = vld [vmem:[%s361_s1 + $0x18] sm:$0xff]   ;;  %vm73_vm2 = vcmask 523264   ;;  %s270_s13 = smov [#allocation3]  }
   0x5   :  { %v239_v5 = vld [vmem:[%s360_s0] sm:$0xff]   ;;  %v138_v19 = vld [vmem:[%s363_s3 + $0x8] sm:$0xff]  ;;  %s193_s14 = sshll.u32 %s270_s13, 4  ;;  %s194_s14 = int_to_ptr.vmem [resolvable:$true] %s193_s14 }
   0x6   :  { %221 = vmatpush3.bf16.msra.mxu0 %v236_v2  ;;  %v210_v14 = vld [vmem:[%s362_s2] ss:$0 sm:$0xff]  ;;  %s244_s15 = scalar_lea.vmem %s194_s14, 256  ;;  %p249_p1 = scmp.lt.s32.totalorder %s194_s14, %s194_s14 }
   0x7   :  { %222 = vmatprep.subr.bf16.mxu0 %v268_v1  ;;  %v137_v16 = vld [vmem:[%s363_s3] sm:$0xff]  ;;  %p245_p0 = scmp.ne.s32.totalorder %s194_s14, %s244_s15  ;;  %p250_p2 = scmp.lt.s32.totalorder %s244_s15, %s244_s15 }
   0x8   :  { %v32_v6 = vld [vmem:[#allocation2] sm:$0xff]  ;;  %v33_v8 = vld [vmem:[#allocation2 + $0x8] sm:$0xff] }
   0x9   :  { %v211_v42 = vld [vmem:[%s364_s4] ss:$0 sm:$0xff]  ;;  %p251_p3 = por %p250_p2, %p249_p1 }
   0xa   :  { %223 = vmatpush3.bf16.msra.mxu0 %v237_v3  ;;  %v212_v44 = vld [vmem:[%s365_s5] ss:$0 sm:$0xff] }
   0xb   :  { %224 = vmatprep.subr.bf16.mxu0 %v268_v1  ;;  %p252_p4 = pnand %p251_p3, %p245_p0 }
   0xe   :  { %225 = vmatpush3.bf16.msra.mxu0 %v238_v4 }
  0x11   :  { %227 = vmatmul.mubr.msk.bf16.vlgmr.msra.gmra.mrb[0].mxu0 %vm73_vm2, %v239_v5 }
  0xe4   :  { %v111_v7 = vpop.f32.mrb[0].mxu0 }
  0xe5   :  { %v118_v9 = vadd.f32 %v111_v7, %v32_v6  ;;  %v228_v10 = vpop.f32.mrb[1].mxu0 }
  0xe6   :  { %v114_v11 = vpop.f32.mrb[2].mxu0 }
  0xe7   :  { %121 = vst.msk [vmem:[#allocation2] sm:$0xff] %vm29_vm1, %v118_v9  ;;  %v119_v12 = vadd.f32 %v114_v11, %v33_v8  ;;  %v229_v13 = vpop.f32.mrb[3].mxu0 }
  0xe9   :  { %122 = vst.msk [vmem:[#allocation2 + $0x8] sm:$0xff] %vm29_vm1, %v119_v12 }
  0xee   :  { %v126_v15 = vld [vmem:[#allocation2] sm:$0xff] }
  0xef   :  { %v135_v17 = vadd.f32 %v210_v14, %v126_v15 }
  0xf0   :  { %v127_v18 = vld [vmem:[#allocation2 + $0x8] sm:$0xff] }
  0xf1   :  { %v139_v20 = vadd.f32 %v137_v16, %v135_v17  ;;  %v136_v21 = vadd.f32 %v210_v14, %v127_v18 }
  0xf3   :  { %v141_v22 = vsel %vm29_vm1, %v139_v20, 0.0  ;;  %v140_v23 = vadd.f32 %v138_v19, %v136_v21 }
  0xf4   :  { %142 = vadd.xlane.f32.xlu0 %v141_v22 }
  0xf5   :  { %v144_v24 = vsel %vm29_vm1, %v140_v23, 0.0 }
  0xf8   :  { %145 = vadd.xlane.f32.xlu0 %v144_v24 }
 0x181   :  { %v143_v25 = vpop.xlane.xlu0 %142 }
 0x182   :  { %v148_v26 = vmul.f32 0.03125, %v143_v25 }
 0x184   :  { %v150_v27 = vsub.f32 %v139_v20, %v148_v26 }
 0x185   :  { %v146_v28 = vpop.xlane.xlu0 %145 }
 0x186   :  { %v149_v29 = vmul.f32 0.03125, %v146_v28  ;;  %v152_v30 = vmul.f32 %v150_v27, %v150_v27 }
 0x188   :  { %v151_v31 = vsub.f32 %v140_v23, %v149_v29  ;;  %v154_v32 = vsel %vm29_vm1, %v152_v30, 0.0 }
 0x189   :  { %155 = vadd.xlane.f32.xlu1 %v154_v32 }
 0x18a   :  { %v153_v33 = vmul.f32 %v151_v31, %v151_v31 }
 0x18c   :  { %v157_v34 = vsel %vm29_vm1, %v153_v33, 0.0 }
 0x18d   :  { %158 = vadd.xlane.f32.xlu1 %v157_v34 }
 0x216   :  { %v156_v35 = vpop.xlane.xlu1 %155 }
 0x217   :  { %v160_v36 = vmul.f32 0.03125, %v156_v35 }
 0x219   :  { %v162_v37 = vadd.f32 1e-05, %v160_v36 }
 0x21a   :  { %v159_v38 = vpop.xlane.xlu1 %158 }
 0x21b   :  { %240 = vrsqrt.f32 %v162_v37  ;;  %v161_v39 = vmul.f32 0.03125, %v159_v38 }
 0x21d   :  { %v163_v40 = vadd.f32 1e-05, %v161_v39 }
 0x21f   :  { %242 = vrsqrt.f32 %v163_v40 }
 0x225   :  { %v241_v41 = vpop.eup %240 }
 0x226   :  { %v166_v43 = vmul.f32 %v241_v41, %v150_v27 }
 0x228   :  { %v175_v45 = vmul.f32 %v211_v42, %v166_v43 }
 0x229   :  { %v243_v46 = vpop.eup %242 }
 0x22a   :  { %v167_v47 = vmul.f32 %v243_v46, %v151_v31  ;;  %v184_v48 = vadd.f32 %v212_v44, %v175_v45 }
 0x22c   :  { %v176_v49 = vmul.f32 %v211_v42, %v167_v47  ;;  %186 = vst.msk [vmem:[#allocation3] sm:$0xff] %vm29_vm1, %v184_v48 }
 0x22e   :  { %v185_v50 = vadd.f32 %v212_v44, %v176_v49 }
 0x230   :  { %187 = vst.msk [vmem:[#allocation3 + $0x8] sm:$0xff] %vm29_vm1, %v185_v50 }
 0x231   :  { %255 = shalt.err (!%p252_p4)
}
 0x232   :  { %s256_s16 = scalar_lea.hbm %s366_s6, 256 }
 0x233   :  { %p257_p5 = scmp.ne.s32.totalorder %s366_s6, %s256_s16  ;;  %p260_p6 = scmp.lt.u32.totalorder %s256_s16, %s366_s6 }
 0x235   :  { %p262_p7 = pnand %p260_p6, %p257_p5 }
 0x237   :  { %265 = shalt.err (!%p262_p7)
}
 0x238   :  { %s271_s21 = smov 128   ;;  %s272_s22 = smov 8  }
 0x239   :  { %199 = dma.vmem_to_hbm [thread:$0]  %s194_s14, 256, %s366_s6, [#allocation4], %s271_s21, %s271_s21, %s272_s22  }
 0x23a   :  { %266 = dma.done.wait [#allocation4], 256  }
 0x23b   :  { %267 = vsyncadd [#allocation4], 4294967040 }
 0x23c   :  { %203 = vsyncpa [#allocation4], 1 }

</bundles_post_ra>
